<compile_context>
chip_gen: v6e
topology: v6e:2x2x1
jax: 0.10.0
libtpu: 0.0.40
codegen_flags: <defaults>
</compile_context>

<pallas_src>
import functools

import jax
import jax.numpy as jnp
import numpy as np
from jax.experimental import pallas as pl
from jax.experimental.pallas import tpu as pltpu


def _round_up(x, m):
    return ((x + m - 1) // m) * m


def _act(name, x):
    if name == "tanh":
        return jnp.tanh(x)
    if name == "sigmoid":
        return jax.nn.sigmoid(x)
    if name == "relu":
        return jnp.maximum(x, 0.0)
    if name == "softplus":
        return jax.nn.softplus(x)
    raise KeyError("invalid activation function")


# --------------------------------------------------------------------------
# Kernel
# --------------------------------------------------------------------------
def _standardnet_kernel(x_ref, w0_ref, wh_ref, bh_ref, wc_ref, bc_ref,
                        pred_ref, cls_ref, trans_ref, *,
                        L, K, act_function, compute_dtype, precision):
    # x_ref:     (TN, d)
    # w0_ref:    (d, Dp)            input layer, no bias, no activation
    # wh_ref:    (L, Dp, Dp)        hidden layers (pre-transposed, zero-padded)
    # bh_ref:    (L, 1, Dp)         f32 biases (zero-padded)
    # wc_ref:    (Dp, K)            classifier (pre-transposed, zero-padded rows)
    # bc_ref:    (1, K)
    # pred_ref:  (TN, K)            after hypothesis function
    # cls_ref:   (TN, K)            logits
    # trans_ref: (L+1, TN, Dp)      features at every layer (lane-dense)
    def mm(a, b):
        return jnp.dot(a.astype(compute_dtype), b,
                       preferred_element_type=jnp.float32,
                       precision=precision)

    x = x_ref[...]

    # Input layer: linear, no bias, NO activation (matches PyTorch loop i == 0).
    h = mm(x, w0_ref[...])
    trans_ref[0] = h.astype(trans_ref.dtype)

    # Hidden layers: act(h @ W_l + b_l); L is a static Python int (unrolled).
    for l in range(L):
        z = mm(h, wh_ref[l]) + bh_ref[l]
        h = _act(act_function, z)
        trans_ref[l + 1] = h.astype(trans_ref.dtype)

    # Classifier (affine).
    logits = mm(h, wc_ref[...]) + bc_ref[...]
    cls_ref[...] = logits

    # Hypothesis function: sigmoid for K == 1, softmax over classes otherwise.
    if K == 1:
        pred_ref[...] = jax.nn.sigmoid(logits)
    else:
        m = jnp.max(logits, axis=1, keepdims=True)
        e = jnp.exp(logits - m)
        denom = jnp.sum(e, axis=1, keepdims=True)
        pred_ref[...] = e * pl.reciprocal(denom, approx=True)


# --------------------------------------------------------------------------
# One-time parameter preparation (transpose / reshape / lane-pad)
# --------------------------------------------------------------------------
def prepare_standardnet_params(params, *, L, K, compute_dtype=jnp.float32,
                               pad_features_to=128):
    """Transpose weights to (in, out), reshape biases, zero-pad d_hat to a
    lane multiple.  Padded columns only ever produce act(0) garbage that
    multiplies zero weight rows downstream, so real outputs are unchanged.

    params: dict with
      w0: (d_hat, d)   -- nn.Linear(d, d_hat, bias=False).weight
      wh: (L, d_hat, d_hat), bh: (L, d_hat)
      wc: (K, d_hat),  bc: (K,)
    """
    d_hat, _ = params["w0"].shape
    if pad_features_to and d_hat % pad_features_to:
        d_hat_pad = _round_up(d_hat, pad_features_to)
    else:
        d_hat_pad = d_hat
    pad = d_hat_pad - d_hat

    w0_t = jnp.asarray(params["w0"], jnp.float32).T                     # (d, d_hat)
    wh_t = jnp.transpose(jnp.asarray(params["wh"], jnp.float32), (0, 2, 1))
    bh = jnp.asarray(params["bh"], jnp.float32)                          # (L, d_hat)
    wc_t = jnp.asarray(params["wc"], jnp.float32).T                      # (d_hat, K)
    bc = jnp.asarray(params["bc"], jnp.float32).reshape(1, K)

    if pad:
        w0_t = jnp.pad(w0_t, ((0, 0), (0, pad)))
        wh_t = jnp.pad(wh_t, ((0, 0), (0, pad), (0, pad)))
        bh = jnp.pad(bh, ((0, 0), (0, pad)))
        wc_t = jnp.pad(wc_t, ((0, pad), (0, 0)))

    return {
        "w0_t": w0_t.astype(compute_dtype),
        "wh_t": wh_t.astype(compute_dtype),
        "bh": bh.reshape(L, 1, d_hat_pad),     # biases stay f32
        "wc_t": wc_t.astype(compute_dtype),
        "bc": bc,
        "compute_dtype": compute_dtype,
        "d_hat": int(d_hat),
        "d_hat_pad": int(d_hat_pad),
    }


# --------------------------------------------------------------------------
# Generation-aware VMEM budgeting and batch-tile sizing
# --------------------------------------------------------------------------
def _vmem_limits():
    """(vmem_limit_bytes for CompilerParams, budget for the tile sizer)."""
    cap = None
    try:
        cap = getattr(pltpu.get_tpu_info(), "vmem_capacity_bytes", None)
    except Exception:
        cap = None
    if not cap:
        cap = 128 * 1024 * 1024
    if cap <= 64 * 1024 * 1024:
        # v7x-class: 64 MiB per TensorCore -> leave headroom for Mosaic scratch.
        limit = min(cap, 56 * 1024 * 1024)
    else:
        # v5e / v6e: 128 MiB physical (scoped default is far smaller).
        limit = min(cap, 100 * 1024 * 1024)
    budget = limit - 6 * 1024 * 1024
    return int(limit), int(budget)


def _choose_batch_tile(N, d, d_hat_pad, K, L, *, budget_bytes, feat_itemsize=4):
    """Largest batch tile (multiple of 8, <= 2048) fitting the VMEM budget,
    accounting for (8,128) layout padding of every block.  Weights are counted
    single-buffered (constant index_map + pl.Buffered(1))."""
    f32 = 4
    d_lane = _round_up(max(d, 1), 128)
    dh_lane = _round_up(d_hat_pad, 128)
    k_lane = _round_up(max(K, 1), 128)

    w_bytes = f32 * (_round_up(d, 8) * dh_lane
                     + L * _round_up(d_hat_pad, 8) * dh_lane
                     + L * 8 * dh_lane
                     + _round_up(d_hat_pad, 8) * k_lane
                     + 8 * k_lane)
    if w_bytes > budget_bytes:
        # TODO(synk): stream wh per layer over a second "arbitrary" grid axis
        # when the full hidden-weight block does not fit VMEM (v7x 64 MiB).
        raise ValueError(
            f"StandardNet weights need ~{w_bytes} bytes of VMEM (incl. layout "
            f"padding) which exceeds the budget of {budget_bytes} bytes.")

    def tile_bytes(tn):
        tn8 = _round_up(tn, 8)
        return (f32 * tn8 * d_lane                           # X block
                + feat_itemsize * (L + 1) * tn8 * dh_lane    # features block
                + 2 * f32 * tn8 * k_lane)                    # pred + cls blocks

    tn = 2048
    while tn > 8 and (w_bytes + 2 * tile_bytes(tn)) > budget_bytes:
        tn //= 2
    tn = max(8, tn)

    if tn >= N:
        if N >= 1024:
            # Keep >= 4 grid steps so v7x megacore sharding and the DMA
            # pipeline have work; otherwise one whole-batch tile is fine.
            tn = max(8, _round_up((N + 3) // 4, 8))
        else:
            tn = N
    return int(tn)


def _const_spec(block_shape, single_buffer):
    """BlockSpec for a weight/bias that is resident for the whole grid."""
    ndim = len(block_shape)
    index_map = lambda i, _n=ndim: (0,) * _n
    if single_buffer:
        try:
            return pl.BlockSpec(block_shape, index_map,
                                pipeline_mode=pl.Buffered(1))
        except Exception:
            pass
    return pl.BlockSpec(block_shape, index_map)


# --------------------------------------------------------------------------
# Forward wrapper
# --------------------------------------------------------------------------
def standardnet_forward(X, prepped, *, L, K, act_function,
                        batch_tile=None, transformed_layout="kernel",
                        features_dtype=jnp.float32, trim_feature_padding=True,
                        mxu_precision=None):
    """StandardNet forward pass with pre-prepared params.

    X: (N, d) float32.
    Returns [X_predicted (N,K), X_classified (N,K), X_transformed].
    X_transformed is (L+1, N, d_hat) for transformed_layout="kernel" (default,
    lane-dense, no extra HBM pass) or (N, d_hat, L+1) for "torch" (PyTorch
    convention; costs one extra HBM read+write of the largest tensor).
    """
    X = jnp.asarray(X, jnp.float32)
    N, d = X.shape
    d_hat = prepped["d_hat"]
    Dp = prepped["d_hat_pad"]
    compute_dtype = prepped["compute_dtype"]

    vmem_limit, vmem_budget = _vmem_limits()
    feat_itemsize = jnp.dtype(features_dtype).itemsize

    if batch_tile is None:
        batch_tile = _choose_batch_tile(N, d, Dp, K, L,
                                        budget_bytes=vmem_budget,
                                        feat_itemsize=feat_itemsize)
    TN = min(int(batch_tile), N)
    if TN < N:
        TN = max(8, (TN // 8) * 8)   # sublane-aligned partial tiles
    grid_n = pl.cdiv(N, TN)

    # Precision: HIGHEST (PyTorch f32 parity) only when cheap; otherwise
    # MXU-native single pass (HIGHEST is a 3-6x multi-pass bf16 emulation).
    if mxu_precision is not None:
        precision = mxu_precision
    elif compute_dtype == jnp.float32 and Dp <= 256:
        precision = jax.lax.Precision.HIGHEST
    else:
        precision = None

    kernel = functools.partial(_standardnet_kernel, L=L, K=K,
                               act_function=act_function,
                               compute_dtype=compute_dtype,
                               precision=precision)

    out_shapes = (
        jax.ShapeDtypeStruct((N, K), jnp.float32),              # X_predicted
        jax.ShapeDtypeStruct((N, K), jnp.float32),              # X_classified
        jax.ShapeDtypeStruct((L + 1, N, Dp), features_dtype),   # features
    )
    out_specs = (
        pl.BlockSpec((TN, K), lambda i: (i, 0)),
        pl.BlockSpec((TN, K), lambda i: (i, 0)),
        pl.BlockSpec((L + 1, TN, Dp), lambda i: (0, i, 0)),
    )
    const_shapes = [(d, Dp), (L, Dp, Dp), (L, 1, Dp), (Dp, K), (1, K)]
    args = (X, prepped["w0_t"], prepped["wh_t"], prepped["bh"],
            prepped["wc_t"], prepped["bc"])

    def run(single_buffer_weights):
        in_specs = [pl.BlockSpec((TN, d), lambda i: (i, 0))]
        in_specs += [_const_spec(s, single_buffer_weights) for s in const_shapes]
        return pl.pallas_call(
            kernel,
            out_shape=out_shapes,
            grid=(grid_n,),
            in_specs=in_specs,
            out_specs=out_specs,
            compiler_params=pltpu.CompilerParams(
                dimension_semantics=("parallel",),   # megacore-shardable (v7x)
                vmem_limit_bytes=vmem_limit),
        )(*args)

    try:
        # Constant-index weights never re-fetch -> single-buffer them so the
        # dead second buffer does not eat VMEM (bigger TN headroom).
        pred, cls, trans_k = run(True)
    except Exception:
        # Fallback if this build rejects pl.Buffered(1) on pallas_call specs.
        pred, cls, trans_k = run(False)

    if trim_feature_padding and Dp != d_hat:
        trans_k = trans_k[..., :d_hat]

    if transformed_layout == "kernel":
        X_transformed = trans_k                       # (L+1, N, d_hat[_pad])
    elif transformed_layout == "torch":
        # PyTorch convention (N, d_hat, L+1): extra HBM pass over the largest
        # tensor -- prefer the default "kernel" layout when the consumer allows.
        X_transformed = jnp.transpose(trans_k, (1, 2, 0))
    else:
        raise ValueError("transformed_layout must be 'kernel' or 'torch'")
    return [pred, cls, X_transformed]


# --------------------------------------------------------------------------
# Reference (pure JAX) and test harness
# --------------------------------------------------------------------------
def _reference_forward(X, params, *, L, K, act_function):
    prec = jax.lax.Precision.HIGHEST
    h = jnp.dot(X, params["w0"].T, precision=prec)
    feats = [h]
    for l in range(L):
        h = _act(act_function,
                 jnp.dot(h, params["wh"][l].T, precision=prec) + params["bh"][l])
        feats.append(h)
    logits = jnp.dot(h, params["wc"].T, precision=prec) + params["bc"]
    if K == 1:
        pred = jax.nn.sigmoid(logits)
    else:
        pred = jax.nn.softmax(logits, axis=1)
    return pred, logits, jnp.stack(feats, axis=-1)


def _make_params(key, d, d_hat, K, L):
    k0, kw, kb, kc, kcb = jax.random.split(key, 5)
    return {
        "w0": jax.random.normal(k0, (d_hat, d), dtype=jnp.float32) * 0.3,
        "wh": jax.random.normal(kw, (L, d_hat, d_hat), dtype=jnp.float32) * 0.1,
        "bh": jax.random.normal(kb, (L, d_hat), dtype=jnp.float32) * 0.05,
        "wc": jax.random.normal(kc, (K, d_hat), dtype=jnp.float32) * 0.1,
        "bc": jax.random.normal(kcb, (K,), dtype=jnp.float32) * 0.05,
    }


if __name__ == "__main__":
    # Small shapes consistent with the module.  N is deliberately NOT a
    # multiple of the batch tile to exercise masked edge tiles.
    N, d, d_hat, K, L = 20, 4, 32, 3, 3
    act_function = "tanh"

    key = jax.random.PRNGKey(0)
    kx, kp, kp1 = jax.random.split(key, 3)
    X = jax.random.normal(kx, (N, d), dtype=jnp.float32)

    # --- multi-class (softmax), f32 compute, tiled batch (grid of 3) --------
    params = _make_params(kp, d, d_hat, K, L)
    prepped = prepare_standardnet_params(params, L=L, K=K)   # d_hat padded to 128
    pred, cls, feats = standardnet_forward(
        X, prepped, L=L, K=K, act_function=act_function, batch_tile=8)
    jax.block_until_ready((pred, cls, feats))

    ref_pred, ref_cls, ref_feats = _reference_forward(
        X, params, L=L, K=K, act_function=act_function)
    assert pred.shape == (N, K) and cls.shape == (N, K)
    assert feats.shape == (L + 1, N, d_hat)                  # "kernel" layout
    np.testing.assert_allclose(np.asarray(cls), np.asarray(ref_cls),
                               rtol=1e-5, atol=1e-5)
    np.testing.assert_allclose(np.asarray(jnp.transpose(feats, (1, 2, 0))),
                               np.asarray(ref_feats), rtol=1e-5, atol=1e-5)
    # pred uses the approximate EUP reciprocal for the softmax denominator.
    np.testing.assert_allclose(np.asarray(pred), np.asarray(ref_pred),
                               rtol=2e-3, atol=2e-3)

    # --- binary (K=1, sigmoid), auto tile, PyTorch feature layout -----------
    params1 = _make_params(kp1, d, d_hat, 1, L)
    prepped1 = prepare_standardnet_params(params1, L=L, K=1)
    pred1, cls1, feats1 = standardnet_forward(
        X, prepped1, L=L, K=1, act_function=act_function,
        transformed_layout="torch")
    jax.block_until_ready((pred1, cls1, feats1))
    r_pred1, r_cls1, r_feats1 = _reference_forward(
        X, params1, L=L, K=1, act_function=act_function)
    assert feats1.shape == (N, d_hat, L + 1)
    np.testing.assert_allclose(np.asarray(pred1), np.asarray(r_pred1),
                               rtol=1e-5, atol=1e-5)
    np.testing.assert_allclose(np.asarray(cls1), np.asarray(r_cls1),
                               rtol=1e-5, atol=1e-5)
    np.testing.assert_allclose(np.asarray(feats1), np.asarray(r_feats1),
                               rtol=1e-5, atol=1e-5)

    # --- bf16 compute + bf16 features (MXU / store-bandwidth levers) --------
    prepped_bf16 = prepare_standardnet_params(params, L=L, K=K,
                                              compute_dtype=jnp.bfloat16)
    pred_b, cls_b, feats_b = standardnet_forward(
        X, prepped_bf16, L=L, K=K, act_function=act_function,
        batch_tile=16, features_dtype=jnp.bfloat16,
        trim_feature_padding=False)          # raw lane-padded slab, zero-copy
    jax.block_until_ready((pred_b, cls_b, feats_b))
    Dp = prepped_bf16["d_hat_pad"]
    assert feats_b.shape == (L + 1, N, Dp) and feats_b.dtype == jnp.bfloat16
    np.testing.assert_allclose(np.asarray(cls_b), np.asarray(ref_cls),
                               rtol=5e-2, atol=5e-2)
    np.testing.assert_allclose(
        np.asarray(jnp.transpose(feats_b[..., :d_hat].astype(jnp.float32),
                                 (1, 2, 0))),
        np.asarray(ref_feats), rtol=5e-2, atol=5e-2)

    print("KERNEL_OK")
</pallas_src>

<mosaic_0001>
module attributes {stable_mosaic.version = 11 : i64} {
  func.func @_standardnet_kernel(%arg0: i32, %arg1: memref<8x4xf32, #tpu.memory_space<vmem>>, %arg2: memref<4x128xf32, #tpu.memory_space<vmem>>, %arg3: memref<3x128x128xf32, #tpu.memory_space<vmem>>, %arg4: memref<3x1x128xf32, #tpu.memory_space<vmem>>, %arg5: memref<128x3xf32, #tpu.memory_space<vmem>>, %arg6: memref<1x3xf32, #tpu.memory_space<vmem>>, %arg7: memref<8x3xf32, #tpu.memory_space<vmem>>, %arg8: memref<8x3xf32, #tpu.memory_space<vmem>>, %arg9: memref<4x8x128xf32, #tpu.memory_space<vmem>>) attributes {dimension_semantics = [#tpu.dimension_semantics<parallel>], iteration_bounds = array<i64: 3>, scalar_prefetch = 0 : i64, scratch_operands = 0 : i64, tpu.core_type = #tpu.core_type<tc>, window_params = [{transform_indices = @transform_0, window_bounds = array<i64: 8, 4>}, {pipeline_mode = #tpu.pipeline_mode<synchronous>, transform_indices = @transform_1, window_bounds = array<i64: 4, 128>}, {pipeline_mode = #tpu.pipeline_mode<synchronous>, transform_indices = @transform_2, window_bounds = array<i64: 3, 128, 128>}, {pipeline_mode = #tpu.pipeline_mode<synchronous>, transform_indices = @transform_3, window_bounds = array<i64: 3, 1, 128>}, {pipeline_mode = #tpu.pipeline_mode<synchronous>, transform_indices = @transform_4, window_bounds = array<i64: 128, 3>}, {pipeline_mode = #tpu.pipeline_mode<synchronous>, transform_indices = @transform_5, window_bounds = array<i64: 1, 3>}, {transform_indices = @transform_6, window_bounds = array<i64: 8, 3>}, {transform_indices = @transform_7, window_bounds = array<i64: 8, 3>}, {transform_indices = @transform_8, window_bounds = array<i64: 4, 8, 128>}]} {
    %c0 = arith.constant 0 : index
    %c0_0 = arith.constant 0 : index
    %0 = vector.load %arg1[%c0, %c0_0] : memref<8x4xf32, #tpu.memory_space<vmem>>, vector<8x4xf32>
    %c0_1 = arith.constant 0 : index
    %c0_2 = arith.constant 0 : index
    %1 = vector.load %arg2[%c0_1, %c0_2] : memref<4x128xf32, #tpu.memory_space<vmem>>, vector<4x128xf32>
    %cst = arith.constant dense<0.000000e+00> : vector<8x128xf32>
    %2 = tpu.matmul %0, %1, %cst {dimension_numbers = #tpu.dot_dimension_numbers<[1], [0], [0], [1], [0, 0, 1, 1], [], []>, precision = #tpu.contract_precision<fp32>} : vector<8x4xf32>, vector<4x128xf32>, vector<8x128xf32> -> vector<8x128xf32>
    %c0_3 = arith.constant 0 : index
    %c0_4 = arith.constant 0 : index
    %c0_5 = arith.constant 0 : index
    %3 = vector.load %arg9[%c0_3, %c0_4, %c0_5] : memref<4x8x128xf32, #tpu.memory_space<vmem>>, vector<1x8x128xf32>
    %4 = vector.shape_cast %3 : vector<1x8x128xf32> to vector<8x128xf32>
    %5 = vector.shape_cast %2 : vector<8x128xf32> to vector<1x8x128xf32>
    tpu.vector_store %arg9[%c0_3, %c0_4, %c0_5], %5 {strides = array<i32>} : memref<4x8x128xf32, #tpu.memory_space<vmem>>, vector<1x8x128xf32>,
    %c0_6 = arith.constant 0 : index
    %c0_7 = arith.constant 0 : index
    %c0_8 = arith.constant 0 : index
    %6 = vector.load %arg3[%c0_6, %c0_7, %c0_8] : memref<3x128x128xf32, #tpu.memory_space<vmem>>, vector<1x128x128xf32>
    %7 = vector.shape_cast %6 : vector<1x128x128xf32> to vector<128x128xf32>
    %cst_9 = arith.constant dense<0.000000e+00> : vector<8x128xf32>
    %8 = tpu.matmul %2, %7, %cst_9 {dimension_numbers = #tpu.dot_dimension_numbers<[1], [0], [0], [1], [0, 0, 1, 1], [], []>, precision = #tpu.contract_precision<fp32>} : vector<8x128xf32>, vector<128x128xf32>, vector<8x128xf32> -> vector<8x128xf32>
    %c0_10 = arith.constant 0 : index
    %c0_11 = arith.constant 0 : index
    %c0_12 = arith.constant 0 : index
    %9 = vector.load %arg4[%c0_10, %c0_11, %c0_12] : memref<3x1x128xf32, #tpu.memory_space<vmem>>, vector<1x1x128xf32>
    %10 = vector.shape_cast %9 : vector<1x1x128xf32> to vector<1x128xf32>
    %11 = vector.broadcast %10 : vector<1x128xf32> to vector<8x128xf32>
    %12 = arith.addf %8, %11 : vector<8x128xf32>
    %13 = math.tanh %12 : vector<8x128xf32>
    %c1 = arith.constant 1 : index
    %c0_13 = arith.constant 0 : index
    %c0_14 = arith.constant 0 : index
    %14 = vector.load %arg9[%c1, %c0_13, %c0_14] : memref<4x8x128xf32, #tpu.memory_space<vmem>>, vector<1x8x128xf32>
    %15 = vector.shape_cast %14 : vector<1x8x128xf32> to vector<8x128xf32>
    %16 = vector.shape_cast %13 : vector<8x128xf32> to vector<1x8x128xf32>
    tpu.vector_store %arg9[%c1, %c0_13, %c0_14], %16 {strides = array<i32>} : memref<4x8x128xf32, #tpu.memory_space<vmem>>, vector<1x8x128xf32>,
    %c1_15 = arith.constant 1 : index
    %c0_16 = arith.constant 0 : index
    %c0_17 = arith.constant 0 : index
    %17 = vector.load %arg3[%c1_15, %c0_16, %c0_17] : memref<3x128x128xf32, #tpu.memory_space<vmem>>, vector<1x128x128xf32>
    %18 = vector.shape_cast %17 : vector<1x128x128xf32> to vector<128x128xf32>
    %cst_18 = arith.constant dense<0.000000e+00> : vector<8x128xf32>
    %19 = tpu.matmul %13, %18, %cst_18 {dimension_numbers = #tpu.dot_dimension_numbers<[1], [0], [0], [1], [0, 0, 1, 1], [], []>, precision = #tpu.contract_precision<fp32>} : vector<8x128xf32>, vector<128x128xf32>, vector<8x128xf32> -> vector<8x128xf32>
    %c1_19 = arith.constant 1 : index
    %c0_20 = arith.constant 0 : index
    %c0_21 = arith.constant 0 : index
    %20 = vector.load %arg4[%c1_19, %c0_20, %c0_21] : memref<3x1x128xf32, #tpu.memory_space<vmem>>, vector<1x1x128xf32>
    %21 = vector.shape_cast %20 : vector<1x1x128xf32> to vector<1x128xf32>
    %22 = vector.broadcast %21 : vector<1x128xf32> to vector<8x128xf32>
    %23 = arith.addf %19, %22 : vector<8x128xf32>
    %24 = math.tanh %23 : vector<8x128xf32>
    %c2 = arith.constant 2 : index
    %c0_22 = arith.constant 0 : index
    %c0_23 = arith.constant 0 : index
    %25 = vector.load %arg9[%c2, %c0_22, %c0_23] : memref<4x8x128xf32, #tpu.memory_space<vmem>>, vector<1x8x128xf32>
    %26 = vector.shape_cast %25 : vector<1x8x128xf32> to vector<8x128xf32>
    %27 = vector.shape_cast %24 : vector<8x128xf32> to vector<1x8x128xf32>
    tpu.vector_store %arg9[%c2, %c0_22, %c0_23], %27 {strides = array<i32>} : memref<4x8x128xf32, #tpu.memory_space<vmem>>, vector<1x8x128xf32>,
    %c2_24 = arith.constant 2 : index
    %c0_25 = arith.constant 0 : index
    %c0_26 = arith.constant 0 : index
    %28 = vector.load %arg3[%c2_24, %c0_25, %c0_26] : memref<3x128x128xf32, #tpu.memory_space<vmem>>, vector<1x128x128xf32>
    %29 = vector.shape_cast %28 : vector<1x128x128xf32> to vector<128x128xf32>
    %cst_27 = arith.constant dense<0.000000e+00> : vector<8x128xf32>
    %30 = tpu.matmul %24, %29, %cst_27 {dimension_numbers = #tpu.dot_dimension_numbers<[1], [0], [0], [1], [0, 0, 1, 1], [], []>, precision = #tpu.contract_precision<fp32>} : vector<8x128xf32>, vector<128x128xf32>, vector<8x128xf32> -> vector<8x128xf32>
    %c2_28 = arith.constant 2 : index
    %c0_29 = arith.constant 0 : index
    %c0_30 = arith.constant 0 : index
    %31 = vector.load %arg4[%c2_28, %c0_29, %c0_30] : memref<3x1x128xf32, #tpu.memory_space<vmem>>, vector<1x1x128xf32>
    %32 = vector.shape_cast %31 : vector<1x1x128xf32> to vector<1x128xf32>
    %33 = vector.broadcast %32 : vector<1x128xf32> to vector<8x128xf32>
    %34 = arith.addf %30, %33 : vector<8x128xf32>
    %35 = math.tanh %34 : vector<8x128xf32>
    %c3 = arith.constant 3 : index
    %c0_31 = arith.constant 0 : index
    %c0_32 = arith.constant 0 : index
    %36 = vector.load %arg9[%c3, %c0_31, %c0_32] : memref<4x8x128xf32, #tpu.memory_space<vmem>>, vector<1x8x128xf32>
    %37 = vector.shape_cast %36 : vector<1x8x128xf32> to vector<8x128xf32>
    %38 = vector.shape_cast %35 : vector<8x128xf32> to vector<1x8x128xf32>
    tpu.vector_store %arg9[%c3, %c0_31, %c0_32], %38 {strides = array<i32>} : memref<4x8x128xf32, #tpu.memory_space<vmem>>, vector<1x8x128xf32>,
    %c0_33 = arith.constant 0 : index
    %c0_34 = arith.constant 0 : index
    %39 = vector.load %arg5[%c0_33, %c0_34] : memref<128x3xf32, #tpu.memory_space<vmem>>, vector<128x3xf32>
    %cst_35 = arith.constant dense<0.000000e+00> : vector<8x3xf32>
    %40 = tpu.matmul %35, %39, %cst_35 {dimension_numbers = #tpu.dot_dimension_numbers<[1], [0], [0], [1], [0, 0, 1, 1], [], []>, precision = #tpu.contract_precision<fp32>} : vector<8x128xf32>, vector<128x3xf32>, vector<8x3xf32> -> vector<8x3xf32>
    %c0_36 = arith.constant 0 : index
    %c0_37 = arith.constant 0 : index
    %41 = vector.load %arg6[%c0_36, %c0_37] : memref<1x3xf32, #tpu.memory_space<vmem>>, vector<1x3xf32>
    %42 = vector.broadcast %41 : vector<1x3xf32> to vector<8x3xf32>
    %43 = arith.addf %40, %42 : vector<8x3xf32>
    %c0_38 = arith.constant 0 : index
    %c0_39 = arith.constant 0 : index
    %44 = vector.load %arg8[%c0_38, %c0_39] : memref<8x3xf32, #tpu.memory_space<vmem>>, vector<8x3xf32>
    tpu.vector_store %arg8[%c0_38, %c0_39], %43 {strides = array<i32>} : memref<8x3xf32, #tpu.memory_space<vmem>>, vector<8x3xf32>,
    %cst_40 = arith.constant dense<0xFF800000> : vector<8xf32>
    %45 = vector.multi_reduction <maximumf>, %43, %cst_40 [1] : vector<8x3xf32> to vector<8xf32>
    %46 = vector.shape_cast %45 : vector<8xf32> to vector<8x1xf32>
    %47 = vector.broadcast %46 : vector<8x1xf32> to vector<8x3xf32>
    %48 = arith.subf %43, %47 : vector<8x3xf32>
    %49 = math.exp %48 : vector<8x3xf32>
    %cst_41 = arith.constant dense<0.000000e+00> : vector<8xf32>
    %50 = vector.multi_reduction <add>, %49, %cst_41 [1] : vector<8x3xf32> to vector<8xf32>
    %51 = vector.shape_cast %50 : vector<8xf32> to vector<8x1xf32>
    %52 = tpu.reciprocal %51 {approx = true} : vector<8x1xf32> -> vector<8x1xf32>
    %53 = vector.broadcast %52 : vector<8x1xf32> to vector<8x3xf32>
    %54 = arith.mulf %49, %53 : vector<8x3xf32>
    %c0_42 = arith.constant 0 : index
    %c0_43 = arith.constant 0 : index
    %55 = vector.load %arg7[%c0_42, %c0_43] : memref<8x3xf32, #tpu.memory_space<vmem>>, vector<8x3xf32>
    tpu.vector_store %arg7[%c0_42, %c0_43], %54 {strides = array<i32>} : memref<8x3xf32, #tpu.memory_space<vmem>>, vector<8x3xf32>,
    return
  }
  func.func @transform_0(%arg0: i32) -> (i32, i32) {
    %c0_i32 = arith.constant 0 : i32
    %c0_i32_0 = arith.constant 0 : i32
    return %arg0, %c0_i32 : i32, i32
  }
  func.func @transform_1(%arg0: i32) -> (i32, i32) {
    %c0_i32 = arith.constant 0 : i32
    %c0_i32_0 = arith.constant 0 : i32
    %c0_i32_1 = arith.constant 0 : i32
    return %c0_i32, %c0_i32_0 : i32, i32
  }
  func.func @transform_2(%arg0: i32) -> (i32, i32, i32) {
    %c0_i32 = arith.constant 0 : i32
    %c0_i32_0 = arith.constant 0 : i32
    %c0_i32_1 = arith.constant 0 : i32
    %c0_i32_2 = arith.constant 0 : i32
    return %c0_i32, %c0_i32_0, %c0_i32_1 : i32, i32, i32
  }
  func.func @transform_3(%arg0: i32) -> (i32, i32, i32) {
    %c0_i32 = arith.constant 0 : i32
    %c0_i32_0 = arith.constant 0 : i32
    %c0_i32_1 = arith.constant 0 : i32
    %c0_i32_2 = arith.constant 0 : i32
    return %c0_i32, %c0_i32_0, %c0_i32_1 : i32, i32, i32
  }
  func.func @transform_4(%arg0: i32) -> (i32, i32) {
    %c0_i32 = arith.constant 0 : i32
    %c0_i32_0 = arith.constant 0 : i32
    %c0_i32_1 = arith.constant 0 : i32
    return %c0_i32, %c0_i32_0 : i32, i32
  }
  func.func @transform_5(%arg0: i32) -> (i32, i32) {
    %c0_i32 = arith.constant 0 : i32
    %c0_i32_0 = arith.constant 0 : i32
    %c0_i32_1 = arith.constant 0 : i32
    return %c0_i32, %c0_i32_0 : i32, i32
  }
  func.func @transform_6(%arg0: i32) -> (i32, i32) {
    %c0_i32 = arith.constant 0 : i32
    %c0_i32_0 = arith.constant 0 : i32
    return %arg0, %c0_i32 : i32, i32
  }
  func.func @transform_7(%arg0: i32) -> (i32, i32) {
    %c0_i32 = arith.constant 0 : i32
    %c0_i32_0 = arith.constant 0 : i32
    return %arg0, %c0_i32 : i32, i32
  }
  func.func @transform_8(%arg0: i32) -> (i32, i32, i32) {
    %c0_i32 = arith.constant 0 : i32
    %c0_i32_0 = arith.constant 0 : i32
    %c0_i32_1 = arith.constant 0 : i32
    return %c0_i32, %arg0, %c0_i32_0 : i32, i32, i32
  }
}

module attributes {stable_mosaic.version = 11 : i64} {
  func.func @_standardnet_kernel(%arg0: i32, %arg1: memref<8x4xf32, #tpu.memory_space<vmem>>, %arg2: memref<4x128xf32, #tpu.memory_space<vmem>>, %arg3: memref<3x128x128xf32, #tpu.memory_space<vmem>>, %arg4: memref<3x1x128xf32, #tpu.memory_space<vmem>>, %arg5: memref<128x3xf32, #tpu.memory_space<vmem>>, %arg6: memref<1x3xf32, #tpu.memory_space<vmem>>, %arg7: memref<8x3xf32, #tpu.memory_space<vmem>>, %arg8: memref<8x3xf32, #tpu.memory_space<vmem>>, %arg9: memref<4x8x128xf32, #tpu.memory_space<vmem>>) attributes {dimension_semantics = [#tpu.dimension_semantics<parallel>], iteration_bounds = array<i64: 3>, scalar_prefetch = 0 : i64, scratch_operands = 0 : i64, tpu.core_type = #tpu.core_type<tc>, window_params = [{transform_indices = @transform_0, window_bounds = array<i64: 8, 4>}, {pipeline_mode = #tpu.pipeline_mode<synchronous>, transform_indices = @transform_1, window_bounds = array<i64: 4, 128>}, {pipeline_mode = #tpu.pipeline_mode<synchronous>, transform_indices = @transform_2, window_bounds = array<i64: 3, 128, 128>}, {pipeline_mode = #tpu.pipeline_mode<synchronous>, transform_indices = @transform_3, window_bounds = array<i64: 3, 1, 128>}, {pipeline_mode = #tpu.pipeline_mode<synchronous>, transform_indices = @transform_4, window_bounds = array<i64: 128, 3>}, {pipeline_mode = #tpu.pipeline_mode<synchronous>, transform_indices = @transform_5, window_bounds = array<i64: 1, 3>}, {transform_indices = @transform_6, window_bounds = array<i64: 8, 3>}, {transform_indices = @transform_7, window_bounds = array<i64: 8, 3>}, {transform_indices = @transform_8, window_bounds = array<i64: 4, 8, 128>}]} {
    %c0 = arith.constant 0 : index
    %c0_0 = arith.constant 0 : index
    %0 = vector.load %arg1[%c0, %c0_0] : memref<8x4xf32, #tpu.memory_space<vmem>>, vector<8x4xf32>
    %c0_1 = arith.constant 0 : index
    %c0_2 = arith.constant 0 : index
    %1 = vector.load %arg2[%c0_1, %c0_2] : memref<4x128xf32, #tpu.memory_space<vmem>>, vector<4x128xf32>
    %cst = arith.constant dense<0.000000e+00> : vector<8x128xf32>
    %2 = tpu.matmul %0, %1, %cst {dimension_numbers = #tpu.dot_dimension_numbers<[1], [0], [0], [1], [0, 0, 1, 1], [], []>, precision = #tpu.contract_precision<fp32>} : vector<8x4xf32>, vector<4x128xf32>, vector<8x128xf32> -> vector<8x128xf32>
    %c0_3 = arith.constant 0 : index
    %c0_4 = arith.constant 0 : index
    %c0_5 = arith.constant 0 : index
    %3 = vector.load %arg9[%c0_3, %c0_4, %c0_5] : memref<4x8x128xf32, #tpu.memory_space<vmem>>, vector<1x8x128xf32>
    %4 = vector.shape_cast %3 : vector<1x8x128xf32> to vector<8x128xf32>
    %5 = vector.shape_cast %2 : vector<8x128xf32> to vector<1x8x128xf32>
    tpu.vector_store %arg9[%c0_3, %c0_4, %c0_5], %5 {strides = array<i32>} : memref<4x8x128xf32, #tpu.memory_space<vmem>>, vector<1x8x128xf32>,
    %c0_6 = arith.constant 0 : index
    %c0_7 = arith.constant 0 : index
    %c0_8 = arith.constant 0 : index
    %6 = vector.load %arg3[%c0_6, %c0_7, %c0_8] : memref<3x128x128xf32, #tpu.memory_space<vmem>>, vector<1x128x128xf32>
    %7 = vector.shape_cast %6 : vector<1x128x128xf32> to vector<128x128xf32>
    %cst_9 = arith.constant dense<0.000000e+00> : vector<8x128xf32>
    %8 = tpu.matmul %2, %7, %cst_9 {dimension_numbers = #tpu.dot_dimension_numbers<[1], [0], [0], [1], [0, 0, 1, 1], [], []>, precision = #tpu.contract_precision<fp32>} : vector<8x128xf32>, vector<128x128xf32>, vector<8x128xf32> -> vector<8x128xf32>
    %c0_10 = arith.constant 0 : index
    %c0_11 = arith.constant 0 : index
    %c0_12 = arith.constant 0 : index
    %9 = vector.load %arg4[%c0_10, %c0_11, %c0_12] : memref<3x1x128xf32, #tpu.memory_space<vmem>>, vector<1x1x128xf32>
    %10 = vector.shape_cast %9 : vector<1x1x128xf32> to vector<1x128xf32>
    %11 = vector.broadcast %10 : vector<1x128xf32> to vector<8x128xf32>
    %12 = arith.addf %8, %11 : vector<8x128xf32>
    %13 = math.tanh %12 : vector<8x128xf32>
    %c1 = arith.constant 1 : index
    %c0_13 = arith.constant 0 : index
    %c0_14 = arith.constant 0 : index
    %14 = vector.load %arg9[%c1, %c0_13, %c0_14] : memref<4x8x128xf32, #tpu.memory_space<vmem>>, vector<1x8x128xf32>
    %15 = vector.shape_cast %14 : vector<1x8x128xf32> to vector<8x128xf32>
    %16 = vector.shape_cast %13 : vector<8x128xf32> to vector<1x8x128xf32>
    tpu.vector_store %arg9[%c1, %c0_13, %c0_14], %16 {strides = array<i32>} : memref<4x8x128xf32, #tpu.memory_space<vmem>>, vector<1x8x128xf32>,
    %c1_15 = arith.constant 1 : index
    %c0_16 = arith.constant 0 : index
    %c0_17 = arith.constant 0 : index
    %17 = vector.load %arg3[%c1_15, %c0_16, %c0_17] : memref<3x128x128xf32, #tpu.memory_space<vmem>>, vector<1x128x128xf32>
    %18 = vector.shape_cast %17 : vector<1x128x128xf32> to vector<128x128xf32>
    %cst_18 = arith.constant dense<0.000000e+00> : vector<8x128xf32>
    %19 = tpu.matmul %13, %18, %cst_18 {dimension_numbers = #tpu.dot_dimension_numbers<[1], [0], [0], [1], [0, 0, 1, 1], [], []>, precision = #tpu.contract_precision<fp32>} : vector<8x128xf32>, vector<128x128xf32>, vector<8x128xf32> -> vector<8x128xf32>
    %c1_19 = arith.constant 1 : index
    %c0_20 = arith.constant 0 : index
    %c0_21 = arith.constant 0 : index
    %20 = vector.load %arg4[%c1_19, %c0_20, %c0_21] : memref<3x1x128xf32, #tpu.memory_space<vmem>>, vector<1x1x128xf32>
    %21 = vector.shape_cast %20 : vector<1x1x128xf32> to vector<1x128xf32>
    %22 = vector.broadcast %21 : vector<1x128xf32> to vector<8x128xf32>
    %23 = arith.addf %19, %22 : vector<8x128xf32>
    %24 = math.tanh %23 : vector<8x128xf32>
    %c2 = arith.constant 2 : index
    %c0_22 = arith.constant 0 : index
    %c0_23 = arith.constant 0 : index
    %25 = vector.load %arg9[%c2, %c0_22, %c0_23] : memref<4x8x128xf32, #tpu.memory_space<vmem>>, vector<1x8x128xf32>
    %26 = vector.shape_cast %25 : vector<1x8x128xf32> to vector<8x128xf32>
    %27 = vector.shape_cast %24 : vector<8x128xf32> to vector<1x8x128xf32>
    tpu.vector_store %arg9[%c2, %c0_22, %c0_23], %27 {strides = array<i32>} : memref<4x8x128xf32, #tpu.memory_space<vmem>>, vector<1x8x128xf32>,
    %c2_24 = arith.constant 2 : index
    %c0_25 = arith.constant 0 : index
    %c0_26 = arith.constant 0 : index
    %28 = vector.load %arg3[%c2_24, %c0_25, %c0_26] : memref<3x128x128xf32, #tpu.memory_space<vmem>>, vector<1x128x128xf32>
    %29 = vector.shape_cast %28 : vector<1x128x128xf32> to vector<128x128xf32>
    %cst_27 = arith.constant dense<0.000000e+00> : vector<8x128xf32>
    %30 = tpu.matmul %24, %29, %cst_27 {dimension_numbers = #tpu.dot_dimension_numbers<[1], [0], [0], [1], [0, 0, 1, 1], [], []>, precision = #tpu.contract_precision<fp32>} : vector<8x128xf32>, vector<128x128xf32>, vector<8x128xf32> -> vector<8x128xf32>
    %c2_28 = arith.constant 2 : index
    %c0_29 = arith.constant 0 : index
    %c0_30 = arith.constant 0 : index
    %31 = vector.load %arg4[%c2_28, %c0_29, %c0_30] : memref<3x1x128xf32, #tpu.memory_space<vmem>>, vector<1x1x128xf32>
    %32 = vector.shape_cast %31 : vector<1x1x128xf32> to vector<1x128xf32>
    %33 = vector.broadcast %32 : vector<1x128xf32> to vector<8x128xf32>
    %34 = arith.addf %30, %33 : vector<8x128xf32>
    %35 = math.tanh %34 : vector<8x128xf32>
    %c3 = arith.constant 3 : index
    %c0_31 = arith.constant 0 : index
    %c0_32 = arith.constant 0 : index
    %36 = vector.load %arg9[%c3, %c0_31, %c0_32] : memref<4x8x128xf32, #tpu.memory_space<vmem>>, vector<1x8x128xf32>
    %37 = vector.shape_cast %36 : vector<1x8x128xf32> to vector<8x128xf32>
    %38 = vector.shape_cast %35 : vector<8x128xf32> to vector<1x8x128xf32>
    tpu.vector_store %arg9[%c3, %c0_31, %c0_32], %38 {strides = array<i32>} : memref<4x8x128xf32, #tpu.memory_space<vmem>>, vector<1x8x128xf32>,
    %c0_33 = arith.constant 0 : index
    %c0_34 = arith.constant 0 : index
    %39 = vector.load %arg5[%c0_33, %c0_34] : memref<128x3xf32, #tpu.memory_space<vmem>>, vector<128x3xf32>
    %cst_35 = arith.constant dense<0.000000e+00> : vector<8x3xf32>
    %40 = tpu.matmul %35, %39, %cst_35 {dimension_numbers = #tpu.dot_dimension_numbers<[1], [0], [0], [1], [0, 0, 1, 1], [], []>, precision = #tpu.contract_precision<fp32>} : vector<8x128xf32>, vector<128x3xf32>, vector<8x3xf32> -> vector<8x3xf32>
    %c0_36 = arith.constant 0 : index
    %c0_37 = arith.constant 0 : index
    %41 = vector.load %arg6[%c0_36, %c0_37] : memref<1x3xf32, #tpu.memory_space<vmem>>, vector<1x3xf32>
    %42 = vector.broadcast %41 : vector<1x3xf32> to vector<8x3xf32>
    %43 = arith.addf %40, %42 : vector<8x3xf32>
    %c0_38 = arith.constant 0 : index
    %c0_39 = arith.constant 0 : index
    %44 = vector.load %arg8[%c0_38, %c0_39] : memref<8x3xf32, #tpu.memory_space<vmem>>, vector<8x3xf32>
    tpu.vector_store %arg8[%c0_38, %c0_39], %43 {strides = array<i32>} : memref<8x3xf32, #tpu.memory_space<vmem>>, vector<8x3xf32>,
    %cst_40 = arith.constant dense<0xFF800000> : vector<8xf32>
    %45 = vector.multi_reduction <maximumf>, %43, %cst_40 [1] : vector<8x3xf32> to vector<8xf32>
    %46 = vector.shape_cast %45 : vector<8xf32> to vector<8x1xf32>
    %47 = vector.broadcast %46 : vector<8x1xf32> to vector<8x3xf32>
    %48 = arith.subf %43, %47 : vector<8x3xf32>
    %49 = math.exp %48 : vector<8x3xf32>
    %cst_41 = arith.constant dense<0.000000e+00> : vector<8xf32>
    %50 = vector.multi_reduction <add>, %49, %cst_41 [1] : vector<8x3xf32> to vector<8xf32>
    %51 = vector.shape_cast %50 : vector<8xf32> to vector<8x1xf32>
    %52 = tpu.reciprocal %51 {approx = true} : vector<8x1xf32> -> vector<8x1xf32>
    %53 = vector.broadcast %52 : vector<8x1xf32> to vector<8x3xf32>
    %54 = arith.mulf %49, %53 : vector<8x3xf32>
    %c0_42 = arith.constant 0 : index
    %c0_43 = arith.constant 0 : index
    %55 = vector.load %arg7[%c0_42, %c0_43] : memref<8x3xf32, #tpu.memory_space<vmem>>, vector<8x3xf32>
    tpu.vector_store %arg7[%c0_42, %c0_43], %54 {strides = array<i32>} : memref<8x3xf32, #tpu.memory_space<vmem>>, vector<8x3xf32>,
    return
  }
  func.func @transform_0(%arg0: i32) -> (i32, i32) {
    %c0_i32 = arith.constant 0 : i32
    %c0_i32_0 = arith.constant 0 : i32
    return %arg0, %c0_i32 : i32, i32
  }
  func.func @transform_1(%arg0: i32) -> (i32, i32) {
    %c0_i32 = arith.constant 0 : i32
    %c0_i32_0 = arith.constant 0 : i32
    %c0_i32_1 = arith.constant 0 : i32
    return %c0_i32, %c0_i32_0 : i32, i32
  }
  func.func @transform_2(%arg0: i32) -> (i32, i32, i32) {
    %c0_i32 = arith.constant 0 : i32
    %c0_i32_0 = arith.constant 0 : i32
    %c0_i32_1 = arith.constant 0 : i32
    %c0_i32_2 = arith.constant 0 : i32
    return %c0_i32, %c0_i32_0, %c0_i32_1 : i32, i32, i32
  }
  func.func @transform_3(%arg0: i32) -> (i32, i32, i32) {
    %c0_i32 = arith.constant 0 : i32
    %c0_i32_0 = arith.constant 0 : i32
    %c0_i32_1 = arith.constant 0 : i32
    %c0_i32_2 = arith.constant 0 : i32
    return %c0_i32, %c0_i32_0, %c0_i32_1 : i32, i32, i32
  }
  func.func @transform_4(%arg0: i32) -> (i32, i32) {
    %c0_i32 = arith.constant 0 : i32
    %c0_i32_0 = arith.constant 0 : i32
    %c0_i32_1 = arith.constant 0 : i32
    return %c0_i32, %c0_i32_0 : i32, i32
  }
  func.func @transform_5(%arg0: i32) -> (i32, i32) {
    %c0_i32 = arith.constant 0 : i32
    %c0_i32_0 = arith.constant 0 : i32
    %c0_i32_1 = arith.constant 0 : i32
    return %c0_i32, %c0_i32_0 : i32, i32
  }
  func.func @transform_6(%arg0: i32) -> (i32, i32) {
    %c0_i32 = arith.constant 0 : i32
    %c0_i32_0 = arith.constant 0 : i32
    return %arg0, %c0_i32 : i32, i32
  }
  func.func @transform_7(%arg0: i32) -> (i32, i32) {
    %c0_i32 = arith.constant 0 : i32
    %c0_i32_0 = arith.constant 0 : i32
    return %arg0, %c0_i32 : i32, i32
  }
  func.func @transform_8(%arg0: i32) -> (i32, i32, i32) {
    %c0_i32 = arith.constant 0 : i32
    %c0_i32_0 = arith.constant 0 : i32
    %c0_i32_1 = arith.constant 0 : i32
    return %c0_i32, %arg0, %c0_i32_0 : i32, i32, i32
  }
}

</mosaic_0001>

<bundles_post_ra>
// kernel: tpu_custom_call.1
= control target key start
LH: loop header
LB: loop body
LE: loop exit
PB: predicated region body
PF: predicated region fallthrough
CT: control target
= control target key end

     0   :  { %14 = vsyncpa [#allocation3], 0  ;;  %s5118_s27 = smov 0   ;;  %s5120_s28 = smov 0   ;;  %s6735_s0 = inlined_call_operand.vmem [shape: f32[20,4], index: 0, kind: input, shape index: {}]   ;;  %s6736_s1 = inlined_call_operand.vmem [shape: f32[4,128], index: 1, kind: input, shape index: {}]   ;;  %s6737_s2 = inlined_call_operand.hbm [shape: f32[3,128,128], index: 2, kind: input, shape index: {}]   ;;  %s6738_s3 = inlined_call_operand.vmem [shape: f32[3,1,128], index: 3, kind: input, shape index: {}]   ;;  %s6739_s4 = inlined_call_operand.vmem [shape: f32[128,3], index: 4, kind: input, shape index: {}]   ;;  %s6740_s5 = inlined_call_operand.vmem [shape: f32[1,3], index: 5, kind: input, shape index: {}]   ;;  %s6741_s6 = inlined_call_operand.vmem [shape: f32[20,3], index: 6, kind: output, shape index: {0}]   ;;  %s6742_s7 = inlined_call_operand.vmem [shape: f32[20,3], index: 7, kind: output, shape index: {1}]   ;;  %s6743_s8 = inlined_call_operand.vmem [shape: f32[4,20,128], index: 8, kind: output, shape index: {2}]  }
   0x1   :  { %s5122_s29 = smov 0  }
   0x2 LB: > { %s5131_s30 = sadd.s32 4294967295, %s5066_s29   ;;  %s5133_s9 = sadd.s32 1, %s5066_s29   ;;  %s5066_s29 = sphi %s5122_s29, %s6770_s29   ;;  %s5062_s28 = sphi %s5120_s28, %s6769_s28   ;;  %s5058_s27 = sphi %s5118_s27, %s6768_s27  }
   0x3   : > { %s207_s10 = ssub.s32 %s5066_s29, %s5133_s9  ;;  %s210_s11 = sadd.s32 1, %s5062_s28 }
   0x4   : > { %p208_p0 = scmp.eq.s32.totalorder %s207_s10, 0  ;;  %p220_p1 = scmp.ne.s32.totalorder %s5062_s28, %s5058_s27 }
   0x5   : > { %p221_p2 = scmp.eq.s32.totalorder %s5131_s30, 2  ;;  %p3653_p3 = scmp.ge.s32.totalorder %s5066_s29, 1 }
   0x6   : > { %s5141_s12 = scalar_select %p208_p0, %s5062_s28, %s210_s11  }
   0x7   : > { %p5143_p4 = por %p221_p2, %p220_p1  ;;  %p234_p5 = scmp.lt.s32.totalorder %s5066_s29, 4 }
   0x8   : > { %p4973_p6 = scmp.eq.s32.totalorder %s5131_s30, 0  ;;  %s5068_s15 = smov [#allocation2]  }
   0x9   : > { %p5148_p7 = pnand %p3653_p3, %p234_p5  ;;  %s249_s16 = sshll.u32 %s5068_s15, 4  ;;  %s250_s16 = int_to_ptr.vmem [resolvable:$true] %s249_s16 }
   0xa   : > { %s5025_s17 = scalar_lea.vmem %s250_s16, 6144  ;;  %p5033_p0 = scmp.lt.s32.totalorder %s250_s16, %s250_s16 }
   0xb   : > { %p4969_p8 = pneg %p5148_p7  ;;  %p5026_p11 = scmp.ne.s32.totalorder %s250_s16, %s5025_s17 }
   0xc   : > { %p5034_p1 = scmp.lt.s32.totalorder %s5025_s17, %s5025_s17 }
   0xd   : > { %p4970_p9 = pnand %p4973_p6, %p4969_p8 }
   0xe   : > { %p5035_p2 = por %p5034_p1, %p5033_p0 }
   0xf   : > { %p5016_p10 = pneg %p4970_p9 }
  0x11   : > { %p5028_p12 = pnand %p5026_p11, %p5016_p10 }
  0x13   : > { %p5029_p13 = pneg %p5028_p12 }
  0x15   : > { %p5036_p3 = pnand %p5035_p2, %p5029_p13 }
  0x17   : > { %5039 = shalt.err (!%p5036_p3)
}
  0x18   : > { %s5069_s18 = smov 128   ;;  %s5070_s19 = smov 8  }
  0x19   : > { %4972 = dma.hbm_to_vmem [thread:$0]  (!%p4970_p9), %s6737_s2, 6144, %s250_s16, [#allocation3], %s5069_s18, %s5069_s18, %s5070_s19  }
  0x1a   : > { %281 = sbr.rel (%p5148_p7) target bundleno = 1702 (0x6a6), region = 44 }
  0x1f   : > { %5053 = dma.done.wait (%p4973_p6), [#allocation3], 6144  }
  0x20   : > { %5055 = vsyncadd (%p4973_p6), [#allocation3], 4294961152  ;;  %p321_p5 = scmp.lt.s32.totalorder %s5131_s30, 2  ;;  %v5071_v0 = vmov 0.0   ;;  %vm5072_vm0 = vmmov 0   ;;  %vm339_vm1 = vcmask 1043456  }
  0x21   : > { %4095 = vmatprep.subr.mxu0 %v5071_v0  ;;  %4097 = vmatprep.mubr.msk.f32.mxu0 %vm5072_vm0, %v5071_v0  ;;  %vm335_vm2 = vcmask 31744   ;;  %v334_v1 = vld [vmem:[%s6736_s1] sm:$0xf]  ;;  %v805_v3 = vld [vmem:[#allocation2 + $0x78] sm:$0xff]  ;;  %v804_v6 = vld [vmem:[#allocation2 + $0x70] sm:$0xff]  ;;  %s318_s11 = sand.u32 1, %s5058_s27  }
  0x22   : > { %4100 = vmatprep.subr.mxu1 %v5071_v0  ;;  %s322_s22 = scalar_select %p321_p5, %s5131_s30, 2  ;;  %4102 = vmatprep.mubr.msk.f32.mxu1 %vm5072_vm0, %v5071_v0  ;;  %v341_v4 = vsel %vm339_vm1, %v334_v1, 0  ;;  %v5184_v9 = vand.u32 4294901760, %v805_v3  ;;  %v803_v10 = vld [vmem:[#allocation2 + $0x68] sm:$0xff]  ;;  %v5187_v13 = vand.u32 4294901760, %v804_v6  ;;  %v802_v14 = vld [vmem:[#allocation2 + $0x60] sm:$0xff] }
  0x23   : > { %v374_v7 = vand.u32 4294901760, %v341_v4  ;;  %v5193_v18 = vand.u32 4294901760, %v803_v10  ;;  %v801_v19 = vld [vmem:[#allocation2 + $0x58] sm:$0xff]  ;;  %v5198_v23 = vand.u32 4294901760, %v802_v14  ;;  %v800_v25 = vld [vmem:[#allocation2 + $0x50] sm:$0xff]  ;;  %v799_v30 = vld [vmem:[#allocation2 + $0x48] sm:$0xff] }
  0x24   : > { %s5173_s23 = sshll.u32 %s322_s22, 3  ;;  %v5191_v17 = vsub.f32 %v805_v3, %v5184_v9  ;;  %v5196_v22 = vsub.f32 %v804_v6, %v5187_v13  ;;  %v5200_v24 = vand.u32 4294901760, %v801_v19  ;;  %v5210_v33 = vand.u32 4294901760, %v800_v25  ;;  %v798_v35 = vld [vmem:[#allocation2 + $0x40] sm:$0xff]  ;;  %v797_v39 = vld [vmem:[#allocation2 + $0x38] sm:$0xff]  ;;  %v796_v6 = vld [vmem:[#allocation2 + $0x30] sm:$0xff] }
  0x25   : > { %s324_s26 = scalar_lea.vmem %s6735_s0, %s5173_s23  ;;  %4096 = vmatpush3.msra.mxu0 %v374_v7  ;;  %v451_v12 = vsub.f32 %v341_v4, %v374_v7  ;;  %v5204_v29 = vsub.f32 %v803_v10, %v5193_v18  ;;  %v5208_v32 = vsub.f32 %v802_v14, %v5198_v23  ;;  %v5223_v38 = vand.u32 4294901760, %v799_v30  ;;  %s3658_s14 = sshll.u32 %s318_s11, 5 }
  0x26   : > { %v333_v2 = vld [vmem:[%s324_s26] sm:$0xff]  ;;  %4105 = vmatprep.subr.mxu0 %v5071_v0  ;;  %v907_v28 = vand.u32 4294901760, %v5191_v17  ;;  %v914_v31 = vand.u32 4294901760, %v5196_v22  ;;  %v5214_v34 = vsub.f32 %v801_v19, %v5200_v24  ;;  %v5233_v42 = vsub.f32 %v800_v25, %v5210_v33  ;;  %v793_v19 = vld [vmem:[#allocation2 + $0x18] sm:$0xff]  ;;  %s5399_s15 = scalar_lea.vmem [#allocation4], %s3658_s14  ;;  %s332_s10 = scalar_lea.vmem %s6742_s7, %s5173_s23 }
  0x27   : > { %v337_v5 = vsel %vm335_vm2, %v333_v2, 0  ;;  %v452_v16 = vand.u32 4294901760, %v451_v12  ;;  %v921_v37 = vand.u32 4294901760, %v5204_v29  ;;  %v928_v41 = vand.u32 4294901760, %v5208_v32  ;;  %s328_s27 = scalar_lea.vmem %s6741_s6, %s5173_s23  ;;  %s3672_s16 = sshll.u32 (%p5143_p4), %s5131_s30, 3 }
  0x28   : > { %v5182_v8 = vand.u32 4294901760, %v337_v5  ;;  %v908_v36 = vsub.f32 %v5191_v17, %v907_v28  ;;  %v915_v40 = vsub.f32 %v5196_v22, %v914_v31  ;;  %v5235_v43 = vand.u32 4294901760, %v798_v35  ;;  %s3495_s19 = scalar_lea.vmem (%p5143_p4), %s6743_s8, %s3672_s16 }
  0x29   : > { %v453_v21 = vsub.f32 %v451_v12, %v452_v16  ;;  %v935_v44 = vand.u32 4294901760, %v5214_v34  ;;  %v922_v46 = vsub.f32 %v5204_v29, %v921_v37  ;;  %v5245_v47 = vsub.f32 %v799_v30, %v5223_v38 }
  0x2a   : > { %v410_v11 = vsub.f32 %v337_v5, %v5182_v8  ;;  %v909_v45 = vand.u32 4294901760, %v908_v36  ;;  %v5247_v48 = vand.u32 4294901760, %v797_v39  ;;  %v916_v49 = vand.u32 4294901760, %v915_v40 }
  0x2b   : > { %v454_v27 = vand.u32 4294901760, %v453_v21  ;;  %v929_v50 = vsub.f32 %v5208_v32, %v928_v41  ;;  %v942_v51 = vand.u32 4294901760, %v5233_v42  ;;  %v5258_v52 = vsub.f32 %v798_v35, %v5235_v43 }
  0x2c   : > { %v411_v15 = vand.u32 4294901760, %v410_v11  ;;  %v923_v53 = vand.u32 4294901760, %v922_v46  ;;  %v936_v54 = vsub.f32 %v5214_v34, %v935_v44  ;;  %v949_v55 = vand.u32 4294901760, %v5245_v47 }
  0x2d   : > { %4101 = vmatpush3.msra.mxu1 %v454_v27  ;;  %v5268_v56 = vsub.f32 %v797_v39, %v5247_v48  ;;  %v930_v57 = vand.u32 4294901760, %v929_v50  ;;  %v943_v58 = vsub.f32 %v5233_v42, %v942_v51  ;;  %v956_v59 = vand.u32 4294901760, %v5258_v52  ;;  %v792_v27 = vld [vmem:[#allocation2 + $0x10] sm:$0xff] }
  0x2e   : > { %v412_v20 = vsub.f32 %v410_v11, %v411_v15  ;;  %4103 = vmatmul.mubr.f32.vlgmr.msra.gmra.mxu1 %v5182_v8  ;;  %4110 = vmatprep.subr.mxu1 %v5071_v0  ;;  %v937_v60 = vand.u32 4294901760, %v936_v54  ;;  %v950_v61 = vsub.f32 %v5245_v47, %v949_v55  ;;  %v5350_v40 = vand.u32 4294901760, %v792_v27 }
  0x2f   : > { %4111 = vmatpush3.msra.mxu1 %v374_v7  ;;  %4112 = vmatprep.mubr.msk.f32.mxu1 %vm5072_vm0, %v5071_v0  ;;  %v963_v62 = vand.u32 4294901760, %v5268_v56  ;;  %v944_v63 = vand.u32 4294901760, %v943_v58  ;;  %v957_v1 = vsub.f32 %v5258_v52, %v956_v59  ;;  %vm3459_vm3 = vcmask 23552  }
  0x30   : > { %v413_v26 = vand.u32 4294901760, %v412_v20  ;;  %4120 = vmatprep.subr.mxu1 %v5071_v0  ;;  %v951_v2 = vand.u32 4294901760, %v950_v61  ;;  %v5361_v54 = vsub.f32 %v792_v27, %v5350_v40 }
  0x31   : > { %v964_v3 = vsub.f32 %v5268_v56, %v963_v62  ;;  %v958_v4 = vand.u32 4294901760, %v957_v1 }
  0x32   : > { %4098 = vmatmul.mubr.f32.vlgmr.msra.gmra.mxu0 %v413_v26  ;;  %4113 = vmatmul.mubr.f32.vlgmr.msra.gmra.mxu1 %v411_v15  ;;  %v5338_v26 = vand.u32 4294901760, %v793_v19  ;;  %v998_v1 = vand.u32 4294901760, %v5361_v54 }
  0x33   : > { %4106 = vmatpush3.msra.mxu0 %v451_v12  ;;  %4107 = vmatprep.mubr.msk.f32.mxu0 %vm5072_vm0, %v5071_v0  ;;  %v965_v5 = vand.u32 4294901760, %v964_v3  ;;  %v794_v12 = vld [vmem:[#allocation2 + $0x20] sm:$0xff] }
  0x34   : > { %4115 = vmatprep.subr.mxu0 %v5071_v0  ;;  %4121 = vmatpush3.msra.mxu1 %v374_v7  ;;  %v5314_v7 = vand.u32 4294901760, %v796_v6  ;;  %v5347_v39 = vsub.f32 %v793_v19, %v5338_v26 }
  0x35   : > { %4122 = vmatprep.mubr.msk.f32.mxu1 %vm5072_vm0, %v5071_v0  ;;  %4160 = vmatprep.subr.mxu1 %v5071_v0 }
  0x36   : > { %4108 = vmatmul.mubr.f32.vlgmr.msra.gmra.mxu0 %v410_v11  ;;  %4123 = vmatmul.mubr.f32.vlgmr.msra.gmra.mxu1 %v5182_v8  ;;  %v5317_v10 = vsub.f32 %v796_v6, %v5314_v7  ;;  %v991_v50 = vand.u32 4294901760, %v5347_v39 }
  0x37   : > { %4116 = vmatpush3.msra.mxu0 %v452_v16  ;;  %4117 = vmatprep.mubr.msk.f32.mxu0 %vm5072_vm0, %v5071_v0  ;;  %v5327_v16 = vand.u32 4294901760, %v794_v12 }
  0x38   : > { %4125 = vmatprep.subr.mxu0 %v5071_v0  ;;  %4161 = vmatpush3.msra.mxu1 %v909_v45  ;;  %v970_v14 = vand.u32 4294901760, %v5317_v10  ;;  %v791_v45 = vld [vmem:[#allocation2 + $0x8] sm:$0xff] }
  0x39   : > { %4162 = vmatprep.subr.mxu1 %v5071_v0  ;;  %4192 = vmatprep.mubr.msk.f32.mxu1 %vm5072_vm0, %v5071_v0  ;;  %v5336_v25 = vsub.f32 %v794_v12, %v5327_v16 }
  0x3a   : > { %4118 = vmatmul.mubr.f32.vlgmr.msra.gmra.mxu0 %v5182_v8  ;;  %4163 = vmatpush3.msra.mxu1 %v916_v49  ;;  %v795_v8 = vld [vmem:[#allocation2 + $0x28] sm:$0xff]  ;;  %v971_v20 = vsub.f32 %v5317_v10, %v970_v14 }
  0x3b   : > { %4126 = vmatpush3.msra.mxu0 %v5184_v9  ;;  %4164 = vmatprep.subr.mxu1 %v5071_v0  ;;  %v5319_v11 = vand.u32 4294901760, %v795_v8  ;;  %v984_v36 = vand.u32 4294901760, %v5336_v25 }
  0x3c   : > { %4127 = vmatprep.subr.mxu0 %v5071_v0  ;;  %4165 = vmatpush3.msra.mxu1 %v923_v53  ;;  %v972_v30 = vand.u32 4294901760, %v971_v20  ;;  %v5357_v53 = vand.u32 4294901760, %v791_v45 }
  0x3d   : > { %4128 = vmatpush3.msra.mxu0 %v5187_v13  ;;  %4166 = vmatprep.subr.mxu1 %v5071_v0  ;;  %v5325_v15 = vsub.f32 %v795_v8, %v5319_v11  ;;  %v985_v49 = vsub.f32 %v5336_v25, %v984_v36 }
  0x3e   : > { %4129 = vmatprep.subr.mxu0 %v5071_v0  ;;  %4167 = vmatpush3.msra.mxu1 %v930_v57  ;;  %v790_v57 = vld [vmem:[#allocation2] sm:$0xff]  ;;  %v5368_v61 = vsub.f32 %v791_v45, %v5357_v53 }
  0x3f   : > { %4130 = vmatpush3.msra.mxu0 %v5193_v18  ;;  %4168 = vmatprep.subr.mxu1 %v5071_v0  ;;  %v977_v21 = vand.u32 4294901760, %v5325_v15  ;;  %v986_v58 = vand.u32 4294901760, %v985_v49 }
  0x40   : > { %4131 = vmatprep.subr.mxu0 %v5071_v0  ;;  %4169 = vmatpush3.msra.mxu1 %v937_v60  ;;  %v992_v60 = vsub.f32 %v5347_v39, %v991_v50  ;;  %v6745_v3 = vand.u32 4294901760, %v5368_v61 }
  0x41   : > { %4132 = vmatpush3.msra.mxu0 %v5198_v23  ;;  %4170 = vmatprep.subr.mxu1 %v5071_v0  ;;  %v978_v35 = vsub.f32 %v5325_v15, %v977_v21 }
  0x42   : > { %4133 = vmatprep.subr.mxu0 %v5071_v0  ;;  %4171 = vmatpush3.msra.mxu1 %v944_v63  ;;  %v5370_v63 = vand.u32 4294901760, %v790_v57  ;;  %v1006_v6 = vsub.f32 %v5368_v61, %v6745_v3 }
  0x43   : > { %4134 = vmatpush3.msra.mxu0 %v5200_v24  ;;  %4172 = vmatprep.subr.mxu1 %v5071_v0  ;;  %v979_v46 = vand.u32 4294901760, %v978_v35 }
  0x44   : > { %4135 = vmatprep.subr.mxu0 %v5071_v0  ;;  %4173 = vmatpush3.msra.mxu1 %v951_v2  ;;  %v993_v2 = vand.u32 4294901760, %v992_v60  ;;  %v1007_v19 = vand.u32 4294901760, %v1006_v6 }
  0x45   : > { %4136 = vmatpush3.msra.mxu0 %v5210_v33  ;;  %4174 = vmatprep.subr.mxu1 %v5071_v0 }
  0x46   : > { %4137 = vmatprep.subr.mxu0 %v5071_v0  ;;  %4175 = vmatpush3.msra.mxu1 %v958_v4  ;;  %v5378_v4 = vsub.f32 %v790_v57, %v5370_v63 }
  0x47   : > { %4138 = vmatpush3.msra.mxu0 %v5223_v38  ;;  %4176 = vmatprep.subr.mxu1 %v5071_v0 }
  0x48   : > { %4139 = vmatprep.subr.mxu0 %v5071_v0  ;;  %4177 = vmatpush3.msra.mxu1 %v965_v5  ;;  %v999_v5 = vsub.f32 %v5361_v54, %v998_v1  ;;  %v6744_v8 = vand.u32 4294901760, %v5378_v4 }
  0x49   : > { %4140 = vmatpush3.msra.mxu0 %v5235_v43  ;;  %4178 = vmatprep.subr.mxu1 %v5071_v0 }
  0x4a   : > { %4141 = vmatprep.subr.mxu0 %v5071_v0  ;;  %4157 = vmatprep.mubr.msk.f32.mxu0 %vm5072_vm0, %v5071_v0  ;;  %v1000_v12 = vand.u32 4294901760, %v999_v5  ;;  %v1013_v20 = vsub.f32 %v5378_v4, %v6744_v8 }
  0x4b   : > { %4142 = vmatpush3.msra.mxu0 %v5247_v48  ;;  %4179 = vmatpush3.msra.mxu1 %v972_v30 }
  0x4c   : > { %4143 = vmatprep.subr.mxu0 %v5071_v0  ;;  %4180 = vmatprep.subr.mxu1 %v5071_v0  ;;  %v1014_v27 = vand.u32 4294901760, %v1013_v20 }
  0x4d   : > { %4144 = vmatpush3.msra.mxu0 %v5314_v7  ;;  %4181 = vmatpush3.msra.mxu1 %v979_v46 }
  0x4e   : > { %4145 = vmatprep.subr.mxu0 %v5071_v0  ;;  %4182 = vmatprep.subr.mxu1 %v5071_v0 }
  0x4f   : > { %4146 = vmatpush3.msra.mxu0 %v5319_v11  ;;  %4183 = vmatpush3.msra.mxu1 %v986_v58 }
  0x50   : > { %4147 = vmatprep.subr.mxu0 %v5071_v0  ;;  %4184 = vmatprep.subr.mxu1 %v5071_v0 }
  0x51   : > { %4148 = vmatpush3.msra.mxu0 %v5327_v16  ;;  %4185 = vmatpush3.msra.mxu1 %v993_v2 }
  0x52   : > { %4149 = vmatprep.subr.mxu0 %v5071_v0  ;;  %4186 = vmatprep.subr.mxu1 %v5071_v0 }
  0x53   : > { %4150 = vmatpush3.msra.mxu0 %v5338_v26  ;;  %4187 = vmatpush3.msra.mxu1 %v1000_v12 }
  0x54   : > { %4151 = vmatprep.subr.mxu0 %v5071_v0  ;;  %4188 = vmatprep.subr.mxu1 %v5071_v0 }
  0x55   : > { %4152 = vmatpush3.msra.mxu0 %v5350_v40  ;;  %4189 = vmatpush3.msra.mxu1 %v1007_v19 }
  0x56   : > { %4153 = vmatprep.subr.mxu0 %v5071_v0  ;;  %4190 = vmatprep.subr.mxu1 %v5071_v0 }
  0x57   : > { %4154 = vmatpush3.msra.mxu0 %v5357_v53  ;;  %4191 = vmatpush3.msra.mxu1 %v1014_v27 }
  0x58   : > { %4155 = vmatprep.subr.mxu0 %v5071_v0  ;;  %4230 = vmatprep.subr.mxu1 %v5071_v0 }
  0x59   : > { %4156 = vmatpush3.msra.mxu0 %v5370_v63 }
  0x5a   : > { %4195 = vmatprep.subr.mxu0 %v5071_v0 }
  0xee   : > { %v491_v35 = vpop.f32.mrf.mxu1 }
  0xf0   : > { %v4104_v49 = vpop.f32.mrf.mxu1 }
  0xf2   : > { %v415_v30 = vpop.f32.mrf.mxu0  ;;  %v639_v60 = vpop.f32.mrf.mxu1 }
  0xf3   : > { %v492_v45 = vadd.f32 %v491_v35, %v415_v30 }
  0xf4   : > { %v4099_v46 = vpop.f32.mrf.mxu0  ;;  %v4114_v6 = vpop.f32.mrf.mxu1 }
  0xf5   : > { %v1464_v46 = vld [vmem:[#allocation2 + $0xb0] sm:$0xff] }
  0xf6   : > { %v565_v57 = vpop.f32.mrf.mxu0  ;;  %v785_v20 = vpop.f32.mrf.mxu1 }
  0xf7   : > { %v566_v58 = vadd.f32 %v565_v57, %v492_v45 }
  0xf8   : > { %v4109_v2 = vpop.f32.mrf.mxu0  ;;  %v4124_v3 = vpop.f32.mrf.mxu1 }
  0xf9   : > { %v640_v5 = vadd.f32 %v639_v60, %v566_v58  ;;  %v5659_v60 = vand.u32 4294901760, %v1464_v46 }
  0xfa   : > { %v713_v12 = vpop.f32.mrf.mxu0 }
  0xfb   : > { %v714_v19 = vadd.f32 %v713_v12, %v640_v5  ;;  %v1463_v5 = vld [vmem:[#allocation2 + $0xa8] sm:$0xff] }
  0xfc   : > { %v4119_v8 = vpop.f32.mrf.mxu0 }
  0xfd   : > { %v786_v27 = vadd.f32 %v785_v20, %v714_v19  ;;  %v5672_v19 = vsub.f32 %v1464_v46, %v5659_v60  ;;  %v5674_v20 = vand.u32 4294901760, %v1463_v5 }
  0xff   : > { %789 = vst [vmem:[%s5399_s15] sm:$0xff] %v786_v27  ;;  %v5402_v30 = vand.u32 4294901760, %v786_v27 }
 0x101   : > { %v5405_v35 = vsub.f32 %v786_v27, %v5402_v30  ;;  %4193 = vmatmul.mubr.f32.vlgmr.msra.gmra.mxu1 %v5402_v30 }
 0x102   : > { %4231 = vmatpush3.msra.mxu1 %v5184_v9  ;;  %4262 = vmatprep.mubr.msk.f32.mxu1 %vm5072_vm0, %v5071_v0 }
 0x103   : > { %v896_v8 = vand.u32 4294901760, %v5405_v35  ;;  %4232 = vmatprep.subr.mxu1 %v5071_v0 }
 0x104   : > { %4233 = vmatpush3.msra.mxu1 %v5187_v13 }
 0x105   : > { %4234 = vmatprep.subr.mxu1 %v5071_v0  ;;  %v897_v3 = vsub.f32 %v5405_v35, %v896_v8 }
 0x106   : > { %4235 = vmatpush3.msra.mxu1 %v5193_v18 }
 0x107   : > { %4236 = vmatprep.subr.mxu1 %v5071_v0  ;;  %v898_v45 = vand.u32 4294901760, %v897_v3  ;;  %v1639_v3 = vand.u32 4294901760, %v5672_v19 }
 0x108   : > { %4237 = vmatpush3.msra.mxu1 %v5198_v23 }
 0x109   : > { %4238 = vmatprep.subr.mxu1 %v5071_v0  ;;  %4158 = vmatmul.mubr.f32.vlgmr.msra.gmra.mxu0 %v898_v45  ;;  %v5684_v45 = vsub.f32 %v1463_v5, %v5674_v20 }
 0x10a   : > { %4196 = vmatpush3.msra.mxu0 %v5191_v17  ;;  %4239 = vmatpush3.msra.mxu1 %v5200_v24  ;;  %v1473_v17 = vld [vmem:[#allocation2 + $0xf8] sm:$0xff] }
 0x10b   : > { %4197 = vmatprep.subr.mxu0 %v5071_v0  ;;  %4240 = vmatprep.subr.mxu1 %v5071_v0 }
 0x10c   : > { %4198 = vmatpush3.msra.mxu0 %v5196_v22  ;;  %4241 = vmatpush3.msra.mxu1 %v5210_v33  ;;  %v5569_v22 = vand.u32 4294901760, %v1473_v17 }
 0x10d   : > { %4199 = vmatprep.subr.mxu0 %v5071_v0  ;;  %4242 = vmatprep.subr.mxu1 %v5071_v0 }
 0x10e   : > { %4200 = vmatpush3.msra.mxu0 %v5204_v29  ;;  %4243 = vmatpush3.msra.mxu1 %v5223_v38 }
 0x10f   : > { %4201 = vmatprep.subr.mxu0 %v5071_v0  ;;  %4244 = vmatprep.subr.mxu1 %v5071_v0 }
 0x110   : > { %4202 = vmatpush3.msra.mxu0 %v5208_v32  ;;  %4245 = vmatpush3.msra.mxu1 %v5235_v43 }
 0x111   : > { %4203 = vmatprep.subr.mxu0 %v5071_v0  ;;  %4246 = vmatprep.subr.mxu1 %v5071_v0 }
 0x112   : > { %4204 = vmatpush3.msra.mxu0 %v5214_v34  ;;  %4247 = vmatpush3.msra.mxu1 %v5247_v48 }
 0x113   : > { %4205 = vmatprep.subr.mxu0 %v5071_v0  ;;  %4248 = vmatprep.subr.mxu1 %v5071_v0 }
 0x114   : > { %4206 = vmatpush3.msra.mxu0 %v5233_v42  ;;  %4249 = vmatpush3.msra.mxu1 %v5314_v7  ;;  %v1470_v42 = vld [vmem:[#allocation2 + $0xe0] sm:$0xff] }
 0x115   : > { %4207 = vmatprep.subr.mxu0 %v5071_v0  ;;  %4250 = vmatprep.subr.mxu1 %v5071_v0 }
 0x116   : > { %4208 = vmatpush3.msra.mxu0 %v5245_v47  ;;  %4251 = vmatpush3.msra.mxu1 %v5319_v11  ;;  %v1469_v47 = vld [vmem:[#allocation2 + $0xd8] sm:$0xff] }
 0x117   : > { %4209 = vmatprep.subr.mxu0 %v5071_v0  ;;  %4252 = vmatprep.subr.mxu1 %v5071_v0 }
 0x118   : > { %4210 = vmatpush3.msra.mxu0 %v5258_v52  ;;  %4253 = vmatpush3.msra.mxu1 %v5327_v16  ;;  %v5606_v52 = vand.u32 4294901760, %v1469_v47 }
 0x119   : > { %4211 = vmatprep.subr.mxu0 %v5071_v0  ;;  %4254 = vmatprep.subr.mxu1 %v5071_v0 }
 0x11a   : > { %4212 = vmatpush3.msra.mxu0 %v5268_v56  ;;  %4255 = vmatpush3.msra.mxu1 %v5338_v26 }
 0x11b   : > { %4213 = vmatprep.subr.mxu0 %v5071_v0  ;;  %4256 = vmatprep.subr.mxu1 %v5071_v0 }
 0x11c   : > { %4214 = vmatpush3.msra.mxu0 %v5317_v10  ;;  %4257 = vmatpush3.msra.mxu1 %v5350_v40  ;;  %v1467_v10 = vld [vmem:[#allocation2 + $0xc8] sm:$0xff] }
 0x11d   : > { %4215 = vmatprep.subr.mxu0 %v5071_v0  ;;  %4258 = vmatprep.subr.mxu1 %v5071_v0 }
 0x11e   : > { %4216 = vmatpush3.msra.mxu0 %v5325_v15  ;;  %4259 = vmatpush3.msra.mxu1 %v5357_v53 }
 0x11f   : > { %4217 = vmatprep.subr.mxu0 %v5071_v0  ;;  %4260 = vmatprep.subr.mxu1 %v5071_v0 }
 0x120   : > { %4218 = vmatpush3.msra.mxu0 %v5336_v25  ;;  %4261 = vmatpush3.msra.mxu1 %v5370_v63  ;;  %v1466_v25 = vld [vmem:[#allocation2 + $0xc0] sm:$0xff] }
 0x121   : > { %4219 = vmatprep.subr.mxu0 %v5071_v0  ;;  %4263 = vmatmul.mubr.f32.vlgmr.msra.gmra.mxu1 %v896_v8 }
 0x122   : > { %4300 = vmatprep.subr.mxu1 %v5071_v0  ;;  %4220 = vmatpush3.msra.mxu0 %v5347_v39 }
 0x123   : > { %4301 = vmatpush3.msra.mxu1 %v5184_v9  ;;  %4221 = vmatprep.subr.mxu0 %v5071_v0  ;;  %v6757_v9 = vand.u32 4294901760, %v5368_v61 }
 0x124   : > { %4302 = vmatprep.subr.mxu1 %v5071_v0  ;;  %4222 = vmatpush3.msra.mxu0 %v5361_v54 }
 0x125   : > { %4303 = vmatpush3.msra.mxu1 %v5187_v13  ;;  %4223 = vmatprep.subr.mxu0 %v5071_v0  ;;  %v6758_v13 = vand.u32 4294901760, %v5378_v4 }
 0x126   : > { %4304 = vmatprep.subr.mxu1 %v5071_v0  ;;  %4224 = vmatpush3.msra.mxu0 %v5368_v61 }
 0x127   : > { %4305 = vmatpush3.msra.mxu1 %v5193_v18  ;;  %4225 = vmatprep.subr.mxu0 %v5071_v0  ;;  %v1472_v18 = vld [vmem:[#allocation2 + $0xf0] sm:$0xff] }
 0x128   : > { %4306 = vmatprep.subr.mxu1 %v5071_v0  ;;  %4226 = vmatpush3.msra.mxu0 %v5378_v4 }
 0x129   : > { %4227 = vmatprep.mubr.msk.f32.mxu0 %vm5072_vm0, %v5071_v0  ;;  %4307 = vmatpush3.msra.mxu1 %v5198_v23  ;;  %v5571_v23 = vand.u32 4294901760, %v1472_v18 }
 0x12a   : > { %4228 = vmatmul.mubr.f32.vlgmr.msra.gmra.mxu0 %v5405_v35  ;;  %4265 = vmatprep.subr.mxu0 %v5071_v0 }
 0x12b   : > { %4308 = vmatprep.subr.mxu1 %v5071_v0  ;;  %4266 = vmatpush3.msra.mxu0 %v907_v28  ;;  %v5577_v28 = vsub.f32 %v1472_v18, %v5571_v23  ;;  %v1640_v18 = vsub.f32 %v5672_v19, %v1639_v3 }
 0x12c   : > { %4309 = vmatpush3.msra.mxu1 %v5200_v24  ;;  %4267 = vmatprep.subr.mxu0 %v5071_v0  ;;  %v5574_v24 = vsub.f32 %v1473_v17, %v5569_v22 }
 0x12d   : > { %4310 = vmatprep.subr.mxu1 %v5071_v0  ;;  %4268 = vmatpush3.msra.mxu0 %v914_v31  ;;  %v1583_v31 = vand.u32 4294901760, %v5577_v28 }
 0x12e   : > { %4311 = vmatpush3.msra.mxu1 %v5210_v33  ;;  %4269 = vmatprep.subr.mxu0 %v5071_v0  ;;  %v1576_v29 = vand.u32 4294901760, %v5574_v24 }
 0x12f   : > { %4312 = vmatprep.subr.mxu1 %v5071_v0  ;;  %4270 = vmatpush3.msra.mxu0 %v921_v37  ;;  %v1584_v33 = vsub.f32 %v5577_v28, %v1583_v31 }
 0x130   : > { %4313 = vmatpush3.msra.mxu1 %v5223_v38  ;;  %4271 = vmatprep.subr.mxu0 %v5071_v0  ;;  %v1577_v32 = vsub.f32 %v5574_v24, %v1576_v29  ;;  %v1471_v38 = vld [vmem:[#allocation2 + $0xe8] sm:$0xff] }
 0x131   : > { %4314 = vmatprep.subr.mxu1 %v5071_v0  ;;  %4272 = vmatpush3.msra.mxu0 %v928_v41  ;;  %v1585_v37 = vand.u32 4294901760, %v1584_v33  ;;  %v5593_v41 = vand.u32 4294901760, %v1471_v38 }
 0x132   : > { %4315 = vmatpush3.msra.mxu1 %v5235_v43  ;;  %4273 = vmatprep.subr.mxu0 %v5071_v0  ;;  %v1578_v34 = vand.u32 4294901760, %v1577_v32  ;;  %v1646_v32 = vand.u32 4294901760, %v5684_v45 }
 0x133   : > { %4316 = vmatprep.subr.mxu1 %v5071_v0  ;;  %4274 = vmatpush3.msra.mxu0 %v935_v44  ;;  %v5596_v43 = vsub.f32 %v1471_v38, %v5593_v41  ;;  %v5598_v44 = vand.u32 4294901760, %v1470_v42  ;;  %v1641_v38 = vand.u32 4294901760, %v1640_v18 }
 0x134   : > { %4317 = vmatpush3.msra.mxu1 %v5247_v48  ;;  %4275 = vmatprep.subr.mxu0 %v5071_v0 }
 0x135   : > { %4318 = vmatprep.subr.mxu1 %v5071_v0  ;;  %4276 = vmatpush3.msra.mxu0 %v942_v51  ;;  %v1590_v48 = vand.u32 4294901760, %v5596_v43  ;;  %v5604_v51 = vsub.f32 %v1470_v42, %v5598_v44  ;;  %v1647_v42 = vsub.f32 %v5684_v45, %v1646_v32 }
 0x136   : > { %4319 = vmatpush3.msra.mxu1 %v5314_v7  ;;  %4277 = vmatprep.subr.mxu0 %v5071_v0 }
 0x137   : > { %4320 = vmatprep.subr.mxu1 %v5071_v0  ;;  %4278 = vmatpush3.msra.mxu0 %v949_v55  ;;  %v1468_v55 = vld [vmem:[#allocation2 + $0xd0] sm:$0xff]  ;;  %v1591_v56 = vsub.f32 %v5596_v43, %v1590_v48 }
 0x138   : > { %4321 = vmatpush3.msra.mxu1 %v5319_v11  ;;  %4279 = vmatprep.subr.mxu0 %v5071_v0  ;;  %v5617_v7 = vand.u32 4294901760, %v1468_v55 }
 0x139   : > { %4322 = vmatprep.subr.mxu1 %v5071_v0  ;;  %4280 = vmatpush3.msra.mxu0 %v956_v59  ;;  %v1597_v59 = vand.u32 4294901760, %v5604_v51  ;;  %v1592_v11 = vand.u32 4294901760, %v1591_v56 }
 0x13a   : > { %4323 = vmatpush3.msra.mxu1 %v5327_v16  ;;  %4281 = vmatprep.subr.mxu0 %v5071_v0  ;;  %v5626_v16 = vsub.f32 %v1468_v55, %v5617_v7 }
 0x13b   : > { %4324 = vmatprep.subr.mxu1 %v5071_v0  ;;  %4282 = vmatpush3.msra.mxu0 %v963_v62  ;;  %v5615_v62 = vsub.f32 %v1469_v47, %v5606_v52 }
 0x13c   : > { %4325 = vmatpush3.msra.mxu1 %v5338_v26  ;;  %4283 = vmatprep.subr.mxu0 %v5071_v0  ;;  %v1611_v39 = vand.u32 4294901760, %v5626_v16 }
 0x13d   : > { %4326 = vmatprep.subr.mxu1 %v5071_v0  ;;  %4284 = vmatpush3.msra.mxu0 %v970_v14  ;;  %v1598_v14 = vsub.f32 %v5604_v51, %v1597_v59  ;;  %v1604_v15 = vand.u32 4294901760, %v5615_v62 }
 0x13e   : > { %4327 = vmatpush3.msra.mxu1 %v5350_v40  ;;  %4285 = vmatprep.subr.mxu0 %v5071_v0  ;;  %v5636_v40 = vand.u32 4294901760, %v1466_v25  ;;  %v1612_v61 = vsub.f32 %v5626_v16, %v1611_v39 }
 0x13f   : > { %4328 = vmatprep.subr.mxu1 %v5071_v0  ;;  %4286 = vmatpush3.msra.mxu0 %v977_v21  ;;  %v5629_v21 = vand.u32 4294901760, %v1467_v10  ;;  %v1599_v26 = vand.u32 4294901760, %v1598_v14 }
 0x140   : > { %4329 = vmatpush3.msra.mxu1 %v5357_v53  ;;  %4287 = vmatprep.subr.mxu0 %v5071_v0  ;;  %v1465_v53 = vld [vmem:[#allocation2 + $0xb8] sm:$0xff]  ;;  %v1613_v49 = vand.u32 4294901760, %v1612_v61 }
 0x141   : > { %4330 = vmatprep.subr.mxu1 %v5071_v0  ;;  %4288 = vmatpush3.msra.mxu0 %v984_v36  ;;  %v1605_v36 = vsub.f32 %v5615_v62, %v1604_v15 }
 0x142   : > { %4331 = vmatpush3.msra.mxu1 %v5370_v63  ;;  %4332 = vmatprep.mubr.msk.f32.mxu1 %vm5072_vm0, %v5071_v0  ;;  %v5647_v63 = vsub.f32 %v1466_v25, %v5636_v40 }
 0x143   : > { %4289 = vmatprep.subr.mxu0 %v5071_v0  ;;  %4333 = vmatmul.mubr.f32.vlgmr.msra.gmra.mxu1 %v5402_v30  ;;  %v1606_v54 = vand.u32 4294901760, %v1605_v36 }
 0x144   : > { %4290 = vmatpush3.msra.mxu0 %v991_v50  ;;  %4297 = vmatprep.mubr.msk.f32.mxu0 %vm5072_vm0, %v5071_v0  ;;  %v5640_v50 = vsub.f32 %v1467_v10, %v5629_v21  ;;  %v1625_v57 = vand.u32 4294901760, %v5647_v63  ;;  %v1459_v10 = vld [vmem:[#allocation2 + $0x88] sm:$0xff] }
 0x145   : > { %4291 = vmatprep.subr.mxu0 %v5071_v0  ;;  %4370 = vmatprep.subr.mxu1 %v5071_v0 }
 0x146   : > { %4292 = vmatpush3.msra.mxu0 %v998_v1  ;;  %4402 = vmatprep.mubr.msk.f32.mxu1 %vm5072_vm0, %v5071_v0  ;;  %v5649_v1 = vand.u32 4294901760, %v1465_v53  ;;  %v1618_v4 = vand.u32 4294901760, %v5640_v50  ;;  %v1626_v6 = vsub.f32 %v5647_v63, %v1625_v57 }
 0x147   : > { %4293 = vmatprep.subr.mxu0 %v5071_v0  ;;  %4371 = vmatpush3.msra.mxu1 %v1578_v34 }
 0x148   : > { %4294 = vmatpush3.msra.mxu0 %v6757_v9  ;;  %4372 = vmatprep.subr.mxu1 %v5071_v0  ;;  %v5657_v58 = vsub.f32 %v1465_v53, %v5649_v1  ;;  %v1619_v2 = vsub.f32 %v5640_v50, %v1618_v4  ;;  %v1627_v35 = vand.u32 4294901760, %v1626_v6  ;;  %v1458_v53 = vld [vmem:[#allocation2 + $0x80] sm:$0xff] }
 0x149   : > { %4295 = vmatprep.subr.mxu0 %v5071_v0  ;;  %4373 = vmatpush3.msra.mxu1 %v1585_v37  ;;  %v1460_v37 = vld [vmem:[#allocation2 + $0x90] sm:$0xff] }
 0x14a   : > { %4296 = vmatpush3.msra.mxu0 %v6758_v13  ;;  %4374 = vmatprep.subr.mxu1 %v5071_v0  ;;  %v1632_v12 = vand.u32 4294901760, %v5657_v58  ;;  %v1620_v27 = vand.u32 4294901760, %v1619_v2  ;;  %v1461_v13 = vld [vmem:[#allocation2 + $0x98] sm:$0xff]  ;;  %v5709_v55 = vand.u32 4294901760, %v1460_v37 }
 0x14b   : > { %4298 = vmatmul.mubr.f32.vlgmr.msra.gmra.mxu0 %v5402_v30  ;;  %4335 = vmatprep.subr.mxu0 %v5071_v0  ;;  %v1462_v30 = vld [vmem:[#allocation2 + $0xa0] sm:$0xff]  ;;  %v5695_v33 = vand.u32 4294901760, %v1461_v13 }
 0x14c   : > { %4367 = vmatprep.mubr.msk.f32.mxu0 %vm5072_vm0, %v5071_v0  ;;  %4336 = vmatpush3.msra.mxu0 %v5569_v22  ;;  %v1633_v8 = vsub.f32 %v5657_v58, %v1632_v12  ;;  %v5687_v9 = vand.u32 4294901760, %v1462_v30  ;;  %v5717_v25 = vsub.f32 %v1460_v37, %v5709_v55 }
 0x14d   : > { %4337 = vmatprep.subr.mxu0 %v5071_v0  ;;  %4375 = vmatpush3.msra.mxu1 %v1592_v11  ;;  %v5707_v47 = vsub.f32 %v1461_v13, %v5695_v33  ;;  %v1648_v11 = vand.u32 4294901760, %v1647_v42 }
 0x14e   : > { %4338 = vmatpush3.msra.mxu0 %v5571_v23  ;;  %4376 = vmatprep.subr.mxu1 %v5071_v0  ;;  %v1634_v17 = vand.u32 4294901760, %v1633_v8  ;;  %v5699_v34 = vsub.f32 %v1462_v30, %v5687_v9  ;;  %v6748_v61 = vand.u32 4294901760, %v5717_v25 }
 0x14f   : > { %4339 = vmatprep.subr.mxu0 %v5071_v0  ;;  %4377 = vmatpush3.msra.mxu1 %v1599_v26  ;;  %v1660_v14 = vand.u32 4294901760, %v5707_v47  ;;  %v5719_v26 = vand.u32 4294901760, %v1459_v10 }
 0x150   : > { %4340 = vmatpush3.msra.mxu0 %v5593_v41  ;;  %4378 = vmatprep.subr.mxu1 %v5071_v0  ;;  %v1653_v56 = vand.u32 4294901760, %v5699_v34  ;;  %v1668_v6 = vsub.f32 %v5717_v25, %v6748_v61 }
 0x151   : > { %4341 = vmatprep.subr.mxu0 %v5071_v0  ;;  %4379 = vmatpush3.msra.mxu1 %v1606_v54  ;;  %v1661_v54 = vsub.f32 %v5707_v47, %v1660_v14  ;;  %v5732_v46 = vsub.f32 %v1459_v10, %v5719_v26 }
 0x152   : > { %4342 = vmatpush3.msra.mxu0 %v5598_v44  ;;  %4380 = vmatprep.subr.mxu1 %v5071_v0  ;;  %v1654_v36 = vsub.f32 %v5699_v34, %v1653_v56 }
 0x153   : > { %4343 = vmatprep.subr.mxu0 %v5071_v0  ;;  %4381 = vmatpush3.msra.mxu1 %v1613_v49  ;;  %v5734_v49 = vand.u32 4294901760, %v1458_v53  ;;  %v1662_v5 = vand.u32 4294901760, %v1661_v54 }
 0x154   : > { %4344 = vmatpush3.msra.mxu0 %v5606_v52  ;;  %4382 = vmatprep.subr.mxu1 %v5071_v0  ;;  %v1655_v2 = vand.u32 4294901760, %v1654_v36 }
 0x155   : > { %4345 = vmatprep.subr.mxu0 %v5071_v0  ;;  %4383 = vmatpush3.msra.mxu1 %v1620_v27  ;;  %v6747_v27 = vand.u32 4294901760, %v5732_v46  ;;  %v5744_v30 = vsub.f32 %v1458_v53, %v5734_v49 }
 0x156   : > { %4346 = vmatpush3.msra.mxu0 %v5617_v7  ;;  %4384 = vmatprep.subr.mxu1 %v5071_v0 }
 0x157   : > { %4347 = vmatprep.subr.mxu0 %v5071_v0  ;;  %4385 = vmatpush3.msra.mxu1 %v1627_v35  ;;  %v1669_v35 = vand.u32 4294901760, %v1668_v6  ;;  %v1675_v8 = vsub.f32 %v5732_v46, %v6747_v27  ;;  %v6746_v13 = vand.u32 4294901760, %v5744_v30 }
 0x158   : > { %4348 = vmatpush3.msra.mxu0 %v5629_v21  ;;  %4386 = vmatprep.subr.mxu1 %v5071_v0 }
 0x159   : > { %4349 = vmatprep.subr.mxu0 %v5071_v0  ;;  %4387 = vmatpush3.msra.mxu1 %v1634_v17  ;;  %v1676_v17 = vand.u32 4294901760, %v1675_v8  ;;  %v1682_v18 = vsub.f32 %v5744_v30, %v6746_v13 }
 0x15a   : > { %4350 = vmatpush3.msra.mxu0 %v5636_v40  ;;  %4388 = vmatprep.subr.mxu1 %v5071_v0 }
 0x15b   : > { %4351 = vmatprep.subr.mxu0 %v5071_v0  ;;  %4389 = vmatpush3.msra.mxu1 %v1641_v38  ;;  %v1683_v37 = vand.u32 4294901760, %v1682_v18 }
 0x15c   : > { %4352 = vmatpush3.msra.mxu0 %v5649_v1  ;;  %4390 = vmatprep.subr.mxu1 %v5071_v0 }
 0x15d   : > { %4353 = vmatprep.subr.mxu0 %v5071_v0  ;;  %4391 = vmatpush3.msra.mxu1 %v1648_v11 }
 0x15e   : > { %4354 = vmatpush3.msra.mxu0 %v5659_v60  ;;  %4392 = vmatprep.subr.mxu1 %v5071_v0 }
 0x15f   : > { %4355 = vmatprep.subr.mxu0 %v5071_v0  ;;  %4393 = vmatpush3.msra.mxu1 %v1655_v2 }
 0x160   : > { %4356 = vmatpush3.msra.mxu0 %v5674_v20  ;;  %4394 = vmatprep.subr.mxu1 %v5071_v0 }
 0x161   : > { %4357 = vmatprep.subr.mxu0 %v5071_v0  ;;  %4395 = vmatpush3.msra.mxu1 %v1662_v5  ;;  %v3662_v5 = vld [vmem:[%s6738_s3] ss:$0 sm:$0xff] }
 0x162   : > { %4358 = vmatpush3.msra.mxu0 %v5687_v9  ;;  %4396 = vmatprep.subr.mxu1 %v5071_v0 }
 0x163   : > { %4359 = vmatprep.subr.mxu0 %v5071_v0  ;;  %4397 = vmatpush3.msra.mxu1 %v1669_v35 }
 0x164   : > { %4360 = vmatpush3.msra.mxu0 %v5695_v33  ;;  %4398 = vmatprep.subr.mxu1 %v5071_v0 }
 0x165   : > { %4361 = vmatprep.subr.mxu0 %v5071_v0  ;;  %4399 = vmatpush3.msra.mxu1 %v1676_v17 }
 0x166   : > { %4362 = vmatpush3.msra.mxu0 %v5709_v55  ;;  %4400 = vmatprep.subr.mxu1 %v5071_v0 }
 0x167   : > { %4363 = vmatprep.subr.mxu0 %v5071_v0  ;;  %4401 = vmatpush3.msra.mxu1 %v1683_v37 }
 0x168   : > { %4364 = vmatpush3.msra.mxu0 %v5719_v26  ;;  %4440 = vmatprep.subr.mxu1 %v5071_v0 }
 0x169   : > { %4365 = vmatprep.subr.mxu0 %v5071_v0 }
 0x16a   : > { %4366 = vmatpush3.msra.mxu0 %v5734_v49 }
 0x16b   : > { %4405 = vmatprep.subr.mxu0 %v5071_v0 }
 0x1c1   : > { %v1051_v38 = vpop.f32.mrf.mxu1 }
 0x1c3   : > { %v4194_v42 = vpop.f32.mrf.mxu1 }
 0x1c9   : > { %v900_v10 = vpop.f32.mrf.mxu0 }
 0x1ca   : > { %v901_v6 = vadd.f32 %v3662_v5, %v900_v10 }
 0x1cb   : > { %v4159_v11 = vpop.f32.mrf.mxu0 }
 0x1cc   : > { %v1052_v8 = vadd.f32 %v1051_v38, %v901_v6 }
 0x1e1   : > { %v1244_v36 = vpop.f32.mrf.mxu1 }
 0x1e3   : > { %v4264_v53 = vpop.f32.mrf.mxu1 }
 0x1ea   : > { %v1155_v54 = vpop.f32.mrf.mxu0 }
 0x1eb   : > { %v1156_v18 = vadd.f32 %v1155_v54, %v1052_v8 }
 0x1ec   : > { %v4229_v2 = vpop.f32.mrf.mxu0 }
 0x1ed   : > { %v1245_v37 = vadd.f32 %v1244_v36, %v1156_v18  ;;  %v2133_v36 = vld [vmem:[#allocation2 + $0x130] sm:$0xff] }
 0x203   : > { %v1450_v35 = vpop.f32.mrf.mxu1 }
 0x205   : > { %v4334_v17 = vpop.f32.mrf.mxu1 }
 0x206   : > { %v2132_v17 = vld [vmem:[#allocation2 + $0x128] sm:$0xff] }
 0x20b   : > { %v1363_v13 = vpop.f32.mrf.mxu0 }
 0x20c   : > { %v1364_v27 = vadd.f32 %v1363_v13, %v1245_v37 }
 0x20d   : > { %v4299_v42 = vpop.f32.mrf.mxu0 }
 0x20e   : > { %v1451_v61 = vadd.f32 %v1450_v35, %v1364_v27  ;;  %v6022_v35 = vand.u32 4294901760, %v2133_v36 }
 0x210   : > { %5004 = vtanh.f32 %v1451_v61  ;;  %v6035_v42 = vsub.f32 %v2133_v36, %v6022_v35 }
 0x21d   : > { %v5005_v11 = vpop.eup %5004 }
 0x21e   : > { %3663 = vst [vmem:[%s5399_s15 + $0x8] sm:$0xff] %v5005_v11  ;;  %v5765_v53 = vand.u32 4294901760, %v5005_v11 }
 0x220   : > { %4403 = vmatmul.mubr.f32.vlgmr.msra.gmra.mxu1 %v5765_v53  ;;  %v5769_v2 = vsub.f32 %v5005_v11, %v5765_v53  ;;  %v6037_v11 = vand.u32 4294901760, %v2132_v17 }
 0x221   : > { %4441 = vmatpush3.msra.mxu1 %v5569_v22  ;;  %4472 = vmatprep.mubr.msk.f32.mxu1 %vm5072_vm0, %v5071_v0 }
 0x222   : > { %4442 = vmatprep.subr.mxu1 %v5071_v0  ;;  %v1565_v13 = vand.u32 4294901760, %v5769_v2 }
 0x223   : > { %4443 = vmatpush3.msra.mxu1 %v5571_v23 }
 0x224   : > { %4444 = vmatprep.subr.mxu1 %v5071_v0  ;;  %v1566_v61 = vsub.f32 %v5769_v2, %v1565_v13 }
 0x225   : > { %4445 = vmatpush3.msra.mxu1 %v5593_v41 }
 0x226   : > { %4446 = vmatprep.subr.mxu1 %v5071_v0  ;;  %v1567_v27 = vand.u32 4294901760, %v1566_v61 }
 0x227   : > { %4447 = vmatpush3.msra.mxu1 %v5598_v44 }
 0x228   : > { %4448 = vmatprep.subr.mxu1 %v5071_v0  ;;  %4368 = vmatmul.mubr.f32.vlgmr.msra.gmra.mxu0 %v1567_v27  ;;  %v2308_v27 = vand.u32 4294901760, %v6035_v42 }
 0x229   : > { %4406 = vmatpush3.msra.mxu0 %v5574_v24  ;;  %4449 = vmatpush3.msra.mxu1 %v5606_v52  ;;  %v6761_v24 = vand.u32 4294901760, %v5744_v30 }
 0x22a   : > { %4407 = vmatprep.subr.mxu0 %v5071_v0  ;;  %4450 = vmatprep.subr.mxu1 %v5071_v0 }
 0x22b   : > { %4408 = vmatpush3.msra.mxu0 %v5577_v28  ;;  %4451 = vmatpush3.msra.mxu1 %v5617_v7  ;;  %v2142_v28 = vld [vmem:[#allocation2 + $0x178] sm:$0xff] }
 0x22c   : > { %4409 = vmatprep.subr.mxu0 %v5071_v0  ;;  %4452 = vmatprep.subr.mxu1 %v5071_v0 }
 0x22d   : > { %4410 = vmatpush3.msra.mxu0 %v5596_v43  ;;  %4453 = vmatpush3.msra.mxu1 %v5629_v21 }
 0x22e   : > { %4411 = vmatprep.subr.mxu0 %v5071_v0  ;;  %4454 = vmatprep.subr.mxu1 %v5071_v0 }
 0x22f   : > { %4412 = vmatpush3.msra.mxu0 %v5604_v51  ;;  %4455 = vmatpush3.msra.mxu1 %v5636_v40 }
 0x230   : > { %4413 = vmatprep.subr.mxu0 %v5071_v0  ;;  %4456 = vmatprep.subr.mxu1 %v5071_v0 }
 0x231   : > { %4414 = vmatpush3.msra.mxu0 %v5615_v62  ;;  %4457 = vmatpush3.msra.mxu1 %v5649_v1 }
 0x232   : > { %4415 = vmatprep.subr.mxu0 %v5071_v0  ;;  %4458 = vmatprep.subr.mxu1 %v5071_v0 }
 0x233   : > { %4416 = vmatpush3.msra.mxu0 %v5626_v16  ;;  %4459 = vmatpush3.msra.mxu1 %v5659_v60 }
 0x234   : > { %4417 = vmatprep.subr.mxu0 %v5071_v0  ;;  %4460 = vmatprep.subr.mxu1 %v5071_v0 }
 0x235   : > { %4418 = vmatpush3.msra.mxu0 %v5640_v50  ;;  %4461 = vmatpush3.msra.mxu1 %v5674_v20  ;;  %v2138_v50 = vld [vmem:[#allocation2 + $0x158] sm:$0xff] }
 0x236   : > { %4419 = vmatprep.subr.mxu0 %v5071_v0  ;;  %4462 = vmatprep.subr.mxu1 %v5071_v0 }
 0x237   : > { %4420 = vmatpush3.msra.mxu0 %v5647_v63  ;;  %4463 = vmatpush3.msra.mxu1 %v5687_v9 }
 0x238   : > { %4421 = vmatprep.subr.mxu0 %v5071_v0  ;;  %4464 = vmatprep.subr.mxu1 %v5071_v0 }
 0x239   : > { %4422 = vmatpush3.msra.mxu0 %v5657_v58  ;;  %4465 = vmatpush3.msra.mxu1 %v5695_v33 }
 0x23a   : > { %4423 = vmatprep.subr.mxu0 %v5071_v0  ;;  %4466 = vmatprep.subr.mxu1 %v5071_v0 }
 0x23b   : > { %4424 = vmatpush3.msra.mxu0 %v5672_v19  ;;  %4467 = vmatpush3.msra.mxu1 %v5709_v55 }
 0x23c   : > { %4425 = vmatprep.subr.mxu0 %v5071_v0  ;;  %4468 = vmatprep.subr.mxu1 %v5071_v0 }
 0x23d   : > { %4426 = vmatpush3.msra.mxu0 %v5684_v45  ;;  %4469 = vmatpush3.msra.mxu1 %v5719_v26 }
 0x23e   : > { %4427 = vmatprep.subr.mxu0 %v5071_v0  ;;  %4470 = vmatprep.subr.mxu1 %v5071_v0 }
 0x23f   : > { %4428 = vmatpush3.msra.mxu0 %v5699_v34  ;;  %4471 = vmatpush3.msra.mxu1 %v5734_v49  ;;  %v2135_v34 = vld [vmem:[#allocation2 + $0x140] sm:$0xff] }
 0x240   : > { %4429 = vmatprep.subr.mxu0 %v5071_v0  ;;  %4473 = vmatmul.mubr.f32.vlgmr.msra.gmra.mxu1 %v1565_v13 }
 0x241   : > { %4510 = vmatprep.subr.mxu1 %v5071_v0  ;;  %4430 = vmatpush3.msra.mxu0 %v5707_v47 }
 0x242   : > { %4511 = vmatpush3.msra.mxu1 %v5569_v22  ;;  %4431 = vmatprep.subr.mxu0 %v5071_v0  ;;  %v6759_v22 = vand.u32 4294901760, %v5717_v25 }
 0x243   : > { %4512 = vmatprep.subr.mxu1 %v5071_v0  ;;  %4432 = vmatpush3.msra.mxu0 %v5717_v25 }
 0x244   : > { %4513 = vmatpush3.msra.mxu1 %v5571_v23  ;;  %4433 = vmatprep.subr.mxu0 %v5071_v0  ;;  %v6760_v23 = vand.u32 4294901760, %v5732_v46 }
 0x245   : > { %4514 = vmatprep.subr.mxu1 %v5071_v0  ;;  %4434 = vmatpush3.msra.mxu0 %v5732_v46 }
 0x246   : > { %4515 = vmatpush3.msra.mxu1 %v5593_v41  ;;  %4435 = vmatprep.subr.mxu0 %v5071_v0 }
 0x247   : > { %4516 = vmatprep.subr.mxu1 %v5071_v0  ;;  %4436 = vmatpush3.msra.mxu0 %v5744_v30 }
 0x248   : > { %4437 = vmatprep.mubr.msk.f32.mxu0 %vm5072_vm0, %v5071_v0  ;;  %4517 = vmatpush3.msra.mxu1 %v5598_v44 }
 0x249   : > { %4438 = vmatmul.mubr.f32.vlgmr.msra.gmra.mxu0 %v5769_v2  ;;  %4475 = vmatprep.subr.mxu0 %v5071_v0  ;;  %v2131_v2 = vld [vmem:[#allocation2 + $0x120] sm:$0xff] }
 0x24a   : > { %4518 = vmatprep.subr.mxu1 %v5071_v0  ;;  %4476 = vmatpush3.msra.mxu0 %v1576_v29  ;;  %v2141_v29 = vld [vmem:[#allocation2 + $0x170] sm:$0xff] }
 0x24b   : > { %4519 = vmatpush3.msra.mxu1 %v5606_v52  ;;  %4477 = vmatprep.subr.mxu0 %v5071_v0  ;;  %v5934_v41 = vand.u32 4294901760, %v2141_v29 }
 0x24c   : > { %4520 = vmatprep.subr.mxu1 %v5071_v0  ;;  %4478 = vmatpush3.msra.mxu0 %v1583_v31  ;;  %v5932_v31 = vand.u32 4294901760, %v2142_v28 }
 0x24d   : > { %4521 = vmatpush3.msra.mxu1 %v5617_v7  ;;  %4479 = vmatprep.subr.mxu0 %v5071_v0  ;;  %v5940_v44 = vsub.f32 %v2141_v29, %v5934_v41  ;;  %v2309_v29 = vsub.f32 %v6035_v42, %v2308_v27 }
 0x24e   : > { %4522 = vmatprep.subr.mxu1 %v5071_v0  ;;  %4480 = vmatpush3.msra.mxu0 %v1590_v48  ;;  %v5937_v43 = vsub.f32 %v2142_v28, %v5932_v31 }
 0x24f   : > { %4523 = vmatpush3.msra.mxu1 %v5629_v21  ;;  %4481 = vmatprep.subr.mxu0 %v5071_v0  ;;  %v2252_v51 = vand.u32 4294901760, %v5940_v44  ;;  %v2139_v21 = vld [vmem:[#allocation2 + $0x160] sm:$0xff] }
 0x250   : > { %4524 = vmatprep.subr.mxu1 %v5071_v0  ;;  %4482 = vmatpush3.msra.mxu0 %v1597_v59  ;;  %v2245_v48 = vand.u32 4294901760, %v5937_v43 }
 0x251   : > { %4525 = vmatpush3.msra.mxu1 %v5636_v40  ;;  %4483 = vmatprep.subr.mxu0 %v5071_v0  ;;  %v2253_v59 = vsub.f32 %v5940_v44, %v2252_v51  ;;  %v5961_v40 = vand.u32 4294901760, %v2139_v21 }
 0x252   : > { %4526 = vmatprep.subr.mxu1 %v5071_v0  ;;  %4484 = vmatpush3.msra.mxu0 %v1604_v15  ;;  %v2246_v52 = vsub.f32 %v5937_v43, %v2245_v48  ;;  %v2140_v15 = vld [vmem:[#allocation2 + $0x168] sm:$0xff] }
 0x253   : > { %4527 = vmatpush3.msra.mxu1 %v5649_v1  ;;  %4485 = vmatprep.subr.mxu0 %v5071_v0  ;;  %v2254_v7 = vand.u32 4294901760, %v2253_v59  ;;  %v5956_v16 = vand.u32 4294901760, %v2140_v15  ;;  %v5967_v1 = vsub.f32 %v2139_v21, %v5961_v40 }
 0x254   : > { %4528 = vmatprep.subr.mxu1 %v5071_v0  ;;  %4486 = vmatpush3.msra.mxu0 %v1611_v39  ;;  %v2247_v62 = vand.u32 4294901760, %v2246_v52 }
 0x255   : > { %4529 = vmatpush3.msra.mxu1 %v5659_v60  ;;  %4487 = vmatprep.subr.mxu0 %v5071_v0  ;;  %v5959_v39 = vsub.f32 %v2140_v15, %v5956_v16  ;;  %v2266_v60 = vand.u32 4294901760, %v5967_v1  ;;  %v2310_v15 = vand.u32 4294901760, %v2309_v29 }
 0x256   : > { %4530 = vmatprep.subr.mxu1 %v5071_v0  ;;  %4488 = vmatpush3.msra.mxu0 %v1618_v4  ;;  %v5969_v4 = vand.u32 4294901760, %v2138_v50 }
 0x257   : > { %4531 = vmatpush3.msra.mxu1 %v5674_v20  ;;  %4489 = vmatprep.subr.mxu0 %v5071_v0  ;;  %v2259_v63 = vand.u32 4294901760, %v5959_v39  ;;  %v2136_v20 = vld [vmem:[#allocation2 + $0x148] sm:$0xff]  ;;  %v2267_v45 = vsub.f32 %v5967_v1, %v2266_v60 }
 0x258   : > { %4532 = vmatprep.subr.mxu1 %v5071_v0  ;;  %4490 = vmatpush3.msra.mxu0 %v1625_v57  ;;  %v2137_v57 = vld [vmem:[#allocation2 + $0x150] sm:$0xff] }
 0x259   : > { %4533 = vmatpush3.msra.mxu1 %v5687_v9  ;;  %4491 = vmatprep.subr.mxu0 %v5071_v0  ;;  %v2260_v58 = vsub.f32 %v5959_v39, %v2259_v63  ;;  %v5980_v19 = vand.u32 4294901760, %v2137_v57  ;;  %v2268_v47 = vand.u32 4294901760, %v2267_v45 }
 0x25a   : > { %4534 = vmatprep.subr.mxu1 %v5071_v0  ;;  %4492 = vmatpush3.msra.mxu0 %v1632_v12  ;;  %v5978_v12 = vsub.f32 %v2138_v50, %v5969_v4 }
 0x25b   : > { %4535 = vmatpush3.msra.mxu1 %v5695_v33  ;;  %4493 = vmatprep.subr.mxu0 %v5071_v0  ;;  %v5992_v33 = vand.u32 4294901760, %v2136_v20 }
 0x25c   : > { %4536 = vmatprep.subr.mxu1 %v5071_v0  ;;  %4494 = vmatpush3.msra.mxu0 %v1639_v3  ;;  %v2261_v3 = vand.u32 4294901760, %v2260_v58  ;;  %v2273_v9 = vand.u32 4294901760, %v5978_v12 }
 0x25d   : > { %4537 = vmatpush3.msra.mxu1 %v5709_v55  ;;  %4495 = vmatprep.subr.mxu0 %v5071_v0  ;;  %v6003_v25 = vsub.f32 %v2136_v20, %v5992_v33  ;;  %v2128_v20 = vld [vmem:[#allocation2 + $0x108] sm:$0xff] }
 0x25e   : > { %4538 = vmatprep.subr.mxu1 %v5071_v0  ;;  %4496 = vmatpush3.msra.mxu0 %v1646_v32  ;;  %v5989_v32 = vsub.f32 %v2137_v57, %v5980_v19  ;;  %v2274_v55 = vsub.f32 %v5978_v12, %v2273_v9 }
 0x25f   : > { %4539 = vmatpush3.msra.mxu1 %v5719_v26  ;;  %4497 = vmatprep.subr.mxu0 %v5071_v0  ;;  %v2134_v26 = vld [vmem:[#allocation2 + $0x138] sm:$0xff]  ;;  %v2287_v10 = vand.u32 4294901760, %v6003_v25 }
 0x260   : > { %4540 = vmatprep.subr.mxu1 %v5071_v0  ;;  %4498 = vmatpush3.msra.mxu0 %v1653_v56  ;;  %v2280_v56 = vand.u32 4294901760, %v5989_v32  ;;  %v2275_v46 = vand.u32 4294901760, %v2274_v55  ;;  %v6012_v38 = vand.u32 4294901760, %v2134_v26 }
 0x261   : > { %4541 = vmatpush3.msra.mxu1 %v5734_v49  ;;  %4542 = vmatprep.mubr.msk.f32.mxu1 %vm5072_vm0, %v5071_v0  ;;  %v2288_v8 = vsub.f32 %v6003_v25, %v2287_v10 }
 0x262   : > { %4499 = vmatprep.subr.mxu0 %v5071_v0  ;;  %4543 = vmatmul.mubr.f32.vlgmr.msra.gmra.mxu1 %v5765_v53  ;;  %v2281_v49 = vsub.f32 %v5989_v32, %v2280_v56  ;;  %v6020_v6 = vsub.f32 %v2134_v26, %v6012_v38  ;;  %v2127_v26 = vld [vmem:[#allocation2 + $0x100] sm:$0xff] }
 0x263   : > { %4500 = vmatpush3.msra.mxu0 %v1660_v14  ;;  %4507 = vmatprep.mubr.msk.f32.mxu0 %vm5072_vm0, %v5071_v0  ;;  %v5999_v14 = vand.u32 4294901760, %v2135_v34 }
 0x264   : > { %4501 = vmatprep.subr.mxu0 %v5071_v0  ;;  %4580 = vmatprep.subr.mxu1 %v5071_v0  ;;  %v2282_v54 = vand.u32 4294901760, %v2281_v49  ;;  %v2301_v37 = vand.u32 4294901760, %v6020_v6 }
 0x265   : > { %4502 = vmatpush3.msra.mxu0 %v6759_v22  ;;  %4612 = vmatprep.mubr.msk.f32.mxu1 %vm5072_vm0, %v5071_v0  ;;  %v6010_v30 = vsub.f32 %v2135_v34, %v5999_v14  ;;  %v6047_v22 = vsub.f32 %v2132_v17, %v6037_v11 }
 0x266   : > { %4503 = vmatprep.subr.mxu0 %v5071_v0  ;;  %4581 = vmatpush3.msra.mxu1 %v2247_v62  ;;  %v2302_v61 = vsub.f32 %v6020_v6, %v2301_v37 }
 0x267   : > { %4504 = vmatpush3.msra.mxu0 %v6760_v23  ;;  %4582 = vmatprep.subr.mxu1 %v5071_v0  ;;  %v2294_v5 = vand.u32 4294901760, %v6010_v30  ;;  %v6050_v23 = vand.u32 4294901760, %v2131_v2  ;;  %v2315_v52 = vand.u32 4294901760, %v6047_v22 }
 0x268   : > { %4505 = vmatprep.subr.mxu0 %v5071_v0  ;;  %4583 = vmatpush3.msra.mxu1 %v2254_v7  ;;  %v2303_v28 = vand.u32 4294901760, %v2302_v61  ;;  %v2129_v7 = vld [vmem:[#allocation2 + $0x110] sm:$0xff] }
 0x269   : > { %4506 = vmatpush3.msra.mxu0 %v6761_v24  ;;  %4584 = vmatprep.subr.mxu1 %v5071_v0  ;;  %v2295_v18 = vsub.f32 %v6010_v30, %v2294_v5  ;;  %v2130_v24 = vld [vmem:[#allocation2 + $0x118] sm:$0xff]  ;;  %v6062_v62 = vsub.f32 %v2131_v2, %v6050_v23  ;;  %v2316_v21 = vsub.f32 %v6047_v22, %v2315_v52  ;;  %v6072_v57 = vand.u32 4294901760, %v2129_v7 }
 0x26a   : > { %4508 = vmatmul.mubr.f32.vlgmr.msra.gmra.mxu0 %v5765_v53  ;;  %4545 = vmatprep.subr.mxu0 %v5071_v0  ;;  %v2289_v53 = vand.u32 4294901760, %v2288_v8  ;;  %v6058_v59 = vand.u32 4294901760, %v2130_v24 }
 0x26b   : > { %4577 = vmatprep.mubr.msk.f32.mxu0 %vm5072_vm0, %v5071_v0  ;;  %4546 = vmatpush3.msra.mxu0 %v5932_v31  ;;  %v2296_v13 = vand.u32 4294901760, %v2295_v18  ;;  %v2322_v58 = vand.u32 4294901760, %v6062_v62  ;;  %v6080_v34 = vsub.f32 %v2129_v7, %v6072_v57 }
 0x26c   : > { %4547 = vmatprep.subr.mxu0 %v5071_v0  ;;  %4585 = vmatpush3.msra.mxu1 %v2261_v3  ;;  %v6070_v50 = vsub.f32 %v2130_v24, %v6058_v59  ;;  %v2317_v3 = vand.u32 4294901760, %v2316_v21 }
 0x26d   : > { %4548 = vmatpush3.msra.mxu0 %v5934_v41  ;;  %4586 = vmatprep.subr.mxu1 %v5071_v0  ;;  %v2323_v55 = vsub.f32 %v6062_v62, %v2322_v58  ;;  %v6751_v49 = vand.u32 4294901760, %v6080_v34 }
 0x26e   : > { %4549 = vmatprep.subr.mxu0 %v5071_v0  ;;  %4587 = vmatpush3.msra.mxu1 %v2268_v47  ;;  %v2329_v45 = vand.u32 4294901760, %v6070_v50  ;;  %v6082_v47 = vand.u32 4294901760, %v2128_v20 }
 0x26f   : > { %4550 = vmatpush3.msra.mxu0 %v5956_v16  ;;  %4588 = vmatprep.subr.mxu1 %v5071_v0  ;;  %v2324_v8 = vand.u32 4294901760, %v2323_v55  ;;  %v2337_v18 = vsub.f32 %v6080_v34, %v6751_v49 }
 0x270   : > { %4551 = vmatprep.subr.mxu0 %v5071_v0  ;;  %4589 = vmatpush3.msra.mxu1 %v2275_v46  ;;  %v2330_v46 = vsub.f32 %v6070_v50, %v2329_v45  ;;  %v6095_v36 = vsub.f32 %v2128_v20, %v6082_v47 }
 0x271   : > { %4552 = vmatpush3.msra.mxu0 %v5961_v40  ;;  %4590 = vmatprep.subr.mxu1 %v5071_v0 }
 0x272   : > { %4553 = vmatprep.subr.mxu0 %v5071_v0  ;;  %4591 = vmatpush3.msra.mxu1 %v2282_v54  ;;  %v6097_v54 = vand.u32 4294901760, %v2127_v26  ;;  %v2331_v17 = vand.u32 4294901760, %v2330_v46 }
 0x273   : > { %4554 = vmatpush3.msra.mxu0 %v5969_v4  ;;  %4592 = vmatprep.subr.mxu1 %v5071_v0 }
 0x274   : > { %4555 = vmatprep.subr.mxu0 %v5071_v0  ;;  %4593 = vmatpush3.msra.mxu1 %v2289_v53  ;;  %v6750_v53 = vand.u32 4294901760, %v6095_v36  ;;  %v6107_v2 = vsub.f32 %v2127_v26, %v6097_v54 }
 0x275   : > { %4556 = vmatpush3.msra.mxu0 %v5980_v19  ;;  %4594 = vmatprep.subr.mxu1 %v5071_v0 }
 0x276   : > { %4557 = vmatprep.subr.mxu0 %v5071_v0  ;;  %4595 = vmatpush3.msra.mxu1 %v2296_v13  ;;  %v2338_v13 = vand.u32 4294901760, %v2337_v18  ;;  %v2344_v61 = vsub.f32 %v6095_v36, %v6750_v53  ;;  %v6749_v24 = vand.u32 4294901760, %v6107_v2 }
 0x277   : > { %4558 = vmatpush3.msra.mxu0 %v5992_v33  ;;  %4596 = vmatprep.subr.mxu1 %v5071_v0 }
 0x278   : > { %4559 = vmatprep.subr.mxu0 %v5071_v0  ;;  %4597 = vmatpush3.msra.mxu1 %v2303_v28  ;;  %v2345_v28 = vand.u32 4294901760, %v2344_v61  ;;  %v2351_v29 = vsub.f32 %v6107_v2, %v6749_v24 }
 0x279   : > { %4560 = vmatpush3.msra.mxu0 %v5999_v14  ;;  %4598 = vmatprep.subr.mxu1 %v5071_v0 }
 0x27a   : > { %4561 = vmatprep.subr.mxu0 %v5071_v0  ;;  %4599 = vmatpush3.msra.mxu1 %v2310_v15  ;;  %v2352_v7 = vand.u32 4294901760, %v2351_v29 }
 0x27b   : > { %4562 = vmatpush3.msra.mxu0 %v6012_v38  ;;  %4600 = vmatprep.subr.mxu1 %v5071_v0 }
 0x27c   : > { %4563 = vmatprep.subr.mxu0 %v5071_v0  ;;  %4601 = vmatpush3.msra.mxu1 %v2317_v3 }
 0x27d   : > { %4564 = vmatpush3.msra.mxu0 %v6022_v35  ;;  %4602 = vmatprep.subr.mxu1 %v5071_v0 }
 0x27e   : > { %4565 = vmatprep.subr.mxu0 %v5071_v0  ;;  %4603 = vmatpush3.msra.mxu1 %v2324_v8 }
 0x27f   : > { %4566 = vmatpush3.msra.mxu0 %v6037_v11  ;;  %4604 = vmatprep.subr.mxu1 %v5071_v0 }
 0x280   : > { %4567 = vmatprep.subr.mxu0 %v5071_v0  ;;  %4605 = vmatpush3.msra.mxu1 %v2331_v17  ;;  %v3665_v17 = vld [vmem:[%s6738_s3 + $0x1] ss:$0 sm:$0xff] }
 0x281   : > { %4568 = vmatpush3.msra.mxu0 %v6050_v23  ;;  %4606 = vmatprep.subr.mxu1 %v5071_v0 }
 0x282   : > { %4569 = vmatprep.subr.mxu0 %v5071_v0  ;;  %4607 = vmatpush3.msra.mxu1 %v2338_v13 }
 0x283   : > { %4570 = vmatpush3.msra.mxu0 %v6058_v59  ;;  %4608 = vmatprep.subr.mxu1 %v5071_v0 }
 0x284   : > { %4571 = vmatprep.subr.mxu0 %v5071_v0  ;;  %4609 = vmatpush3.msra.mxu1 %v2345_v28 }
 0x285   : > { %4572 = vmatpush3.msra.mxu0 %v6072_v57  ;;  %4610 = vmatprep.subr.mxu1 %v5071_v0 }
 0x286   : > { %4573 = vmatprep.subr.mxu0 %v5071_v0  ;;  %4611 = vmatpush3.msra.mxu1 %v2352_v7 }
 0x287   : > { %4574 = vmatpush3.msra.mxu0 %v6082_v47  ;;  %4650 = vmatprep.subr.mxu1 %v5071_v0 }
 0x288   : > { %4575 = vmatprep.subr.mxu0 %v5071_v0 }
 0x289   : > { %4576 = vmatpush3.msra.mxu0 %v6097_v54 }
 0x28a   : > { %4615 = vmatprep.subr.mxu0 %v5071_v0 }
 0x2e0   : > { %v1720_v15 = vpop.f32.mrf.mxu1 }
 0x2e2   : > { %v4404_v21 = vpop.f32.mrf.mxu1 }
 0x2e8   : > { %v1569_v20 = vpop.f32.mrf.mxu0 }
 0x2e9   : > { %v1570_v18 = vadd.f32 %v3665_v17, %v1569_v20 }
 0x2ea   : > { %v4369_v3 = vpop.f32.mrf.mxu0 }
 0x2eb   : > { %v1721_v61 = vadd.f32 %v1720_v15, %v1570_v18 }
 0x300   : > { %v1913_v55 = vpop.f32.mrf.mxu1 }
 0x302   : > { %v4474_v26 = vpop.f32.mrf.mxu1 }
 0x309   : > { %v1824_v46 = vpop.f32.mrf.mxu0 }
 0x30a   : > { %v1825_v29 = vadd.f32 %v1824_v46, %v1721_v61 }
 0x30b   : > { %v4439_v8 = vpop.f32.mrf.mxu0 }
 0x30c   : > { %v1914_v7 = vadd.f32 %v1913_v55, %v1825_v29  ;;  %v2801_v55 = vld [vmem:[%s6739_s4 + $0x30] sm:$0xff] }
 0x322   : > { %v2119_v13 = vpop.f32.mrf.mxu1 }
 0x324   : > { %v4544_v28 = vpop.f32.mrf.mxu1 }
 0x325   : > { %v2800_v28 = vld [vmem:[%s6739_s4 + $0x28] sm:$0xff] }
 0x32a   : > { %v2032_v24 = vpop.f32.mrf.mxu0 }
 0x32b   : > { %v2033_v53 = vadd.f32 %v2032_v24, %v1914_v7 }
 0x32c   : > { %v4509_v21 = vpop.f32.mrf.mxu0 }
 0x32d   : > { %v2120_v49 = vadd.f32 %v2119_v13, %v2033_v53  ;;  %v6415_v13 = vand.u32 4294901760, %v2801_v55 }
 0x32f   : > { %5006 = vtanh.f32 %v2120_v49  ;;  %v6431_v21 = vsub.f32 %v2801_v55, %v6415_v13 }
 0x33c   : > { %v5007_v3 = vpop.eup %5006 }
 0x33d   : > { %3666 = vst [vmem:[%s5399_s15 + $0x10] sm:$0xff] %v5007_v3  ;;  %v6128_v26 = vand.u32 4294901760, %v5007_v3 }
 0x33f   : > { %4613 = vmatmul.mubr.f32.vlgmr.msra.gmra.mxu1 %v6128_v26  ;;  %v6132_v8 = vsub.f32 %v5007_v3, %v6128_v26  ;;  %v6433_v3 = vand.u32 4294901760, %v2800_v28 }
 0x340   : > { %4651 = vmatpush3.msra.mxu1 %v5932_v31  ;;  %4682 = vmatprep.mubr.msk.f32.mxu1 %vm5072_vm0, %v5071_v0 }
 0x341   : > { %4652 = vmatprep.subr.mxu1 %v5071_v0  ;;  %v2234_v24 = vand.u32 4294901760, %v6132_v8 }
 0x342   : > { %4653 = vmatpush3.msra.mxu1 %v5934_v41 }
 0x343   : > { %4654 = vmatprep.subr.mxu1 %v5071_v0  ;;  %v2235_v49 = vsub.f32 %v6132_v8, %v2234_v24 }
 0x344   : > { %4655 = vmatpush3.msra.mxu1 %v5956_v16 }
 0x345   : > { %4656 = vmatprep.subr.mxu1 %v5071_v0  ;;  %v2236_v53 = vand.u32 4294901760, %v2235_v49 }
 0x346   : > { %4657 = vmatpush3.msra.mxu1 %v5961_v40 }
 0x347   : > { %4658 = vmatprep.subr.mxu1 %v5071_v0  ;;  %4578 = vmatmul.mubr.f32.vlgmr.msra.gmra.mxu0 %v2236_v53  ;;  %v2975_v53 = vand.u32 4294901760, %v6431_v21 }
 0x348   : > { %4616 = vmatpush3.msra.mxu0 %v5937_v43  ;;  %4659 = vmatpush3.msra.mxu1 %v5969_v4  ;;  %v6764_v43 = vand.u32 4294901760, %v6107_v2 }
 0x349   : > { %4617 = vmatprep.subr.mxu0 %v5071_v0  ;;  %4660 = vmatprep.subr.mxu1 %v5071_v0 }
 0x34a   : > { %4618 = vmatpush3.msra.mxu0 %v5940_v44  ;;  %4661 = vmatpush3.msra.mxu1 %v5980_v19  ;;  %v2810_v44 = vld [vmem:[%s6739_s4 + $0x78] sm:$0xff] }
 0x34b   : > { %4619 = vmatprep.subr.mxu0 %v5071_v0  ;;  %4662 = vmatprep.subr.mxu1 %v5071_v0 }
 0x34c   : > { %4620 = vmatpush3.msra.mxu0 %v5959_v39  ;;  %4663 = vmatpush3.msra.mxu1 %v5992_v33 }
 0x34d   : > { %4621 = vmatprep.subr.mxu0 %v5071_v0  ;;  %4664 = vmatprep.subr.mxu1 %v5071_v0 }
 0x34e   : > { %4622 = vmatpush3.msra.mxu0 %v5967_v1  ;;  %4665 = vmatpush3.msra.mxu1 %v5999_v14 }
 0x34f   : > { %4623 = vmatprep.subr.mxu0 %v5071_v0  ;;  %4666 = vmatprep.subr.mxu1 %v5071_v0 }
 0x350   : > { %4624 = vmatpush3.msra.mxu0 %v5978_v12  ;;  %4667 = vmatpush3.msra.mxu1 %v6012_v38 }
 0x351   : > { %4625 = vmatprep.subr.mxu0 %v5071_v0  ;;  %4668 = vmatprep.subr.mxu1 %v5071_v0 }
 0x352   : > { %4626 = vmatpush3.msra.mxu0 %v5989_v32  ;;  %4669 = vmatpush3.msra.mxu1 %v6022_v35 }
 0x353   : > { %4627 = vmatprep.subr.mxu0 %v5071_v0  ;;  %4670 = vmatprep.subr.mxu1 %v5071_v0 }
 0x354   : > { %4628 = vmatpush3.msra.mxu0 %v6003_v25  ;;  %4671 = vmatpush3.msra.mxu1 %v6037_v11  ;;  %v2806_v25 = vld [vmem:[%s6739_s4 + $0x58] sm:$0xff] }
 0x355   : > { %4629 = vmatprep.subr.mxu0 %v5071_v0  ;;  %4672 = vmatprep.subr.mxu1 %v5071_v0 }
 0x356   : > { %4630 = vmatpush3.msra.mxu0 %v6010_v30  ;;  %4673 = vmatpush3.msra.mxu1 %v6050_v23 }
 0x357   : > { %4631 = vmatprep.subr.mxu0 %v5071_v0  ;;  %4674 = vmatprep.subr.mxu1 %v5071_v0 }
 0x358   : > { %4632 = vmatpush3.msra.mxu0 %v6020_v6  ;;  %4675 = vmatpush3.msra.mxu1 %v6058_v59 }
 0x359   : > { %4633 = vmatprep.subr.mxu0 %v5071_v0  ;;  %4676 = vmatprep.subr.mxu1 %v5071_v0 }
 0x35a   : > { %4634 = vmatpush3.msra.mxu0 %v6035_v42  ;;  %4677 = vmatpush3.msra.mxu1 %v6072_v57 }
 0x35b   : > { %4635 = vmatprep.subr.mxu0 %v5071_v0  ;;  %4678 = vmatprep.subr.mxu1 %v5071_v0 }
 0x35c   : > { %4636 = vmatpush3.msra.mxu0 %v6047_v22  ;;  %4679 = vmatpush3.msra.mxu1 %v6082_v47 }
 0x35d   : > { %4637 = vmatprep.subr.mxu0 %v5071_v0  ;;  %4680 = vmatprep.subr.mxu1 %v5071_v0 }
 0x35e   : > { %4638 = vmatpush3.msra.mxu0 %v6062_v62  ;;  %4681 = vmatpush3.msra.mxu1 %v6097_v54  ;;  %v2803_v62 = vld [vmem:[%s6739_s4 + $0x40] sm:$0xff] }
 0x35f   : > { %4639 = vmatprep.subr.mxu0 %v5071_v0  ;;  %4683 = vmatmul.mubr.f32.vlgmr.msra.gmra.mxu1 %v2234_v24 }
 0x360   : > { %4720 = vmatprep.subr.mxu1 %v5071_v0  ;;  %4640 = vmatpush3.msra.mxu0 %v6070_v50 }
 0x361   : > { %4721 = vmatpush3.msra.mxu1 %v5932_v31  ;;  %4641 = vmatprep.subr.mxu0 %v5071_v0  ;;  %v6762_v31 = vand.u32 4294901760, %v6080_v34 }
 0x362   : > { %4722 = vmatprep.subr.mxu1 %v5071_v0  ;;  %4642 = vmatpush3.msra.mxu0 %v6080_v34 }
 0x363   : > { %4723 = vmatpush3.msra.mxu1 %v5934_v41  ;;  %4643 = vmatprep.subr.mxu0 %v5071_v0  ;;  %v6763_v41 = vand.u32 4294901760, %v6095_v36 }
 0x364   : > { %4724 = vmatprep.subr.mxu1 %v5071_v0  ;;  %4644 = vmatpush3.msra.mxu0 %v6095_v36 }
 0x365   : > { %4725 = vmatpush3.msra.mxu1 %v5956_v16  ;;  %4645 = vmatprep.subr.mxu0 %v5071_v0 }
 0x366   : > { %4726 = vmatprep.subr.mxu1 %v5071_v0  ;;  %4646 = vmatpush3.msra.mxu0 %v6107_v2 }
 0x367   : > { %4647 = vmatprep.mubr.msk.f32.mxu0 %vm5072_vm0, %v5071_v0  ;;  %4727 = vmatpush3.msra.mxu1 %v5961_v40 }
 0x368   : > { %4648 = vmatmul.mubr.f32.vlgmr.msra.gmra.mxu0 %v6132_v8  ;;  %4685 = vmatprep.subr.mxu0 %v5071_v0  ;;  %v2799_v8 = vld [vmem:[%s6739_s4 + $0x20] sm:$0xff] }
 0x369   : > { %4728 = vmatprep.subr.mxu1 %v5071_v0  ;;  %4686 = vmatpush3.msra.mxu0 %v2245_v48  ;;  %v2809_v48 = vld [vmem:[%s6739_s4 + $0x70] sm:$0xff] }
 0x36a   : > { %4729 = vmatpush3.msra.mxu1 %v5969_v4  ;;  %4687 = vmatprep.subr.mxu0 %v5071_v0  ;;  %v6303_v16 = vand.u32 4294901760, %v2809_v48 }
 0x36b   : > { %4730 = vmatprep.subr.mxu1 %v5071_v0  ;;  %4688 = vmatpush3.msra.mxu0 %v2252_v51  ;;  %v6301_v51 = vand.u32 4294901760, %v2810_v44 }
 0x36c   : > { %4731 = vmatpush3.msra.mxu1 %v5980_v19  ;;  %4689 = vmatprep.subr.mxu0 %v5071_v0  ;;  %v6309_v40 = vsub.f32 %v2809_v48, %v6303_v16  ;;  %v2976_v48 = vsub.f32 %v6431_v21, %v2975_v53 }
 0x36d   : > { %4732 = vmatprep.subr.mxu1 %v5071_v0  ;;  %4690 = vmatpush3.msra.mxu0 %v2259_v63  ;;  %v6306_v39 = vsub.f32 %v2810_v44, %v6301_v51 }
 0x36e   : > { %4733 = vmatpush3.msra.mxu1 %v5992_v33  ;;  %4691 = vmatprep.subr.mxu0 %v5071_v0  ;;  %v2919_v1 = vand.u32 4294901760, %v6309_v40  ;;  %v2807_v33 = vld [vmem:[%s6739_s4 + $0x60] sm:$0xff] }
 0x36f   : > { %4734 = vmatprep.subr.mxu1 %v5071_v0  ;;  %4692 = vmatpush3.msra.mxu0 %v2266_v60  ;;  %v2912_v63 = vand.u32 4294901760, %v6306_v39 }
 0x370   : > { %4735 = vmatpush3.msra.mxu1 %v5999_v14  ;;  %4693 = vmatprep.subr.mxu0 %v5071_v0  ;;  %v2920_v60 = vsub.f32 %v6309_v40, %v2919_v1  ;;  %v6336_v14 = vand.u32 4294901760, %v2807_v33 }
 0x371   : > { %4736 = vmatprep.subr.mxu1 %v5071_v0  ;;  %4694 = vmatpush3.msra.mxu0 %v2273_v9  ;;  %v2913_v4 = vsub.f32 %v6306_v39, %v2912_v63  ;;  %v2808_v9 = vld [vmem:[%s6739_s4 + $0x68] sm:$0xff] }
 0x372   : > { %4737 = vmatpush3.msra.mxu1 %v6012_v38  ;;  %4695 = vmatprep.subr.mxu0 %v5071_v0  ;;  %v2921_v19 = vand.u32 4294901760, %v2920_v60  ;;  %v6328_v32 = vand.u32 4294901760, %v2808_v9  ;;  %v6345_v38 = vsub.f32 %v2807_v33, %v6336_v14 }
 0x373   : > { %4738 = vmatprep.subr.mxu1 %v5071_v0  ;;  %4696 = vmatpush3.msra.mxu0 %v2280_v56  ;;  %v2914_v12 = vand.u32 4294901760, %v2913_v4 }
 0x374   : > { %4739 = vmatpush3.msra.mxu1 %v6022_v35  ;;  %4697 = vmatprep.subr.mxu0 %v5071_v0  ;;  %v6334_v56 = vsub.f32 %v2808_v9, %v6328_v32  ;;  %v2933_v35 = vand.u32 4294901760, %v6345_v38  ;;  %v2977_v9 = vand.u32 4294901760, %v2976_v48 }
 0x375   : > { %4740 = vmatprep.subr.mxu1 %v5071_v0  ;;  %4698 = vmatpush3.msra.mxu0 %v2287_v10  ;;  %v6347_v10 = vand.u32 4294901760, %v2806_v25 }
 0x376   : > { %4741 = vmatpush3.msra.mxu1 %v6037_v11  ;;  %4699 = vmatprep.subr.mxu0 %v5071_v0  ;;  %v2926_v30 = vand.u32 4294901760, %v6334_v56  ;;  %v2804_v11 = vld [vmem:[%s6739_s4 + $0x48] sm:$0xff]  ;;  %v2934_v22 = vsub.f32 %v6345_v38, %v2933_v35 }
 0x377   : > { %4742 = vmatprep.subr.mxu1 %v5071_v0  ;;  %4700 = vmatpush3.msra.mxu0 %v2294_v5  ;;  %v2805_v5 = vld [vmem:[%s6739_s4 + $0x50] sm:$0xff] }
 0x378   : > { %4743 = vmatpush3.msra.mxu1 %v6050_v23  ;;  %4701 = vmatprep.subr.mxu0 %v5071_v0  ;;  %v2927_v6 = vsub.f32 %v6334_v56, %v2926_v30  ;;  %v6361_v42 = vand.u32 4294901760, %v2805_v5  ;;  %v2935_v50 = vand.u32 4294901760, %v2934_v22 }
 0x379   : > { %4744 = vmatprep.subr.mxu1 %v5071_v0  ;;  %4702 = vmatpush3.msra.mxu0 %v2301_v37  ;;  %v6359_v37 = vsub.f32 %v2806_v25, %v6347_v10 }
 0x37a   : > { %4745 = vmatpush3.msra.mxu1 %v6058_v59  ;;  %4703 = vmatprep.subr.mxu0 %v5071_v0  ;;  %v6376_v59 = vand.u32 4294901760, %v2804_v11 }
 0x37b   : > { %4746 = vmatprep.subr.mxu1 %v5071_v0  ;;  %4704 = vmatpush3.msra.mxu0 %v2308_v27  ;;  %v2928_v27 = vand.u32 4294901760, %v2927_v6  ;;  %v2940_v23 = vand.u32 4294901760, %v6359_v37 }
 0x37c   : > { %4747 = vmatpush3.msra.mxu1 %v6072_v57  ;;  %4705 = vmatprep.subr.mxu0 %v5071_v0  ;;  %v6390_v34 = vsub.f32 %v2804_v11, %v6376_v59  ;;  %v2796_v11 = vld [vmem:[%s6739_s4 + $0x8] sm:$0xff] }
 0x37d   : > { %4748 = vmatprep.subr.mxu1 %v5071_v0  ;;  %4706 = vmatpush3.msra.mxu0 %v2315_v52  ;;  %v6373_v52 = vsub.f32 %v2805_v5, %v6361_v42  ;;  %v2941_v57 = vsub.f32 %v6359_v37, %v2940_v23 }
 0x37e   : > { %4749 = vmatpush3.msra.mxu1 %v6082_v47  ;;  %4707 = vmatprep.subr.mxu0 %v5071_v0  ;;  %v2802_v47 = vld [vmem:[%s6739_s4 + $0x38] sm:$0xff]  ;;  %v2954_v20 = vand.u32 4294901760, %v6390_v34 }
 0x37f   : > { %4750 = vmatprep.subr.mxu1 %v5071_v0  ;;  %4708 = vmatpush3.msra.mxu0 %v2322_v58  ;;  %v2947_v58 = vand.u32 4294901760, %v6373_v52  ;;  %v2942_v36 = vand.u32 4294901760, %v2941_v57  ;;  %v6402_v15 = vand.u32 4294901760, %v2802_v47 }
 0x380   : > { %4751 = vmatpush3.msra.mxu1 %v6097_v54  ;;  %4752 = vmatprep.mubr.msk.f32.mxu1 %vm5072_vm0, %v5071_v0  ;;  %v2955_v61 = vsub.f32 %v6390_v34, %v2954_v20 }
 0x381   : > { %4709 = vmatprep.subr.mxu0 %v5071_v0  ;;  %4753 = vmatmul.mubr.f32.vlgmr.msra.gmra.mxu1 %v6128_v26  ;;  %v2948_v54 = vsub.f32 %v6373_v52, %v2947_v58  ;;  %v6413_v18 = vsub.f32 %v2802_v47, %v6402_v15  ;;  %v2795_v47 = vld [vmem:[%s6739_s4] sm:$0xff] }
 0x382   : > { %4710 = vmatpush3.msra.mxu0 %v2329_v45  ;;  %4717 = vmatprep.mubr.msk.f32.mxu0 %vm5072_vm0, %v5071_v0  ;;  %v6386_v45 = vand.u32 4294901760, %v2803_v62 }
 0x383   : > { %4711 = vmatprep.subr.mxu0 %v5071_v0  ;;  %4790 = vmatprep.subr.mxu1 %v5071_v0  ;;  %v2949_v46 = vand.u32 4294901760, %v2948_v54  ;;  %v2968_v7 = vand.u32 4294901760, %v6413_v18 }
 0x384   : > { %4712 = vmatpush3.msra.mxu0 %v6762_v31  ;;  %4822 = vmatprep.mubr.msk.f32.mxu1 %vm5072_vm0, %v5071_v0  ;;  %v6400_v2 = vsub.f32 %v2803_v62, %v6386_v45  ;;  %v6446_v31 = vsub.f32 %v2800_v28, %v6433_v3 }
 0x385   : > { %4713 = vmatprep.subr.mxu0 %v5071_v0  ;;  %4791 = vmatpush3.msra.mxu1 %v2914_v12  ;;  %v2969_v49 = vsub.f32 %v6413_v18, %v2968_v7 }
 0x386   : > { %4714 = vmatpush3.msra.mxu0 %v6763_v41  ;;  %4792 = vmatprep.subr.mxu1 %v5071_v0  ;;  %v2961_v17 = vand.u32 4294901760, %v6400_v2  ;;  %v6449_v41 = vand.u32 4294901760, %v2799_v8  ;;  %v2982_v4 = vand.u32 4294901760, %v6446_v31 }
 0x387   : > { %4715 = vmatprep.subr.mxu0 %v5071_v0  ;;  %4793 = vmatpush3.msra.mxu1 %v2921_v19  ;;  %v2970_v44 = vand.u32 4294901760, %v2969_v49  ;;  %v2797_v19 = vld [vmem:[%s6739_s4 + $0x10] sm:$0xff] }
 0x388   : > { %4716 = vmatpush3.msra.mxu0 %v6764_v43  ;;  %4794 = vmatprep.subr.mxu1 %v5071_v0  ;;  %v2962_v29 = vsub.f32 %v6400_v2, %v2961_v17  ;;  %v2798_v43 = vld [vmem:[%s6739_s4 + $0x18] sm:$0xff]  ;;  %v6464_v12 = vsub.f32 %v2799_v8, %v6449_v41  ;;  %v2983_v33 = vsub.f32 %v6446_v31, %v2982_v4  ;;  %v6477_v5 = vand.u32 4294901760, %v2797_v19 }
 0x389   : > { %4718 = vmatmul.mubr.f32.vlgmr.msra.gmra.mxu0 %v6128_v26  ;;  %4755 = vmatprep.subr.mxu0 %v5071_v0  ;;  %v2956_v26 = vand.u32 4294901760, %v2955_v61  ;;  %v6460_v60 = vand.u32 4294901760, %v2798_v43 }
 0x38a   : > { %4787 = vmatprep.mubr.msk.f32.mxu0 %vm5072_vm0, %v5071_v0  ;;  %4756 = vmatpush3.msra.mxu0 %v6301_v51  ;;  %v2963_v24 = vand.u32 4294901760, %v2962_v29  ;;  %v2989_v6 = vand.u32 4294901760, %v6464_v12  ;;  %v6488_v62 = vsub.f32 %v2797_v19, %v6477_v5 }
 0x38b   : > { %4757 = vmatprep.subr.mxu0 %v5071_v0  ;;  %4795 = vmatpush3.msra.mxu1 %v2928_v27  ;;  %v6475_v25 = vsub.f32 %v2798_v43, %v6460_v60  ;;  %v2984_v27 = vand.u32 4294901760, %v2983_v33 }
 0x38c   : > { %4758 = vmatpush3.msra.mxu0 %v6303_v16  ;;  %4796 = vmatprep.subr.mxu1 %v5071_v0  ;;  %v2990_v57 = vsub.f32 %v6464_v12, %v2989_v6  ;;  %v6754_v54 = vand.u32 4294901760, %v6488_v62 }
 0x38d   : > { %4759 = vmatprep.subr.mxu0 %v5071_v0  ;;  %4797 = vmatpush3.msra.mxu1 %v2935_v50  ;;  %v2996_v22 = vand.u32 4294901760, %v6475_v25  ;;  %v6490_v50 = vand.u32 4294901760, %v2796_v11 }
 0x38e   : > { %4760 = vmatpush3.msra.mxu0 %v6328_v32  ;;  %4798 = vmatprep.subr.mxu1 %v5071_v0  ;;  %v2991_v61 = vand.u32 4294901760, %v2990_v57  ;;  %v3004_v29 = vsub.f32 %v6488_v62, %v6754_v54 }
 0x38f   : > { %4761 = vmatprep.subr.mxu0 %v5071_v0  ;;  %4799 = vmatpush3.msra.mxu1 %v2942_v36  ;;  %v2997_v36 = vsub.f32 %v6475_v25, %v2996_v22  ;;  %v6506_v55 = vsub.f32 %v2796_v11, %v6490_v50 }
 0x390   : > { %4762 = vmatpush3.msra.mxu0 %v6336_v14  ;;  %4800 = vmatprep.subr.mxu1 %v5071_v0 }
 0x391   : > { %4763 = vmatprep.subr.mxu0 %v5071_v0  ;;  %4801 = vmatpush3.msra.mxu1 %v2949_v46  ;;  %v6508_v46 = vand.u32 4294901760, %v2795_v47  ;;  %v2998_v28 = vand.u32 4294901760, %v2997_v36 }
 0x392   : > { %4764 = vmatpush3.msra.mxu0 %v6347_v10  ;;  %4802 = vmatprep.subr.mxu1 %v5071_v0 }
 0x393   : > { %4765 = vmatprep.subr.mxu0 %v5071_v0  ;;  %4803 = vmatpush3.msra.mxu1 %v2956_v26  ;;  %v6753_v26 = vand.u32 4294901760, %v6506_v55  ;;  %v6518_v8 = vsub.f32 %v2795_v47, %v6508_v46 }
 0x394   : > { %4766 = vmatpush3.msra.mxu0 %v6361_v42  ;;  %4804 = vmatprep.subr.mxu1 %v5071_v0 }
 0x395   : > { %4767 = vmatprep.subr.mxu0 %v5071_v0  ;;  %4805 = vmatpush3.msra.mxu1 %v2963_v24  ;;  %v3005_v24 = vand.u32 4294901760, %v3004_v29  ;;  %v3011_v49 = vsub.f32 %v6506_v55, %v6753_v26  ;;  %v6752_v43 = vand.u32 4294901760, %v6518_v8 }
 0x396   : > { %4768 = vmatpush3.msra.mxu0 %v6376_v59  ;;  %4806 = vmatprep.subr.mxu1 %v5071_v0 }
 0x397   : > { %4769 = vmatprep.subr.mxu0 %v5071_v0  ;;  %4807 = vmatpush3.msra.mxu1 %v2970_v44  ;;  %v3012_v44 = vand.u32 4294901760, %v3011_v49  ;;  %v3018_v48 = vsub.f32 %v6518_v8, %v6752_v43 }
 0x398   : > { %4770 = vmatpush3.msra.mxu0 %v6386_v45  ;;  %4808 = vmatprep.subr.mxu1 %v5071_v0 }
 0x399   : > { %4771 = vmatprep.subr.mxu0 %v5071_v0  ;;  %4809 = vmatpush3.msra.mxu1 %v2977_v9  ;;  %v3019_v19 = vand.u32 4294901760, %v3018_v48 }
 0x39a   : > { %4772 = vmatpush3.msra.mxu0 %v6402_v15  ;;  %4810 = vmatprep.subr.mxu1 %v5071_v0 }
 0x39b   : > { %4773 = vmatprep.subr.mxu0 %v5071_v0  ;;  %4811 = vmatpush3.msra.mxu1 %v2984_v27 }
 0x39c   : > { %4774 = vmatpush3.msra.mxu0 %v6415_v13  ;;  %4812 = vmatprep.subr.mxu1 %v5071_v0 }
 0x39d   : > { %4775 = vmatprep.subr.mxu0 %v5071_v0  ;;  %4813 = vmatpush3.msra.mxu1 %v2991_v61 }
 0x39e   : > { %4776 = vmatpush3.msra.mxu0 %v6433_v3  ;;  %4814 = vmatprep.subr.mxu1 %v5071_v0 }
 0x39f   : > { %4777 = vmatprep.subr.mxu0 %v5071_v0  ;;  %4815 = vmatpush3.msra.mxu1 %v2998_v28  ;;  %v3668_v28 = vld [vmem:[%s6738_s3 + $0x2] ss:$0 sm:$0xff] }
 0x3a0   : > { %4778 = vmatpush3.msra.mxu0 %v6449_v41  ;;  %4816 = vmatprep.subr.mxu1 %v5071_v0 }
 0x3a1   : > { %4779 = vmatprep.subr.mxu0 %v5071_v0  ;;  %4817 = vmatpush3.msra.mxu1 %v3005_v24 }
 0x3a2   : > { %4780 = vmatpush3.msra.mxu0 %v6460_v60  ;;  %4818 = vmatprep.subr.mxu1 %v5071_v0 }
 0x3a3   : > { %4781 = vmatprep.subr.mxu0 %v5071_v0  ;;  %4819 = vmatpush3.msra.mxu1 %v3012_v44 }
 0x3a4   : > { %4782 = vmatpush3.msra.mxu0 %v6477_v5  ;;  %4820 = vmatprep.subr.mxu1 %v5071_v0 }
 0x3a5   : > { %4783 = vmatprep.subr.mxu0 %v5071_v0  ;;  %4821 = vmatpush3.msra.mxu1 %v3019_v19 }
 0x3a6   : > { %4784 = vmatpush3.msra.mxu0 %v6490_v50  ;;  %4860 = vmatprep.subr.mxu1 %v5071_v0 }
 0x3a7   : > { %4785 = vmatprep.subr.mxu0 %v5071_v0 }
 0x3a8   : > { %4786 = vmatpush3.msra.mxu0 %v6508_v46 }
 0x3a9   : > { %4825 = vmatprep.subr.mxu0 %v5071_v0 }
 0x3ff   : > { %v2389_v9 = vpop.f32.mrf.mxu1 }
 0x401   : > { %v4614_v33 = vpop.f32.mrf.mxu1 }
 0x407   : > { %v2238_v11 = vpop.f32.mrf.mxu0 }
 0x408   : > { %v2239_v29 = vadd.f32 %v3668_v28, %v2238_v11 }
 0x409   : > { %v4579_v27 = vpop.f32.mrf.mxu0 }
 0x40a   : > { %v2390_v49 = vadd.f32 %v2389_v9, %v2239_v29 }
 0x41f   : > { %v2582_v57 = vpop.f32.mrf.mxu1 }
 0x421   : > { %v4684_v47 = vpop.f32.mrf.mxu1 }
 0x428   : > { %v2493_v36 = vpop.f32.mrf.mxu0 }
 0x429   : > { %v2494_v48 = vadd.f32 %v2493_v36, %v2390_v49 }
 0x42a   : > { %v4649_v61 = vpop.f32.mrf.mxu0 }
 0x42b   : > { %v2583_v19 = vadd.f32 %v2582_v57, %v2494_v48 }
 0x441   : > { %v2788_v24 = vpop.f32.mrf.mxu1 }
 0x443   : > { %v4754_v44 = vpop.f32.mrf.mxu1 }
 0x449   : > { %v2701_v43 = vpop.f32.mrf.mxu0 }
 0x44a   : > { %v2702_v26 = vadd.f32 %v2701_v43, %v2583_v19 }
 0x44b   : > { %v4719_v33 = vpop.f32.mrf.mxu0 }
 0x44c   : > { %v2789_v54 = vadd.f32 %v2788_v24, %v2702_v26 }
 0x44e   : > { %5008 = vtanh.f32 %v2789_v54 }
 0x45b   : > { %v5009_v27 = vpop.eup %5008 }
 0x45c   : > { %3669 = vst [vmem:[%s5399_s15 + $0x18] sm:$0xff] %v5009_v27  ;;  %v6539_v47 = vand.u32 4294901760, %v5009_v27 }
 0x45e   : > { %4823 = vmatmul.mubr.f32.vlgmr.msra.gmra.mxu1 %v6539_v47  ;;  %v6543_v61 = vsub.f32 %v5009_v27, %v6539_v47 }
 0x45f   : > { %4861 = vmatpush3.msra.mxu1 %v6301_v51  ;;  %4892 = vmatprep.mubr.msk.f32.mxu1 %vm5072_vm0, %v5071_v0 }
 0x460   : > { %4862 = vmatprep.subr.mxu1 %v5071_v0  ;;  %v2901_v43 = vand.u32 4294901760, %v6543_v61 }
 0x461   : > { %4863 = vmatpush3.msra.mxu1 %v6303_v16 }
 0x462   : > { %4864 = vmatprep.subr.mxu1 %v5071_v0  ;;  %v2902_v54 = vsub.f32 %v6543_v61, %v2901_v43 }
 0x463   : > { %4865 = vmatpush3.msra.mxu1 %v6328_v32 }
 0x464   : > { %4866 = vmatprep.subr.mxu1 %v5071_v0  ;;  %v2903_v26 = vand.u32 4294901760, %v2902_v54 }
 0x465   : > { %4867 = vmatpush3.msra.mxu1 %v6336_v14 }
 0x466   : > { %4868 = vmatprep.subr.mxu1 %v5071_v0  ;;  %4788 = vmatmul.mubr.f32.vlgmr.msra.gmra.mxu0 %v2903_v26 }
 0x467   : > { %4826 = vmatpush3.msra.mxu0 %v6306_v39  ;;  %4869 = vmatpush3.msra.mxu1 %v6347_v10  ;;  %v6767_v39 = vand.u32 4294901760, %v6518_v8 }
 0x468   : > { %4827 = vmatprep.subr.mxu0 %v5071_v0  ;;  %4870 = vmatprep.subr.mxu1 %v5071_v0 }
 0x469   : > { %4828 = vmatpush3.msra.mxu0 %v6309_v40  ;;  %4871 = vmatpush3.msra.mxu1 %v6361_v42 }
 0x46a   : > { %4829 = vmatprep.subr.mxu0 %v5071_v0  ;;  %4872 = vmatprep.subr.mxu1 %v5071_v0 }
 0x46b   : > { %4830 = vmatpush3.msra.mxu0 %v6334_v56  ;;  %4873 = vmatpush3.msra.mxu1 %v6376_v59 }
 0x46c   : > { %4831 = vmatprep.subr.mxu0 %v5071_v0  ;;  %4874 = vmatprep.subr.mxu1 %v5071_v0 }
 0x46d   : > { %4832 = vmatpush3.msra.mxu0 %v6345_v38  ;;  %4875 = vmatpush3.msra.mxu1 %v6386_v45 }
 0x46e   : > { %4833 = vmatprep.subr.mxu0 %v5071_v0  ;;  %4876 = vmatprep.subr.mxu1 %v5071_v0 }
 0x46f   : > { %4834 = vmatpush3.msra.mxu0 %v6359_v37  ;;  %4877 = vmatpush3.msra.mxu1 %v6402_v15 }
 0x470   : > { %4835 = vmatprep.subr.mxu0 %v5071_v0  ;;  %4878 = vmatprep.subr.mxu1 %v5071_v0 }
 0x471   : > { %4836 = vmatpush3.msra.mxu0 %v6373_v52  ;;  %4879 = vmatpush3.msra.mxu1 %v6415_v13 }
 0x472   : > { %4837 = vmatprep.subr.mxu0 %v5071_v0  ;;  %4880 = vmatprep.subr.mxu1 %v5071_v0 }
 0x473   : > { %4838 = vmatpush3.msra.mxu0 %v6390_v34  ;;  %4881 = vmatpush3.msra.mxu1 %v6433_v3 }
 0x474   : > { %4839 = vmatprep.subr.mxu0 %v5071_v0  ;;  %4882 = vmatprep.subr.mxu1 %v5071_v0 }
 0x475   : > { %4840 = vmatpush3.msra.mxu0 %v6400_v2  ;;  %4883 = vmatpush3.msra.mxu1 %v6449_v41 }
 0x476   : > { %4841 = vmatprep.subr.mxu0 %v5071_v0  ;;  %4884 = vmatprep.subr.mxu1 %v5071_v0 }
 0x477   : > { %4842 = vmatpush3.msra.mxu0 %v6413_v18  ;;  %4885 = vmatpush3.msra.mxu1 %v6460_v60 }
 0x478   : > { %4843 = vmatprep.subr.mxu0 %v5071_v0  ;;  %4886 = vmatprep.subr.mxu1 %v5071_v0 }
 0x479   : > { %4844 = vmatpush3.msra.mxu0 %v6431_v21  ;;  %4887 = vmatpush3.msra.mxu1 %v6477_v5 }
 0x47a   : > { %4845 = vmatprep.subr.mxu0 %v5071_v0  ;;  %4888 = vmatprep.subr.mxu1 %v5071_v0 }
 0x47b   : > { %4846 = vmatpush3.msra.mxu0 %v6446_v31  ;;  %4889 = vmatpush3.msra.mxu1 %v6490_v50  ;;  %v3532_v31 = vld [vmem:[%s5399_s15 + $0x8] sm:$0xff] (%p5143_p4) }
 0x47c   : > { %4847 = vmatprep.subr.mxu0 %v5071_v0  ;;  %4890 = vmatprep.subr.mxu1 %v5071_v0  ;;  %3533 = vst [vmem:[%s3495_s19 + $0x18] sm:$0xff] (%p5143_p4), %v3532_v31 }
 0x47d   : > { %4848 = vmatpush3.msra.mxu0 %v6464_v12  ;;  %4891 = vmatpush3.msra.mxu1 %v6508_v46 }
 0x47e   : > { %4849 = vmatprep.subr.mxu0 %v5071_v0  ;;  %4893 = vmatmul.mubr.f32.vlgmr.msra.gmra.mxu1 %v2901_v43 }
 0x47f   : > { %4930 = vmatprep.subr.mxu1 %v5071_v0  ;;  %4850 = vmatpush3.msra.mxu0 %v6475_v25 }
 0x480   : > { %4931 = vmatpush3.msra.mxu1 %v6301_v51  ;;  %4851 = vmatprep.subr.mxu0 %v5071_v0  ;;  %v6765_v51 = vand.u32 4294901760, %v6488_v62 }
 0x481   : > { %4932 = vmatprep.subr.mxu1 %v5071_v0  ;;  %4852 = vmatpush3.msra.mxu0 %v6488_v62 }
 0x482   : > { %4933 = vmatpush3.msra.mxu1 %v6303_v16  ;;  %4853 = vmatprep.subr.mxu0 %v5071_v0  ;;  %v6766_v16 = vand.u32 4294901760, %v6506_v55 }
 0x483   : > { %4934 = vmatprep.subr.mxu1 %v5071_v0  ;;  %4854 = vmatpush3.msra.mxu0 %v6506_v55 }
 0x484   : > { %4935 = vmatpush3.msra.mxu1 %v6328_v32  ;;  %4855 = vmatprep.subr.mxu0 %v5071_v0 }
 0x485   : > { %4936 = vmatprep.subr.mxu1 %v5071_v0  ;;  %4856 = vmatpush3.msra.mxu0 %v6518_v8 }
 0x486   : > { %4857 = vmatprep.mubr.msk.f32.mxu0 %vm5072_vm0, %v5071_v0  ;;  %4937 = vmatpush3.msra.mxu1 %v6336_v14 }
 0x487   : > { %4858 = vmatmul.mubr.f32.vlgmr.msra.gmra.mxu0 %v6543_v61  ;;  %4895 = vmatprep.subr.mxu0 %v5071_v0 }
 0x488   : > { %4938 = vmatprep.subr.mxu1 %v5071_v0  ;;  %4896 = vmatpush3.msra.mxu0 %v2912_v63 }
 0x489   : > { %4939 = vmatpush3.msra.mxu1 %v6347_v10  ;;  %4897 = vmatprep.subr.mxu0 %v5071_v0  ;;  %v3670_v10 = vld [vmem:[%s6740_s5] ss:$0 sm:$0xff] }
 0x48a   : > { %4940 = vmatprep.subr.mxu1 %v5071_v0  ;;  %4898 = vmatpush3.msra.mxu0 %v2919_v1 }
 0x48b   : > { %4941 = vmatpush3.msra.mxu1 %v6361_v42  ;;  %4899 = vmatprep.subr.mxu0 %v5071_v0 }
 0x48c   : > { %4942 = vmatprep.subr.mxu1 %v5071_v0  ;;  %4900 = vmatpush3.msra.mxu0 %v2926_v30 }
 0x48d   : > { %4943 = vmatpush3.msra.mxu1 %v6376_v59  ;;  %4901 = vmatprep.subr.mxu0 %v5071_v0 }
 0x48e   : > { %4944 = vmatprep.subr.mxu1 %v5071_v0  ;;  %4902 = vmatpush3.msra.mxu0 %v2933_v35 }
 0x48f   : > { %4945 = vmatpush3.msra.mxu1 %v6386_v45  ;;  %4903 = vmatprep.subr.mxu0 %v5071_v0 }
 0x490   : > { %4946 = vmatprep.subr.mxu1 %v5071_v0  ;;  %4904 = vmatpush3.msra.mxu0 %v2940_v23 }
 0x491   : > { %4947 = vmatpush3.msra.mxu1 %v6402_v15  ;;  %4905 = vmatprep.subr.mxu0 %v5071_v0 }
 0x492   : > { %4948 = vmatprep.subr.mxu1 %v5071_v0  ;;  %4906 = vmatpush3.msra.mxu0 %v2947_v58 }
 0x493   : > { %4949 = vmatpush3.msra.mxu1 %v6415_v13  ;;  %4907 = vmatprep.subr.mxu0 %v5071_v0 }
 0x494   : > { %4950 = vmatprep.subr.mxu1 %v5071_v0  ;;  %4908 = vmatpush3.msra.mxu0 %v2954_v20 }
 0x495   : > { %4951 = vmatpush3.msra.mxu1 %v6433_v3  ;;  %4909 = vmatprep.subr.mxu0 %v5071_v0 }
 0x496   : > { %4952 = vmatprep.subr.mxu1 %v5071_v0  ;;  %4910 = vmatpush3.msra.mxu0 %v2961_v17 }
 0x497   : > { %4953 = vmatpush3.msra.mxu1 %v6449_v41  ;;  %4911 = vmatprep.subr.mxu0 %v5071_v0  ;;  %v3534_v41 = vld [vmem:[%s5399_s15 + $0x10] sm:$0xff] (%p5143_p4) }
 0x498   : > { %4954 = vmatprep.subr.mxu1 %v5071_v0  ;;  %4912 = vmatpush3.msra.mxu0 %v2968_v7  ;;  %3535 = vst [vmem:[%s3495_s19 + $0x30] sm:$0xff] (%p5143_p4), %v3534_v41 }
 0x499   : > { %4955 = vmatpush3.msra.mxu1 %v6460_v60  ;;  %4913 = vmatprep.subr.mxu0 %v5071_v0 }
 0x49a   : > { %4956 = vmatprep.subr.mxu1 %v5071_v0  ;;  %4914 = vmatpush3.msra.mxu0 %v2975_v53  ;;  %v3530_v53 = vld [vmem:[%s5399_s15] sm:$0xff] (%p5143_p4) }
 0x49b   : > { %4957 = vmatpush3.msra.mxu1 %v6477_v5  ;;  %4915 = vmatprep.subr.mxu0 %v5071_v0  ;;  %3531 = vst [vmem:[%s3495_s19] sm:$0xff] (%p5143_p4), %v3530_v53 }
 0x49c   : > { %4958 = vmatprep.subr.mxu1 %v5071_v0  ;;  %4916 = vmatpush3.msra.mxu0 %v2982_v4  ;;  %v3536_v4 = vld [vmem:[%s5399_s15 + $0x18] sm:$0xff] (%p5143_p4) }
 0x49d   : > { %4959 = vmatpush3.msra.mxu1 %v6490_v50  ;;  %4917 = vmatprep.subr.mxu0 %v5071_v0  ;;  %3537 = vst [vmem:[%s3495_s19 + $0x48] sm:$0xff] (%p5143_p4), %v3536_v4 }
 0x49e   : > { %4960 = vmatprep.subr.mxu1 %v5071_v0  ;;  %4918 = vmatpush3.msra.mxu0 %v2989_v6 }
 0x49f   : > { %4961 = vmatpush3.msra.mxu1 %v6508_v46  ;;  %4962 = vmatprep.mubr.msk.f32.mxu1 %vm5072_vm0, %v5071_v0 }
 0x4a0   : > { %4919 = vmatprep.subr.mxu0 %v5071_v0  ;;  %4963 = vmatmul.mubr.f32.vlgmr.msra.gmra.mxu1 %v6539_v47 }
 0x4a1   : > { %4920 = vmatpush3.msra.mxu0 %v2996_v22  ;;  %4927 = vmatprep.mubr.msk.f32.mxu0 %vm5072_vm0, %v5071_v0 }
 0x4a2   : > { %4921 = vmatprep.subr.mxu0 %v5071_v0 }
 0x4a3   : > { %4922 = vmatpush3.msra.mxu0 %v6765_v51 }
 0x4a4   : > { %4923 = vmatprep.subr.mxu0 %v5071_v0 }
 0x4a5   : > { %4924 = vmatpush3.msra.mxu0 %v6766_v16 }
 0x4a6   : > { %4925 = vmatprep.subr.mxu0 %v5071_v0 }
 0x4a7   : > { %4926 = vmatpush3.msra.mxu0 %v6767_v39 }
 0x4a8   : > { %4928 = vmatmul.mubr.f32.vlgmr.msra.gmra.mxu0 %v6539_v47 }
 0x51e   : > { %v3056_v40 = vpop.f32.mrf.mxu1 }
 0x520   : > { %v4824_v63 = vpop.f32.mrf.mxu1 }
 0x526   : > { %v2905_v1 = vpop.f32.mrf.mxu0 }
 0x527   : > { %v2906_v35 = vadd.f32 %v3670_v10, %v2905_v1 }
 0x528   : > { %v4789_v32 = vpop.f32.mrf.mxu0 }
 0x529   : > { %v3057_v37 = vadd.f32 %v3056_v40, %v2906_v35 }
 0x53e   : > { %v3249_v56 = vpop.f32.mrf.mxu1 }
 0x540   : > { %v4894_v14 = vpop.f32.mrf.mxu1 }
 0x547   : > { %v3160_v30 = vpop.f32.mrf.mxu0 }
 0x548   : > { %v3161_v23 = vadd.f32 %v3160_v30, %v3057_v37 }
 0x549   : > { %v4859_v38 = vpop.f32.mrf.mxu0 }
 0x54a   : > { %v3250_v52 = vadd.f32 %v3249_v56, %v3161_v23 }
 0x560   : > { %v3455_v0 = vpop.f32.mrf.mxu1 }
 0x562   : > { %v4964_v42 = vpop.f32.mrf.mxu1 }
 0x568   : > { %v3368_v59 = vpop.f32.mrf.mxu0 }
 0x569   : > { %v3369_v58 = vadd.f32 %v3368_v59, %v3250_v52 }
 0x56a   : > { %v4929_v45 = vpop.f32.mrf.mxu0 }
 0x56b   : > { %v3456_v34 = vadd.f32 %v3455_v0, %v3369_v58 }
 0x56d   : > { %v3461_v2 = vsel %vm3459_vm3, %v3456_v34, -inf  ;;  %3460 = vst.msk [vmem:[%s332_s10] sm:$0xff] %vm3459_vm3, %v3456_v34 }
 0x56e   : > { %3462 = vmax.xlane.f32.xlu0 %v3461_v2 }
 0x5f7   : > { %v3463_v15 = vpop.xlane.xlu0 %3462 }
 0x5f8   : > { %v3464_v20 = vsub.f32 %v3456_v34, %v3463_v15 }
 0x5fa   : > { %v3465_v17 = vmul.f32 1.442695, %v3464_v20 }
 0x5fc   : > { %5010 = vpow2.f32 %v3465_v17 }
 0x609   : > { %v5011_v18 = vpop.eup %5010 }
 0x60a   : > { %v3467_v13 = vsel %vm3459_vm3, %v5011_v18, 0.0 }
 0x60b   : > { %3468 = vadd.xlane.f32.xlu0 %v3467_v13 }
 0x694   : > { %v3469_v7 = vpop.xlane.xlu0 %3468 }
 0x695   : > { %5012 = vrcp.f32 %v3469_v7 }
 0x6a1   : > { %3493 = sbr.rel (!%p5143_p4) target bundleno = 1702 (0x6a6), region = 60 }
 0x6a2   : > { %v5013_v21 = vpop.eup %5012 }
 0x6a3   : > { %v3471_v3 = vmul.f32 %v5013_v21, %v5011_v18 }
 0x6a5   : > { %3472 = vst.msk [vmem:[%s328_s27] sm:$0xff] %vm3459_vm3, %v3471_v3 }
 0x6a6 PF: > { %p17_p4 = scmp.ge.s32.totalorder %s5133_s9, 5   ;;  %s6768_s27 = smov %s5062_s28 }
 0x6a7   : > { %s6769_s28 = smov %s5141_s12  ;;  %s6770_s29 = smov %s5133_s9 }
 0x6a8   :  { %19 = sbr.rel (!%p17_p4) target bundleno = 2 (0x2), region = 148 }
 0x6ad   :  { %3567 = vsyncpa [#allocation3], 1 }
 0x6ae   :  { %3569 = vsyncpa [#allocation3 + $0x1], 1 }

// kernel: tpu_custom_call.1
= control target key start
LH: loop header
LB: loop body
LE: loop exit
PB: predicated region body
PF: predicated region fallthrough
CT: control target
= control target key end

     0   :  { %14 = vsyncpa [#allocation3], 0  ;;  %s5118_s27 = smov 0   ;;  %s5120_s28 = smov 0   ;;  %s6735_s0 = inlined_call_operand.vmem [shape: f32[20,4], index: 0, kind: input, shape index: {}]   ;;  %s6736_s1 = inlined_call_operand.vmem [shape: f32[4,128], index: 1, kind: input, shape index: {}]   ;;  %s6737_s2 = inlined_call_operand.hbm [shape: f32[3,128,128], index: 2, kind: input, shape index: {}]   ;;  %s6738_s3 = inlined_call_operand.vmem [shape: f32[3,1,128], index: 3, kind: input, shape index: {}]   ;;  %s6739_s4 = inlined_call_operand.vmem [shape: f32[128,3], index: 4, kind: input, shape index: {}]   ;;  %s6740_s5 = inlined_call_operand.vmem [shape: f32[1,3], index: 5, kind: input, shape index: {}]   ;;  %s6741_s6 = inlined_call_operand.vmem [shape: f32[20,3], index: 6, kind: output, shape index: {0}]   ;;  %s6742_s7 = inlined_call_operand.vmem [shape: f32[20,3], index: 7, kind: output, shape index: {1}]   ;;  %s6743_s8 = inlined_call_operand.vmem [shape: f32[4,20,128], index: 8, kind: output, shape index: {2}]  }
   0x1   :  { %s5122_s29 = smov 0  }
   0x2 LB: > { %s5131_s30 = sadd.s32 4294967295, %s5066_s29   ;;  %s5133_s9 = sadd.s32 1, %s5066_s29   ;;  %s5066_s29 = sphi %s5122_s29, %s6770_s29   ;;  %s5062_s28 = sphi %s5120_s28, %s6769_s28   ;;  %s5058_s27 = sphi %s5118_s27, %s6768_s27  }
   0x3   : > { %s207_s10 = ssub.s32 %s5066_s29, %s5133_s9  ;;  %s210_s11 = sadd.s32 1, %s5062_s28 }
   0x4   : > { %p208_p0 = scmp.eq.s32.totalorder %s207_s10, 0  ;;  %p220_p1 = scmp.ne.s32.totalorder %s5062_s28, %s5058_s27 }
   0x5   : > { %p221_p2 = scmp.eq.s32.totalorder %s5131_s30, 2  ;;  %p3653_p3 = scmp.ge.s32.totalorder %s5066_s29, 1 }
   0x6   : > { %s5141_s12 = scalar_select %p208_p0, %s5062_s28, %s210_s11  }
   0x7   : > { %p5143_p4 = por %p221_p2, %p220_p1  ;;  %p234_p5 = scmp.lt.s32.totalorder %s5066_s29, 4 }
   0x8   : > { %p4973_p6 = scmp.eq.s32.totalorder %s5131_s30, 0  ;;  %s5068_s15 = smov [#allocation2]  }
   0x9   : > { %p5148_p7 = pnand %p3653_p3, %p234_p5  ;;  %s249_s16 = sshll.u32 %s5068_s15, 4  ;;  %s250_s16 = int_to_ptr.vmem [resolvable:$true] %s249_s16 }
   0xa   : > { %s5025_s17 = scalar_lea.vmem %s250_s16, 6144  ;;  %p5033_p0 = scmp.lt.s32.totalorder %s250_s16, %s250_s16 }
   0xb   : > { %p4969_p8 = pneg %p5148_p7  ;;  %p5026_p11 = scmp.ne.s32.totalorder %s250_s16, %s5025_s17 }
   0xc   : > { %p5034_p1 = scmp.lt.s32.totalorder %s5025_s17, %s5025_s17 }
   0xd   : > { %p4970_p9 = pnand %p4973_p6, %p4969_p8 }
   0xe   : > { %p5035_p2 = por %p5034_p1, %p5033_p0 }
   0xf   : > { %p5016_p10 = pneg %p4970_p9 }
  0x11   : > { %p5028_p12 = pnand %p5026_p11, %p5016_p10 }
  0x13   : > { %p5029_p13 = pneg %p5028_p12 }
  0x15   : > { %p5036_p3 = pnand %p5035_p2, %p5029_p13 }
  0x17   : > { %5039 = shalt.err (!%p5036_p3)
}
  0x18   : > { %s5069_s18 = smov 128   ;;  %s5070_s19 = smov 8  }
  0x19   : > { %4972 = dma.hbm_to_vmem [thread:$0]  (!%p4970_p9), %s6737_s2, 6144, %s250_s16, [#allocation3], %s5069_s18, %s5069_s18, %s5070_s19  }
  0x1a   : > { %281 = sbr.rel (%p5148_p7) target bundleno = 1702 (0x6a6), region = 44 }
  0x1f   : > { %5053 = dma.done.wait (%p4973_p6), [#allocation3], 6144  }
  0x20   : > { %5055 = vsyncadd (%p4973_p6), [#allocation3], 4294961152  ;;  %p321_p5 = scmp.lt.s32.totalorder %s5131_s30, 2  ;;  %v5071_v0 = vmov 0.0   ;;  %vm5072_vm0 = vmmov 0   ;;  %vm339_vm1 = vcmask 1043456  }
  0x21   : > { %4095 = vmatprep.subr.mxu0 %v5071_v0  ;;  %4097 = vmatprep.mubr.msk.f32.mxu0 %vm5072_vm0, %v5071_v0  ;;  %vm335_vm2 = vcmask 31744   ;;  %v334_v1 = vld [vmem:[%s6736_s1] sm:$0xf]  ;;  %v805_v3 = vld [vmem:[#allocation2 + $0x78] sm:$0xff]  ;;  %v804_v6 = vld [vmem:[#allocation2 + $0x70] sm:$0xff]  ;;  %s318_s11 = sand.u32 1, %s5058_s27  }
  0x22   : > { %4100 = vmatprep.subr.mxu1 %v5071_v0  ;;  %s322_s22 = scalar_select %p321_p5, %s5131_s30, 2  ;;  %4102 = vmatprep.mubr.msk.f32.mxu1 %vm5072_vm0, %v5071_v0  ;;  %v341_v4 = vsel %vm339_vm1, %v334_v1, 0  ;;  %v5184_v9 = vand.u32 4294901760, %v805_v3  ;;  %v803_v10 = vld [vmem:[#allocation2 + $0x68] sm:$0xff]  ;;  %v5187_v13 = vand.u32 4294901760, %v804_v6  ;;  %v802_v14 = vld [vmem:[#allocation2 + $0x60] sm:$0xff] }
  0x23   : > { %v374_v7 = vand.u32 4294901760, %v341_v4  ;;  %v5193_v18 = vand.u32 4294901760, %v803_v10  ;;  %v801_v19 = vld [vmem:[#allocation2 + $0x58] sm:$0xff]  ;;  %v5198_v23 = vand.u32 4294901760, %v802_v14  ;;  %v800_v25 = vld [vmem:[#allocation2 + $0x50] sm:$0xff]  ;;  %v799_v30 = vld [vmem:[#allocation2 + $0x48] sm:$0xff] }
  0x24   : > { %s5173_s23 = sshll.u32 %s322_s22, 3  ;;  %v5191_v17 = vsub.f32 %v805_v3, %v5184_v9  ;;  %v5196_v22 = vsub.f32 %v804_v6, %v5187_v13  ;;  %v5200_v24 = vand.u32 4294901760, %v801_v19  ;;  %v5210_v33 = vand.u32 4294901760, %v800_v25  ;;  %v798_v35 = vld [vmem:[#allocation2 + $0x40] sm:$0xff]  ;;  %v797_v39 = vld [vmem:[#allocation2 + $0x38] sm:$0xff]  ;;  %v796_v6 = vld [vmem:[#allocation2 + $0x30] sm:$0xff] }
  0x25   : > { %s324_s26 = scalar_lea.vmem %s6735_s0, %s5173_s23  ;;  %4096 = vmatpush3.msra.mxu0 %v374_v7  ;;  %v451_v12 = vsub.f32 %v341_v4, %v374_v7  ;;  %v5204_v29 = vsub.f32 %v803_v10, %v5193_v18  ;;  %v5208_v32 = vsub.f32 %v802_v14, %v5198_v23  ;;  %v5223_v38 = vand.u32 4294901760, %v799_v30  ;;  %s3658_s14 = sshll.u32 %s318_s11, 5 }
  0x26   : > { %v333_v2 = vld [vmem:[%s324_s26] sm:$0xff]  ;;  %4105 = vmatprep.subr.mxu0 %v5071_v0  ;;  %v907_v28 = vand.u32 4294901760, %v5191_v17  ;;  %v914_v31 = vand.u32 4294901760, %v5196_v22  ;;  %v5214_v34 = vsub.f32 %v801_v19, %v5200_v24  ;;  %v5233_v42 = vsub.f32 %v800_v25, %v5210_v33  ;;  %v793_v19 = vld [vmem:[#allocation2 + $0x18] sm:$0xff]  ;;  %s5399_s15 = scalar_lea.vmem [#allocation4], %s3658_s14  ;;  %s332_s10 = scalar_lea.vmem %s6742_s7, %s5173_s23 }
  0x27   : > { %v337_v5 = vsel %vm335_vm2, %v333_v2, 0  ;;  %v452_v16 = vand.u32 4294901760, %v451_v12  ;;  %v921_v37 = vand.u32 4294901760, %v5204_v29  ;;  %v928_v41 = vand.u32 4294901760, %v5208_v32  ;;  %s328_s27 = scalar_lea.vmem %s6741_s6, %s5173_s23  ;;  %s3672_s16 = sshll.u32 (%p5143_p4), %s5131_s30, 3 }
  0x28   : > { %v5182_v8 = vand.u32 4294901760, %v337_v5  ;;  %v908_v36 = vsub.f32 %v5191_v17, %v907_v28  ;;  %v915_v40 = vsub.f32 %v5196_v22, %v914_v31  ;;  %v5235_v43 = vand.u32 4294901760, %v798_v35  ;;  %s3495_s19 = scalar_lea.vmem (%p5143_p4), %s6743_s8, %s3672_s16 }
  0x29   : > { %v453_v21 = vsub.f32 %v451_v12, %v452_v16  ;;  %v935_v44 = vand.u32 4294901760, %v5214_v34  ;;  %v922_v46 = vsub.f32 %v5204_v29, %v921_v37  ;;  %v5245_v47 = vsub.f32 %v799_v30, %v5223_v38 }
  0x2a   : > { %v410_v11 = vsub.f32 %v337_v5, %v5182_v8  ;;  %v909_v45 = vand.u32 4294901760, %v908_v36  ;;  %v5247_v48 = vand.u32 4294901760, %v797_v39  ;;  %v916_v49 = vand.u32 4294901760, %v915_v40 }
  0x2b   : > { %v454_v27 = vand.u32 4294901760, %v453_v21  ;;  %v929_v50 = vsub.f32 %v5208_v32, %v928_v41  ;;  %v942_v51 = vand.u32 4294901760, %v5233_v42  ;;  %v5258_v52 = vsub.f32 %v798_v35, %v5235_v43 }
  0x2c   : > { %v411_v15 = vand.u32 4294901760, %v410_v11  ;;  %v923_v53 = vand.u32 4294901760, %v922_v46  ;;  %v936_v54 = vsub.f32 %v5214_v34, %v935_v44  ;;  %v949_v55 = vand.u32 4294901760, %v5245_v47 }
  0x2d   : > { %4101 = vmatpush3.msra.mxu1 %v454_v27  ;;  %v5268_v56 = vsub.f32 %v797_v39, %v5247_v48  ;;  %v930_v57 = vand.u32 4294901760, %v929_v50  ;;  %v943_v58 = vsub.f32 %v5233_v42, %v942_v51  ;;  %v956_v59 = vand.u32 4294901760, %v5258_v52  ;;  %v792_v27 = vld [vmem:[#allocation2 + $0x10] sm:$0xff] }
  0x2e   : > { %v412_v20 = vsub.f32 %v410_v11, %v411_v15  ;;  %4103 = vmatmul.mubr.f32.vlgmr.msra.gmra.mxu1 %v5182_v8  ;;  %4110 = vmatprep.subr.mxu1 %v5071_v0  ;;  %v937_v60 = vand.u32 4294901760, %v936_v54  ;;  %v950_v61 = vsub.f32 %v5245_v47, %v949_v55  ;;  %v5350_v40 = vand.u32 4294901760, %v792_v27 }
  0x2f   : > { %4111 = vmatpush3.msra.mxu1 %v374_v7  ;;  %4112 = vmatprep.mubr.msk.f32.mxu1 %vm5072_vm0, %v5071_v0  ;;  %v963_v62 = vand.u32 4294901760, %v5268_v56  ;;  %v944_v63 = vand.u32 4294901760, %v943_v58  ;;  %v957_v1 = vsub.f32 %v5258_v52, %v956_v59  ;;  %vm3459_vm3 = vcmask 23552  }
  0x30   : > { %v413_v26 = vand.u32 4294901760, %v412_v20  ;;  %4120 = vmatprep.subr.mxu1 %v5071_v0  ;;  %v951_v2 = vand.u32 4294901760, %v950_v61  ;;  %v5361_v54 = vsub.f32 %v792_v27, %v5350_v40 }
  0x31   : > { %v964_v3 = vsub.f32 %v5268_v56, %v963_v62  ;;  %v958_v4 = vand.u32 4294901760, %v957_v1 }
  0x32   : > { %4098 = vmatmul.mubr.f32.vlgmr.msra.gmra.mxu0 %v413_v26  ;;  %4113 = vmatmul.mubr.f32.vlgmr.msra.gmra.mxu1 %v411_v15  ;;  %v5338_v26 = vand.u32 4294901760, %v793_v19  ;;  %v998_v1 = vand.u32 4294901760, %v5361_v54 }
  0x33   : > { %4106 = vmatpush3.msra.mxu0 %v451_v12  ;;  %4107 = vmatprep.mubr.msk.f32.mxu0 %vm5072_vm0, %v5071_v0  ;;  %v965_v5 = vand.u32 4294901760, %v964_v3  ;;  %v794_v12 = vld [vmem:[#allocation2 + $0x20] sm:$0xff] }
  0x34   : > { %4115 = vmatprep.subr.mxu0 %v5071_v0  ;;  %4121 = vmatpush3.msra.mxu1 %v374_v7  ;;  %v5314_v7 = vand.u32 4294901760, %v796_v6  ;;  %v5347_v39 = vsub.f32 %v793_v19, %v5338_v26 }
  0x35   : > { %4122 = vmatprep.mubr.msk.f32.mxu1 %vm5072_vm0, %v5071_v0  ;;  %4160 = vmatprep.subr.mxu1 %v5071_v0 }
  0x36   : > { %4108 = vmatmul.mubr.f32.vlgmr.msra.gmra.mxu0 %v410_v11  ;;  %4123 = vmatmul.mubr.f32.vlgmr.msra.gmra.mxu1 %v5182_v8  ;;  %v5317_v10 = vsub.f32 %v796_v6, %v5314_v7  ;;  %v991_v50 = vand.u32 4294901760, %v5347_v39 }
  0x37   : > { %4116 = vmatpush3.msra.mxu0 %v452_v16  ;;  %4117 = vmatprep.mubr.msk.f32.mxu0 %vm5072_vm0, %v5071_v0  ;;  %v5327_v16 = vand.u32 4294901760, %v794_v12 }
  0x38   : > { %4125 = vmatprep.subr.mxu0 %v5071_v0  ;;  %4161 = vmatpush3.msra.mxu1 %v909_v45  ;;  %v970_v14 = vand.u32 4294901760, %v5317_v10  ;;  %v791_v45 = vld [vmem:[#allocation2 + $0x8] sm:$0xff] }
  0x39   : > { %4162 = vmatprep.subr.mxu1 %v5071_v0  ;;  %4192 = vmatprep.mubr.msk.f32.mxu1 %vm5072_vm0, %v5071_v0  ;;  %v5336_v25 = vsub.f32 %v794_v12, %v5327_v16 }
  0x3a   : > { %4118 = vmatmul.mubr.f32.vlgmr.msra.gmra.mxu0 %v5182_v8  ;;  %4163 = vmatpush3.msra.mxu1 %v916_v49  ;;  %v795_v8 = vld [vmem:[#allocation2 + $0x28] sm:$0xff]  ;;  %v971_v20 = vsub.f32 %v5317_v10, %v970_v14 }
  0x3b   : > { %4126 = vmatpush3.msra.mxu0 %v5184_v9  ;;  %4164 = vmatprep.subr.mxu1 %v5071_v0  ;;  %v5319_v11 = vand.u32 4294901760, %v795_v8  ;;  %v984_v36 = vand.u32 4294901760, %v5336_v25 }
  0x3c   : > { %4127 = vmatprep.subr.mxu0 %v5071_v0  ;;  %4165 = vmatpush3.msra.mxu1 %v923_v53  ;;  %v972_v30 = vand.u32 4294901760, %v971_v20  ;;  %v5357_v53 = vand.u32 4294901760, %v791_v45 }
  0x3d   : > { %4128 = vmatpush3.msra.mxu0 %v5187_v13  ;;  %4166 = vmatprep.subr.mxu1 %v5071_v0  ;;  %v5325_v15 = vsub.f32 %v795_v8, %v5319_v11  ;;  %v985_v49 = vsub.f32 %v5336_v25, %v984_v36 }
  0x3e   : > { %4129 = vmatprep.subr.mxu0 %v5071_v0  ;;  %4167 = vmatpush3.msra.mxu1 %v930_v57  ;;  %v790_v57 = vld [vmem:[#allocation2] sm:$0xff]  ;;  %v5368_v61 = vsub.f32 %v791_v45, %v5357_v53 }
  0x3f   : > { %4130 = vmatpush3.msra.mxu0 %v5193_v18  ;;  %4168 = vmatprep.subr.mxu1 %v5071_v0  ;;  %v977_v21 = vand.u32 4294901760, %v5325_v15  ;;  %v986_v58 = vand.u32 4294901760, %v985_v49 }
  0x40   : > { %4131 = vmatprep.subr.mxu0 %v5071_v0  ;;  %4169 = vmatpush3.msra.mxu1 %v937_v60  ;;  %v992_v60 = vsub.f32 %v5347_v39, %v991_v50  ;;  %v6745_v3 = vand.u32 4294901760, %v5368_v61 }
  0x41   : > { %4132 = vmatpush3.msra.mxu0 %v5198_v23  ;;  %4170 = vmatprep.subr.mxu1 %v5071_v0  ;;  %v978_v35 = vsub.f32 %v5325_v15, %v977_v21 }
  0x42   : > { %4133 = vmatprep.subr.mxu0 %v5071_v0  ;;  %4171 = vmatpush3.msra.mxu1 %v944_v63  ;;  %v5370_v63 = vand.u32 4294901760, %v790_v57  ;;  %v1006_v6 = vsub.f32 %v5368_v61, %v6745_v3 }
  0x43   : > { %4134 = vmatpush3.msra.mxu0 %v5200_v24  ;;  %4172 = vmatprep.subr.mxu1 %v5071_v0  ;;  %v979_v46 = vand.u32 4294901760, %v978_v35 }
  0x44   : > { %4135 = vmatprep.subr.mxu0 %v5071_v0  ;;  %4173 = vmatpush3.msra.mxu1 %v951_v2  ;;  %v993_v2 = vand.u32 4294901760, %v992_v60  ;;  %v1007_v19 = vand.u32 4294901760, %v1006_v6 }
  0x45   : > { %4136 = vmatpush3.msra.mxu0 %v5210_v33  ;;  %4174 = vmatprep.subr.mxu1 %v5071_v0 }
  0x46   : > { %4137 = vmatprep.subr.mxu0 %v5071_v0  ;;  %4175 = vmatpush3.msra.mxu1 %v958_v4  ;;  %v5378_v4 = vsub.f32 %v790_v57, %v5370_v63 }
  0x47   : > { %4138 = vmatpush3.msra.mxu0 %v5223_v38  ;;  %4176 = vmatprep.subr.mxu1 %v5071_v0 }
  0x48   : > { %4139 = vmatprep.subr.mxu0 %v5071_v0  ;;  %4177 = vmatpush3.msra.mxu1 %v965_v5  ;;  %v999_v5 = vsub.f32 %v5361_v54, %v998_v1  ;;  %v6744_v8 = vand.u32 4294901760, %v5378_v4 }
  0x49   : > { %4140 = vmatpush3.msra.mxu0 %v5235_v43  ;;  %4178 = vmatprep.subr.mxu1 %v5071_v0 }
  0x4a   : > { %4141 = vmatprep.subr.mxu0 %v5071_v0  ;;  %4157 = vmatprep.mubr.msk.f32.mxu0 %vm5072_vm0, %v5071_v0  ;;  %v1000_v12 = vand.u32 4294901760, %v999_v5  ;;  %v1013_v20 = vsub.f32 %v5378_v4, %v6744_v8 }
  0x4b   : > { %4142 = vmatpush3.msra.mxu0 %v5247_v48  ;;  %4179 = vmatpush3.msra.mxu1 %v972_v30 }
  0x4c   : > { %4143 = vmatprep.subr.mxu0 %v5071_v0  ;;  %4180 = vmatprep.subr.mxu1 %v5071_v0  ;;  %v1014_v27 = vand.u32 4294901760, %v1013_v20 }
  0x4d   : > { %4144 = vmatpush3.msra.mxu0 %v5314_v7  ;;  %4181 = vmatpush3.msra.mxu1 %v979_v46 }
  0x4e   : > { %4145 = vmatprep.subr.mxu0 %v5071_v0  ;;  %4182 = vmatprep.subr.mxu1 %v5071_v0 }
  0x4f   : > { %4146 = vmatpush3.msra.mxu0 %v5319_v11  ;;  %4183 = vmatpush3.msra.mxu1 %v986_v58 }
  0x50   : > { %4147 = vmatprep.subr.mxu0 %v5071_v0  ;;  %4184 = vmatprep.subr.mxu1 %v5071_v0 }
  0x51   : > { %4148 = vmatpush3.msra.mxu0 %v5327_v16  ;;  %4185 = vmatpush3.msra.mxu1 %v993_v2 }
  0x52   : > { %4149 = vmatprep.subr.mxu0 %v5071_v0  ;;  %4186 = vmatprep.subr.mxu1 %v5071_v0 }
  0x53   : > { %4150 = vmatpush3.msra.mxu0 %v5338_v26  ;;  %4187 = vmatpush3.msra.mxu1 %v1000_v12 }
  0x54   : > { %4151 = vmatprep.subr.mxu0 %v5071_v0  ;;  %4188 = vmatprep.subr.mxu1 %v5071_v0 }
  0x55   : > { %4152 = vmatpush3.msra.mxu0 %v5350_v40  ;;  %4189 = vmatpush3.msra.mxu1 %v1007_v19 }
  0x56   : > { %4153 = vmatprep.subr.mxu0 %v5071_v0  ;;  %4190 = vmatprep.subr.mxu1 %v5071_v0 }
  0x57   : > { %4154 = vmatpush3.msra.mxu0 %v5357_v53  ;;  %4191 = vmatpush3.msra.mxu1 %v1014_v27 }
  0x58   : > { %4155 = vmatprep.subr.mxu0 %v5071_v0  ;;  %4230 = vmatprep.subr.mxu1 %v5071_v0 }
  0x59   : > { %4156 = vmatpush3.msra.mxu0 %v5370_v63 }
  0x5a   : > { %4195 = vmatprep.subr.mxu0 %v5071_v0 }
  0xee   : > { %v491_v35 = vpop.f32.mrf.mxu1 }
  0xf0   : > { %v4104_v49 = vpop.f32.mrf.mxu1 }
  0xf2   : > { %v415_v30 = vpop.f32.mrf.mxu0  ;;  %v639_v60 = vpop.f32.mrf.mxu1 }
  0xf3   : > { %v492_v45 = vadd.f32 %v491_v35, %v415_v30 }
  0xf4   : > { %v4099_v46 = vpop.f32.mrf.mxu0  ;;  %v4114_v6 = vpop.f32.mrf.mxu1 }
  0xf5   : > { %v1464_v46 = vld [vmem:[#allocation2 + $0xb0] sm:$0xff] }
  0xf6   : > { %v565_v57 = vpop.f32.mrf.mxu0  ;;  %v785_v20 = vpop.f32.mrf.mxu1 }
  0xf7   : > { %v566_v58 = vadd.f32 %v565_v57, %v492_v45 }
  0xf8   : > { %v4109_v2 = vpop.f32.mrf.mxu0  ;;  %v4124_v3 = vpop.f32.mrf.mxu1 }
  0xf9   : > { %v640_v5 = vadd.f32 %v639_v60, %v566_v58  ;;  %v5659_v60 = vand.u32 4294901760, %v1464_v46 }
  0xfa   : > { %v713_v12 = vpop.f32.mrf.mxu0 }
  0xfb   : > { %v714_v19 = vadd.f32 %v713_v12, %v640_v5  ;;  %v1463_v5 = vld [vmem:[#allocation2 + $0xa8] sm:$0xff] }
  0xfc   : > { %v4119_v8 = vpop.f32.mrf.mxu0 }
  0xfd   : > { %v786_v27 = vadd.f32 %v785_v20, %v714_v19  ;;  %v5672_v19 = vsub.f32 %v1464_v46, %v5659_v60  ;;  %v5674_v20 = vand.u32 4294901760, %v1463_v5 }
  0xff   : > { %789 = vst [vmem:[%s5399_s15] sm:$0xff] %v786_v27  ;;  %v5402_v30 = vand.u32 4294901760, %v786_v27 }
 0x101   : > { %v5405_v35 = vsub.f32 %v786_v27, %v5402_v30  ;;  %4193 = vmatmul.mubr.f32.vlgmr.msra.gmra.mxu1 %v5402_v30 }
 0x102   : > { %4231 = vmatpush3.msra.mxu1 %v5184_v9  ;;  %4262 = vmatprep.mubr.msk.f32.mxu1 %vm5072_vm0, %v5071_v0 }
 0x103   : > { %v896_v8 = vand.u32 4294901760, %v5405_v35  ;;  %4232 = vmatprep.subr.mxu1 %v5071_v0 }
 0x104   : > { %4233 = vmatpush3.msra.mxu1 %v5187_v13 }
 0x105   : > { %4234 = vmatprep.subr.mxu1 %v5071_v0  ;;  %v897_v3 = vsub.f32 %v5405_v35, %v896_v8 }
 0x106   : > { %4235 = vmatpush3.msra.mxu1 %v5193_v18 }
 0x107   : > { %4236 = vmatprep.subr.mxu1 %v5071_v0  ;;  %v898_v45 = vand.u32 4294901760, %v897_v3  ;;  %v1639_v3 = vand.u32 4294901760, %v5672_v19 }
 0x108   : > { %4237 = vmatpush3.msra.mxu1 %v5198_v23 }
 0x109   : > { %4238 = vmatprep.subr.mxu1 %v5071_v0  ;;  %4158 = vmatmul.mubr.f32.vlgmr.msra.gmra.mxu0 %v898_v45  ;;  %v5684_v45 = vsub.f32 %v1463_v5, %v5674_v20 }
 0x10a   : > { %4196 = vmatpush3.msra.mxu0 %v5191_v17  ;;  %4239 = vmatpush3.msra.mxu1 %v5200_v24  ;;  %v1473_v17 = vld [vmem:[#allocation2 + $0xf8] sm:$0xff] }
 0x10b   : > { %4197 = vmatprep.subr.mxu0 %v5071_v0  ;;  %4240 = vmatprep.subr.mxu1 %v5071_v0 }
 0x10c   : > { %4198 = vmatpush3.msra.mxu0 %v5196_v22  ;;  %4241 = vmatpush3.msra.mxu1 %v5210_v33  ;;  %v5569_v22 = vand.u32 4294901760, %v1473_v17 }
 0x10d   : > { %4199 = vmatprep.subr.mxu0 %v5071_v0  ;;  %4242 = vmatprep.subr.mxu1 %v5071_v0 }
 0x10e   : > { %4200 = vmatpush3.msra.mxu0 %v5204_v29  ;;  %4243 = vmatpush3.msra.mxu1 %v5223_v38 }
 0x10f   : > { %4201 = vmatprep.subr.mxu0 %v5071_v0  ;;  %4244 = vmatprep.subr.mxu1 %v5071_v0 }
 0x110   : > { %4202 = vmatpush3.msra.mxu0 %v5208_v32  ;;  %4245 = vmatpush3.msra.mxu1 %v5235_v43 }
 0x111   : > { %4203 = vmatprep.subr.mxu0 %v5071_v0  ;;  %4246 = vmatprep.subr.mxu1 %v5071_v0 }
 0x112   : > { %4204 = vmatpush3.msra.mxu0 %v5214_v34  ;;  %4247 = vmatpush3.msra.mxu1 %v5247_v48 }
 0x113   : > { %4205 = vmatprep.subr.mxu0 %v5071_v0  ;;  %4248 = vmatprep.subr.mxu1 %v5071_v0 }
 0x114   : > { %4206 = vmatpush3.msra.mxu0 %v5233_v42  ;;  %4249 = vmatpush3.msra.mxu1 %v5314_v7  ;;  %v1470_v42 = vld [vmem:[#allocation2 + $0xe0] sm:$0xff] }
 0x115   : > { %4207 = vmatprep.subr.mxu0 %v5071_v0  ;;  %4250 = vmatprep.subr.mxu1 %v5071_v0 }
 0x116   : > { %4208 = vmatpush3.msra.mxu0 %v5245_v47  ;;  %4251 = vmatpush3.msra.mxu1 %v5319_v11  ;;  %v1469_v47 = vld [vmem:[#allocation2 + $0xd8] sm:$0xff] }
 0x117   : > { %4209 = vmatprep.subr.mxu0 %v5071_v0  ;;  %4252 = vmatprep.subr.mxu1 %v5071_v0 }
 0x118   : > { %4210 = vmatpush3.msra.mxu0 %v5258_v52  ;;  %4253 = vmatpush3.msra.mxu1 %v5327_v16  ;;  %v5606_v52 = vand.u32 4294901760, %v1469_v47 }
 0x119   : > { %4211 = vmatprep.subr.mxu0 %v5071_v0  ;;  %4254 = vmatprep.subr.mxu1 %v5071_v0 }
 0x11a   : > { %4212 = vmatpush3.msra.mxu0 %v5268_v56  ;;  %4255 = vmatpush3.msra.mxu1 %v5338_v26 }
 0x11b   : > { %4213 = vmatprep.subr.mxu0 %v5071_v0  ;;  %4256 = vmatprep.subr.mxu1 %v5071_v0 }
 0x11c   : > { %4214 = vmatpush3.msra.mxu0 %v5317_v10  ;;  %4257 = vmatpush3.msra.mxu1 %v5350_v40  ;;  %v1467_v10 = vld [vmem:[#allocation2 + $0xc8] sm:$0xff] }
 0x11d   : > { %4215 = vmatprep.subr.mxu0 %v5071_v0  ;;  %4258 = vmatprep.subr.mxu1 %v5071_v0 }
 0x11e   : > { %4216 = vmatpush3.msra.mxu0 %v5325_v15  ;;  %4259 = vmatpush3.msra.mxu1 %v5357_v53 }
 0x11f   : > { %4217 = vmatprep.subr.mxu0 %v5071_v0  ;;  %4260 = vmatprep.subr.mxu1 %v5071_v0 }
 0x120   : > { %4218 = vmatpush3.msra.mxu0 %v5336_v25  ;;  %4261 = vmatpush3.msra.mxu1 %v5370_v63  ;;  %v1466_v25 = vld [vmem:[#allocation2 + $0xc0] sm:$0xff] }
 0x121   : > { %4219 = vmatprep.subr.mxu0 %v5071_v0  ;;  %4263 = vmatmul.mubr.f32.vlgmr.msra.gmra.mxu1 %v896_v8 }
 0x122   : > { %4300 = vmatprep.subr.mxu1 %v5071_v0  ;;  %4220 = vmatpush3.msra.mxu0 %v5347_v39 }
 0x123   : > { %4301 = vmatpush3.msra.mxu1 %v5184_v9  ;;  %4221 = vmatprep.subr.mxu0 %v5071_v0  ;;  %v6757_v9 = vand.u32 4294901760, %v5368_v61 }
 0x124   : > { %4302 = vmatprep.subr.mxu1 %v5071_v0  ;;  %4222 = vmatpush3.msra.mxu0 %v5361_v54 }
 0x125   : > { %4303 = vmatpush3.msra.mxu1 %v5187_v13  ;;  %4223 = vmatprep.subr.mxu0 %v5071_v0  ;;  %v6758_v13 = vand.u32 4294901760, %v5378_v4 }
 0x126   : > { %4304 = vmatprep.subr.mxu1 %v5071_v0  ;;  %4224 = vmatpush3.msra.mxu0 %v5368_v61 }
 0x127   : > { %4305 = vmatpush3.msra.mxu1 %v5193_v18  ;;  %4225 = vmatprep.subr.mxu0 %v5071_v0  ;;  %v1472_v18 = vld [vmem:[#allocation2 + $0xf0] sm:$0xff] }
 0x128   : > { %4306 = vmatprep.subr.mxu1 %v5071_v0  ;;  %4226 = vmatpush3.msra.mxu0 %v5378_v4 }
 0x129   : > { %4227 = vmatprep.mubr.msk.f32.mxu0 %vm5072_vm0, %v5071_v0  ;;  %4307 = vmatpush3.msra.mxu1 %v5198_v23  ;;  %v5571_v23 = vand.u32 4294901760, %v1472_v18 }
 0x12a   : > { %4228 = vmatmul.mubr.f32.vlgmr.msra.gmra.mxu0 %v5405_v35  ;;  %4265 = vmatprep.subr.mxu0 %v5071_v0 }
 0x12b   : > { %4308 = vmatprep.subr.mxu1 %v5071_v0  ;;  %4266 = vmatpush3.msra.mxu0 %v907_v28  ;;  %v5577_v28 = vsub.f32 %v1472_v18, %v5571_v23  ;;  %v1640_v18 = vsub.f32 %v5672_v19, %v1639_v3 }
 0x12c   : > { %4309 = vmatpush3.msra.mxu1 %v5200_v24  ;;  %4267 = vmatprep.subr.mxu0 %v5071_v0  ;;  %v5574_v24 = vsub.f32 %v1473_v17, %v5569_v22 }
 0x12d   : > { %4310 = vmatprep.subr.mxu1 %v5071_v0  ;;  %4268 = vmatpush3.msra.mxu0 %v914_v31  ;;  %v1583_v31 = vand.u32 4294901760, %v5577_v28 }
 0x12e   : > { %4311 = vmatpush3.msra.mxu1 %v5210_v33  ;;  %4269 = vmatprep.subr.mxu0 %v5071_v0  ;;  %v1576_v29 = vand.u32 4294901760, %v5574_v24 }
 0x12f   : > { %4312 = vmatprep.subr.mxu1 %v5071_v0  ;;  %4270 = vmatpush3.msra.mxu0 %v921_v37  ;;  %v1584_v33 = vsub.f32 %v5577_v28, %v1583_v31 }
 0x130   : > { %4313 = vmatpush3.msra.mxu1 %v5223_v38  ;;  %4271 = vmatprep.subr.mxu0 %v5071_v0  ;;  %v1577_v32 = vsub.f32 %v5574_v24, %v1576_v29  ;;  %v1471_v38 = vld [vmem:[#allocation2 + $0xe8] sm:$0xff] }
 0x131   : > { %4314 = vmatprep.subr.mxu1 %v5071_v0  ;;  %4272 = vmatpush3.msra.mxu0 %v928_v41  ;;  %v1585_v37 = vand.u32 4294901760, %v1584_v33  ;;  %v5593_v41 = vand.u32 4294901760, %v1471_v38 }
 0x132   : > { %4315 = vmatpush3.msra.mxu1 %v5235_v43  ;;  %4273 = vmatprep.subr.mxu0 %v5071_v0  ;;  %v1578_v34 = vand.u32 4294901760, %v1577_v32  ;;  %v1646_v32 = vand.u32 4294901760, %v5684_v45 }
 0x133   : > { %4316 = vmatprep.subr.mxu1 %v5071_v0  ;;  %4274 = vmatpush3.msra.mxu0 %v935_v44  ;;  %v5596_v43 = vsub.f32 %v1471_v38, %v5593_v41  ;;  %v5598_v44 = vand.u32 4294901760, %v1470_v42  ;;  %v1641_v38 = vand.u32 4294901760, %v1640_v18 }
 0x134   : > { %4317 = vmatpush3.msra.mxu1 %v5247_v48  ;;  %4275 = vmatprep.subr.mxu0 %v5071_v0 }
 0x135   : > { %4318 = vmatprep.subr.mxu1 %v5071_v0  ;;  %4276 = vmatpush3.msra.mxu0 %v942_v51  ;;  %v1590_v48 = vand.u32 4294901760, %v5596_v43  ;;  %v5604_v51 = vsub.f32 %v1470_v42, %v5598_v44  ;;  %v1647_v42 = vsub.f32 %v5684_v45, %v1646_v32 }
 0x136   : > { %4319 = vmatpush3.msra.mxu1 %v5314_v7  ;;  %4277 = vmatprep.subr.mxu0 %v5071_v0 }
 0x137   : > { %4320 = vmatprep.subr.mxu1 %v5071_v0  ;;  %4278 = vmatpush3.msra.mxu0 %v949_v55  ;;  %v1468_v55 = vld [vmem:[#allocation2 + $0xd0] sm:$0xff]  ;;  %v1591_v56 = vsub.f32 %v5596_v43, %v1590_v48 }
 0x138   : > { %4321 = vmatpush3.msra.mxu1 %v5319_v11  ;;  %4279 = vmatprep.subr.mxu0 %v5071_v0  ;;  %v5617_v7 = vand.u32 4294901760, %v1468_v55 }
 0x139   : > { %4322 = vmatprep.subr.mxu1 %v5071_v0  ;;  %4280 = vmatpush3.msra.mxu0 %v956_v59  ;;  %v1597_v59 = vand.u32 4294901760, %v5604_v51  ;;  %v1592_v11 = vand.u32 4294901760, %v1591_v56 }
 0x13a   : > { %4323 = vmatpush3.msra.mxu1 %v5327_v16  ;;  %4281 = vmatprep.subr.mxu0 %v5071_v0  ;;  %v5626_v16 = vsub.f32 %v1468_v55, %v5617_v7 }
 0x13b   : > { %4324 = vmatprep.subr.mxu1 %v5071_v0  ;;  %4282 = vmatpush3.msra.mxu0 %v963_v62  ;;  %v5615_v62 = vsub.f32 %v1469_v47, %v5606_v52 }
 0x13c   : > { %4325 = vmatpush3.msra.mxu1 %v5338_v26  ;;  %4283 = vmatprep.subr.mxu0 %v5071_v0  ;;  %v1611_v39 = vand.u32 4294901760, %v5626_v16 }
 0x13d   : > { %4326 = vmatprep.subr.mxu1 %v5071_v0  ;;  %4284 = vmatpush3.msra.mxu0 %v970_v14  ;;  %v1598_v14 = vsub.f32 %v5604_v51, %v1597_v59  ;;  %v1604_v15 = vand.u32 4294901760, %v5615_v62 }
 0x13e   : > { %4327 = vmatpush3.msra.mxu1 %v5350_v40  ;;  %4285 = vmatprep.subr.mxu0 %v5071_v0  ;;  %v5636_v40 = vand.u32 4294901760, %v1466_v25  ;;  %v1612_v61 = vsub.f32 %v5626_v16, %v1611_v39 }
 0x13f   : > { %4328 = vmatprep.subr.mxu1 %v5071_v0  ;;  %4286 = vmatpush3.msra.mxu0 %v977_v21  ;;  %v5629_v21 = vand.u32 4294901760, %v1467_v10  ;;  %v1599_v26 = vand.u32 4294901760, %v1598_v14 }
 0x140   : > { %4329 = vmatpush3.msra.mxu1 %v5357_v53  ;;  %4287 = vmatprep.subr.mxu0 %v5071_v0  ;;  %v1465_v53 = vld [vmem:[#allocation2 + $0xb8] sm:$0xff]  ;;  %v1613_v49 = vand.u32 4294901760, %v1612_v61 }
 0x141   : > { %4330 = vmatprep.subr.mxu1 %v5071_v0  ;;  %4288 = vmatpush3.msra.mxu0 %v984_v36  ;;  %v1605_v36 = vsub.f32 %v5615_v62, %v1604_v15 }
 0x142   : > { %4331 = vmatpush3.msra.mxu1 %v5370_v63  ;;  %4332 = vmatprep.mubr.msk.f32.mxu1 %vm5072_vm0, %v5071_v0  ;;  %v5647_v63 = vsub.f32 %v1466_v25, %v5636_v40 }
 0x143   : > { %4289 = vmatprep.subr.mxu0 %v5071_v0  ;;  %4333 = vmatmul.mubr.f32.vlgmr.msra.gmra.mxu1 %v5402_v30  ;;  %v1606_v54 = vand.u32 4294901760, %v1605_v36 }
 0x144   : > { %4290 = vmatpush3.msra.mxu0 %v991_v50  ;;  %4297 = vmatprep.mubr.msk.f32.mxu0 %vm5072_vm0, %v5071_v0  ;;  %v5640_v50 = vsub.f32 %v1467_v10, %v5629_v21  ;;  %v1625_v57 = vand.u32 4294901760, %v5647_v63  ;;  %v1459_v10 = vld [vmem:[#allocation2 + $0x88] sm:$0xff] }
 0x145   : > { %4291 = vmatprep.subr.mxu0 %v5071_v0  ;;  %4370 = vmatprep.subr.mxu1 %v5071_v0 }
 0x146   : > { %4292 = vmatpush3.msra.mxu0 %v998_v1  ;;  %4402 = vmatprep.mubr.msk.f32.mxu1 %vm5072_vm0, %v5071_v0  ;;  %v5649_v1 = vand.u32 4294901760, %v1465_v53  ;;  %v1618_v4 = vand.u32 4294901760, %v5640_v50  ;;  %v1626_v6 = vsub.f32 %v5647_v63, %v1625_v57 }
 0x147   : > { %4293 = vmatprep.subr.mxu0 %v5071_v0  ;;  %4371 = vmatpush3.msra.mxu1 %v1578_v34 }
 0x148   : > { %4294 = vmatpush3.msra.mxu0 %v6757_v9  ;;  %4372 = vmatprep.subr.mxu1 %v5071_v0  ;;  %v5657_v58 = vsub.f32 %v1465_v53, %v5649_v1  ;;  %v1619_v2 = vsub.f32 %v5640_v50, %v1618_v4  ;;  %v1627_v35 = vand.u32 4294901760, %v1626_v6  ;;  %v1458_v53 = vld [vmem:[#allocation2 + $0x80] sm:$0xff] }
 0x149   : > { %4295 = vmatprep.subr.mxu0 %v5071_v0  ;;  %4373 = vmatpush3.msra.mxu1 %v1585_v37  ;;  %v1460_v37 = vld [vmem:[#allocation2 + $0x90] sm:$0xff] }
 0x14a   : > { %4296 = vmatpush3.msra.mxu0 %v6758_v13  ;;  %4374 = vmatprep.subr.mxu1 %v5071_v0  ;;  %v1632_v12 = vand.u32 4294901760, %v5657_v58  ;;  %v1620_v27 = vand.u32 4294901760, %v1619_v2  ;;  %v1461_v13 = vld [vmem:[#allocation2 + $0x98] sm:$0xff]  ;;  %v5709_v55 = vand.u32 4294901760, %v1460_v37 }
 0x14b   : > { %4298 = vmatmul.mubr.f32.vlgmr.msra.gmra.mxu0 %v5402_v30  ;;  %4335 = vmatprep.subr.mxu0 %v5071_v0  ;;  %v1462_v30 = vld [vmem:[#allocation2 + $0xa0] sm:$0xff]  ;;  %v5695_v33 = vand.u32 4294901760, %v1461_v13 }
 0x14c   : > { %4367 = vmatprep.mubr.msk.f32.mxu0 %vm5072_vm0, %v5071_v0  ;;  %4336 = vmatpush3.msra.mxu0 %v5569_v22  ;;  %v1633_v8 = vsub.f32 %v5657_v58, %v1632_v12  ;;  %v5687_v9 = vand.u32 4294901760, %v1462_v30  ;;  %v5717_v25 = vsub.f32 %v1460_v37, %v5709_v55 }
 0x14d   : > { %4337 = vmatprep.subr.mxu0 %v5071_v0  ;;  %4375 = vmatpush3.msra.mxu1 %v1592_v11  ;;  %v5707_v47 = vsub.f32 %v1461_v13, %v5695_v33  ;;  %v1648_v11 = vand.u32 4294901760, %v1647_v42 }
 0x14e   : > { %4338 = vmatpush3.msra.mxu0 %v5571_v23  ;;  %4376 = vmatprep.subr.mxu1 %v5071_v0  ;;  %v1634_v17 = vand.u32 4294901760, %v1633_v8  ;;  %v5699_v34 = vsub.f32 %v1462_v30, %v5687_v9  ;;  %v6748_v61 = vand.u32 4294901760, %v5717_v25 }
 0x14f   : > { %4339 = vmatprep.subr.mxu0 %v5071_v0  ;;  %4377 = vmatpush3.msra.mxu1 %v1599_v26  ;;  %v1660_v14 = vand.u32 4294901760, %v5707_v47  ;;  %v5719_v26 = vand.u32 4294901760, %v1459_v10 }
 0x150   : > { %4340 = vmatpush3.msra.mxu0 %v5593_v41  ;;  %4378 = vmatprep.subr.mxu1 %v5071_v0  ;;  %v1653_v56 = vand.u32 4294901760, %v5699_v34  ;;  %v1668_v6 = vsub.f32 %v5717_v25, %v6748_v61 }
 0x151   : > { %4341 = vmatprep.subr.mxu0 %v5071_v0  ;;  %4379 = vmatpush3.msra.mxu1 %v1606_v54  ;;  %v1661_v54 = vsub.f32 %v5707_v47, %v1660_v14  ;;  %v5732_v46 = vsub.f32 %v1459_v10, %v5719_v26 }
 0x152   : > { %4342 = vmatpush3.msra.mxu0 %v5598_v44  ;;  %4380 = vmatprep.subr.mxu1 %v5071_v0  ;;  %v1654_v36 = vsub.f32 %v5699_v34, %v1653_v56 }
 0x153   : > { %4343 = vmatprep.subr.mxu0 %v5071_v0  ;;  %4381 = vmatpush3.msra.mxu1 %v1613_v49  ;;  %v5734_v49 = vand.u32 4294901760, %v1458_v53  ;;  %v1662_v5 = vand.u32 4294901760, %v1661_v54 }
 0x154   : > { %4344 = vmatpush3.msra.mxu0 %v5606_v52  ;;  %4382 = vmatprep.subr.mxu1 %v5071_v0  ;;  %v1655_v2 = vand.u32 4294901760, %v1654_v36 }
 0x155   : > { %4345 = vmatprep.subr.mxu0 %v5071_v0  ;;  %4383 = vmatpush3.msra.mxu1 %v1620_v27  ;;  %v6747_v27 = vand.u32 4294901760, %v5732_v46  ;;  %v5744_v30 = vsub.f32 %v1458_v53, %v5734_v49 }
 0x156   : > { %4346 = vmatpush3.msra.mxu0 %v5617_v7  ;;  %4384 = vmatprep.subr.mxu1 %v5071_v0 }
 0x157   : > { %4347 = vmatprep.subr.mxu0 %v5071_v0  ;;  %4385 = vmatpush3.msra.mxu1 %v1627_v35  ;;  %v1669_v35 = vand.u32 4294901760, %v1668_v6  ;;  %v1675_v8 = vsub.f32 %v5732_v46, %v6747_v27  ;;  %v6746_v13 = vand.u32 4294901760, %v5744_v30 }
 0x158   : > { %4348 = vmatpush3.msra.mxu0 %v5629_v21  ;;  %4386 = vmatprep.subr.mxu1 %v5071_v0 }
 0x159   : > { %4349 = vmatprep.subr.mxu0 %v5071_v0  ;;  %4387 = vmatpush3.msra.mxu1 %v1634_v17  ;;  %v1676_v17 = vand.u32 4294901760, %v1675_v8  ;;  %v1682_v18 = vsub.f32 %v5744_v30, %v6746_v13 }
 0x15a   : > { %4350 = vmatpush3.msra.mxu0 %v5636_v40  ;;  %4388 = vmatprep.subr.mxu1 %v5071_v0 }
 0x15b   : > { %4351 = vmatprep.subr.mxu0 %v5071_v0  ;;  %4389 = vmatpush3.msra.mxu1 %v1641_v38  ;;  %v1683_v37 = vand.u32 4294901760, %v1682_v18 }
 0x15c   : > { %4352 = vmatpush3.msra.mxu0 %v5649_v1  ;;  %4390 = vmatprep.subr.mxu1 %v5071_v0 }
 0x15d   : > { %4353 = vmatprep.subr.mxu0 %v5071_v0  ;;  %4391 = vmatpush3.msra.mxu1 %v1648_v11 }
 0x15e   : > { %4354 = vmatpush3.msra.mxu0 %v5659_v60  ;;  %4392 = vmatprep.subr.mxu1 %v5071_v0 }
 0x15f   : > { %4355 = vmatprep.subr.mxu0 %v5071_v0  ;;  %4393 = vmatpush3.msra.mxu1 %v1655_v2 }
 0x160   : > { %4356 = vmatpush3.msra.mxu0 %v5674_v20  ;;  %4394 = vmatprep.subr.mxu1 %v5071_v0 }
 0x161   : > { %4357 = vmatprep.subr.mxu0 %v5071_v0  ;;  %4395 = vmatpush3.msra.mxu1 %v1662_v5  ;;  %v3662_v5 = vld [vmem:[%s6738_s3] ss:$0 sm:$0xff] }
 0x162   : > { %4358 = vmatpush3.msra.mxu0 %v5687_v9  ;;  %4396 = vmatprep.subr.mxu1 %v5071_v0 }
 0x163   : > { %4359 = vmatprep.subr.mxu0 %v5071_v0  ;;  %4397 = vmatpush3.msra.mxu1 %v1669_v35 }
 0x164   : > { %4360 = vmatpush3.msra.mxu0 %v5695_v33  ;;  %4398 = vmatprep.subr.mxu1 %v5071_v0 }
 0x165   : > { %4361 = vmatprep.subr.mxu0 %v5071_v0  ;;  %4399 = vmatpush3.msra.mxu1 %v1676_v17 }
 0x166   : > { %4362 = vmatpush3.msra.mxu0 %v5709_v55  ;;  %4400 = vmatprep.subr.mxu1 %v5071_v0 }
 0x167   : > { %4363 = vmatprep.subr.mxu0 %v5071_v0  ;;  %4401 = vmatpush3.msra.mxu1 %v1683_v37 }
 0x168   : > { %4364 = vmatpush3.msra.mxu0 %v5719_v26  ;;  %4440 = vmatprep.subr.mxu1 %v5071_v0 }
 0x169   : > { %4365 = vmatprep.subr.mxu0 %v5071_v0 }
 0x16a   : > { %4366 = vmatpush3.msra.mxu0 %v5734_v49 }
 0x16b   : > { %4405 = vmatprep.subr.mxu0 %v5071_v0 }
 0x1c1   : > { %v1051_v38 = vpop.f32.mrf.mxu1 }
 0x1c3   : > { %v4194_v42 = vpop.f32.mrf.mxu1 }
 0x1c9   : > { %v900_v10 = vpop.f32.mrf.mxu0 }
 0x1ca   : > { %v901_v6 = vadd.f32 %v3662_v5, %v900_v10 }
 0x1cb   : > { %v4159_v11 = vpop.f32.mrf.mxu0 }
 0x1cc   : > { %v1052_v8 = vadd.f32 %v1051_v38, %v901_v6 }
 0x1e1   : > { %v1244_v36 = vpop.f32.mrf.mxu1 }
 0x1e3   : > { %v4264_v53 = vpop.f32.mrf.mxu1 }
 0x1ea   : > { %v1155_v54 = vpop.f32.mrf.mxu0 }
 0x1eb   : > { %v1156_v18 = vadd.f32 %v1155_v54, %v1052_v8 }
 0x1ec   : > { %v4229_v2 = vpop.f32.mrf.mxu0 }
 0x1ed   : > { %v1245_v37 = vadd.f32 %v1244_v36, %v1156_v18  ;;  %v2133_v36 = vld [vmem:[#allocation2 + $0x130] sm:$0xff] }
 0x203   : > { %v1450_v35 = vpop.f32.mrf.mxu1 }
 0x205   : > { %v4334_v17 = vpop.f32.mrf.mxu1 }
 0x206   : > { %v2132_v17 = vld [vmem:[#allocation2 + $0x128] sm:$0xff] }
 0x20b   : > { %v1363_v13 = vpop.f32.mrf.mxu0 }
 0x20c   : > { %v1364_v27 = vadd.f32 %v1363_v13, %v1245_v37 }
 0x20d   : > { %v4299_v42 = vpop.f32.mrf.mxu0 }
 0x20e   : > { %v1451_v61 = vadd.f32 %v1450_v35, %v1364_v27  ;;  %v6022_v35 = vand.u32 4294901760, %v2133_v36 }
 0x210   : > { %5004 = vtanh.f32 %v1451_v61  ;;  %v6035_v42 = vsub.f32 %v2133_v36, %v6022_v35 }
 0x21d   : > { %v5005_v11 = vpop.eup %5004 }
 0x21e   : > { %3663 = vst [vmem:[%s5399_s15 + $0x8] sm:$0xff] %v5005_v11  ;;  %v5765_v53 = vand.u32 4294901760, %v5005_v11 }
 0x220   : > { %4403 = vmatmul.mubr.f32.vlgmr.msra.gmra.mxu1 %v5765_v53  ;;  %v5769_v2 = vsub.f32 %v5005_v11, %v5765_v53  ;;  %v6037_v11 = vand.u32 4294901760, %v2132_v17 }
 0x221   : > { %4441 = vmatpush3.msra.mxu1 %v5569_v22  ;;  %4472 = vmatprep.mubr.msk.f32.mxu1 %vm5072_vm0, %v5071_v0 }
 0x222   : > { %4442 = vmatprep.subr.mxu1 %v5071_v0  ;;  %v1565_v13 = vand.u32 4294901760, %v5769_v2 }
 0x223   : > { %4443 = vmatpush3.msra.mxu1 %v5571_v23 }
 0x224   : > { %4444 = vmatprep.subr.mxu1 %v5071_v0  ;;  %v1566_v61 = vsub.f32 %v5769_v2, %v1565_v13 }
 0x225   : > { %4445 = vmatpush3.msra.mxu1 %v5593_v41 }
 0x226   : > { %4446 = vmatprep.subr.mxu1 %v5071_v0  ;;  %v1567_v27 = vand.u32 4294901760, %v1566_v61 }
 0x227   : > { %4447 = vmatpush3.msra.mxu1 %v5598_v44 }
 0x228   : > { %4448 = vmatprep.subr.mxu1 %v5071_v0  ;;  %4368 = vmatmul.mubr.f32.vlgmr.msra.gmra.mxu0 %v1567_v27  ;;  %v2308_v27 = vand.u32 4294901760, %v6035_v42 }
 0x229   : > { %4406 = vmatpush3.msra.mxu0 %v5574_v24  ;;  %4449 = vmatpush3.msra.mxu1 %v5606_v52  ;;  %v6761_v24 = vand.u32 4294901760, %v5744_v30 }
 0x22a   : > { %4407 = vmatprep.subr.mxu0 %v5071_v0  ;;  %4450 = vmatprep.subr.mxu1 %v5071_v0 }
 0x22b   : > { %4408 = vmatpush3.msra.mxu0 %v5577_v28  ;;  %4451 = vmatpush3.msra.mxu1 %v5617_v7  ;;  %v2142_v28 = vld [vmem:[#allocation2 + $0x178] sm:$0xff] }
 0x22c   : > { %4409 = vmatprep.subr.mxu0 %v5071_v0  ;;  %4452 = vmatprep.subr.mxu1 %v5071_v0 }
 0x22d   : > { %4410 = vmatpush3.msra.mxu0 %v5596_v43  ;;  %4453 = vmatpush3.msra.mxu1 %v5629_v21 }
 0x22e   : > { %4411 = vmatprep.subr.mxu0 %v5071_v0  ;;  %4454 = vmatprep.subr.mxu1 %v5071_v0 }
 0x22f   : > { %4412 = vmatpush3.msra.mxu0 %v5604_v51  ;;  %4455 = vmatpush3.msra.mxu1 %v5636_v40 }
 0x230   : > { %4413 = vmatprep.subr.mxu0 %v5071_v0  ;;  %4456 = vmatprep.subr.mxu1 %v5071_v0 }
 0x231   : > { %4414 = vmatpush3.msra.mxu0 %v5615_v62  ;;  %4457 = vmatpush3.msra.mxu1 %v5649_v1 }
 0x232   : > { %4415 = vmatprep.subr.mxu0 %v5071_v0  ;;  %4458 = vmatprep.subr.mxu1 %v5071_v0 }
 0x233   : > { %4416 = vmatpush3.msra.mxu0 %v5626_v16  ;;  %4459 = vmatpush3.msra.mxu1 %v5659_v60 }
 0x234   : > { %4417 = vmatprep.subr.mxu0 %v5071_v0  ;;  %4460 = vmatprep.subr.mxu1 %v5071_v0 }
 0x235   : > { %4418 = vmatpush3.msra.mxu0 %v5640_v50  ;;  %4461 = vmatpush3.msra.mxu1 %v5674_v20  ;;  %v2138_v50 = vld [vmem:[#allocation2 + $0x158] sm:$0xff] }
 0x236   : > { %4419 = vmatprep.subr.mxu0 %v5071_v0  ;;  %4462 = vmatprep.subr.mxu1 %v5071_v0 }
 0x237   : > { %4420 = vmatpush3.msra.mxu0 %v5647_v63  ;;  %4463 = vmatpush3.msra.mxu1 %v5687_v9 }
 0x238   : > { %4421 = vmatprep.subr.mxu0 %v5071_v0  ;;  %4464 = vmatprep.subr.mxu1 %v5071_v0 }
 0x239   : > { %4422 = vmatpush3.msra.mxu0 %v5657_v58  ;;  %4465 = vmatpush3.msra.mxu1 %v5695_v33 }
 0x23a   : > { %4423 = vmatprep.subr.mxu0 %v5071_v0  ;;  %4466 = vmatprep.subr.mxu1 %v5071_v0 }
 0x23b   : > { %4424 = vmatpush3.msra.mxu0 %v5672_v19  ;;  %4467 = vmatpush3.msra.mxu1 %v5709_v55 }
 0x23c   : > { %4425 = vmatprep.subr.mxu0 %v5071_v0  ;;  %4468 = vmatprep.subr.mxu1 %v5071_v0 }
 0x23d   : > { %4426 = vmatpush3.msra.mxu0 %v5684_v45  ;;  %4469 = vmatpush3.msra.mxu1 %v5719_v26 }
 0x23e   : > { %4427 = vmatprep.subr.mxu0 %v5071_v0  ;;  %4470 = vmatprep.subr.mxu1 %v5071_v0 }
 0x23f   : > { %4428 = vmatpush3.msra.mxu0 %v5699_v34  ;;  %4471 = vmatpush3.msra.mxu1 %v5734_v49  ;;  %v2135_v34 = vld [vmem:[#allocation2 + $0x140] sm:$0xff] }
 0x240   : > { %4429 = vmatprep.subr.mxu0 %v5071_v0  ;;  %4473 = vmatmul.mubr.f32.vlgmr.msra.gmra.mxu1 %v1565_v13 }
 0x241   : > { %4510 = vmatprep.subr.mxu1 %v5071_v0  ;;  %4430 = vmatpush3.msra.mxu0 %v5707_v47 }
 0x242   : > { %4511 = vmatpush3.msra.mxu1 %v5569_v22  ;;  %4431 = vmatprep.subr.mxu0 %v5071_v0  ;;  %v6759_v22 = vand.u32 4294901760, %v5717_v25 }
 0x243   : > { %4512 = vmatprep.subr.mxu1 %v5071_v0  ;;  %4432 = vmatpush3.msra.mxu0 %v5717_v25 }
 0x244   : > { %4513 = vmatpush3.msra.mxu1 %v5571_v23  ;;  %4433 = vmatprep.subr.mxu0 %v5071_v0  ;;  %v6760_v23 = vand.u32 4294901760, %v5732_v46 }
 0x245   : > { %4514 = vmatprep.subr.mxu1 %v5071_v0  ;;  %4434 = vmatpush3.msra.mxu0 %v5732_v46 }
 0x246   : > { %4515 = vmatpush3.msra.mxu1 %v5593_v41  ;;  %4435 = vmatprep.subr.mxu0 %v5071_v0 }
 0x247   : > { %4516 = vmatprep.subr.mxu1 %v5071_v0  ;;  %4436 = vmatpush3.msra.mxu0 %v5744_v30 }
 0x248   : > { %4437 = vmatprep.mubr.msk.f32.mxu0 %vm5072_vm0, %v5071_v0  ;;  %4517 = vmatpush3.msra.mxu1 %v5598_v44 }
 0x249   : > { %4438 = vmatmul.mubr.f32.vlgmr.msra.gmra.mxu0 %v5769_v2  ;;  %4475 = vmatprep.subr.mxu0 %v5071_v0  ;;  %v2131_v2 = vld [vmem:[#allocation2 + $0x120] sm:$0xff] }
 0x24a   : > { %4518 = vmatprep.subr.mxu1 %v5071_v0  ;;  %4476 = vmatpush3.msra.mxu0 %v1576_v29  ;;  %v2141_v29 = vld [vmem:[#allocation2 + $0x170] sm:$0xff] }
 0x24b   : > { %4519 = vmatpush3.msra.mxu1 %v5606_v52  ;;  %4477 = vmatprep.subr.mxu0 %v5071_v0  ;;  %v5934_v41 = vand.u32 4294901760, %v2141_v29 }
 0x24c   : > { %4520 = vmatprep.subr.mxu1 %v5071_v0  ;;  %4478 = vmatpush3.msra.mxu0 %v1583_v31  ;;  %v5932_v31 = vand.u32 4294901760, %v2142_v28 }
 0x24d   : > { %4521 = vmatpush3.msra.mxu1 %v5617_v7  ;;  %4479 = vmatprep.subr.mxu0 %v5071_v0  ;;  %v5940_v44 = vsub.f32 %v2141_v29, %v5934_v41  ;;  %v2309_v29 = vsub.f32 %v6035_v42, %v2308_v27 }
 0x24e   : > { %4522 = vmatprep.subr.mxu1 %v5071_v0  ;;  %4480 = vmatpush3.msra.mxu0 %v1590_v48  ;;  %v5937_v43 = vsub.f32 %v2142_v28, %v5932_v31 }
 0x24f   : > { %4523 = vmatpush3.msra.mxu1 %v5629_v21  ;;  %4481 = vmatprep.subr.mxu0 %v5071_v0  ;;  %v2252_v51 = vand.u32 4294901760, %v5940_v44  ;;  %v2139_v21 = vld [vmem:[#allocation2 + $0x160] sm:$0xff] }
 0x250   : > { %4524 = vmatprep.subr.mxu1 %v5071_v0  ;;  %4482 = vmatpush3.msra.mxu0 %v1597_v59  ;;  %v2245_v48 = vand.u32 4294901760, %v5937_v43 }
 0x251   : > { %4525 = vmatpush3.msra.mxu1 %v5636_v40  ;;  %4483 = vmatprep.subr.mxu0 %v5071_v0  ;;  %v2253_v59 = vsub.f32 %v5940_v44, %v2252_v51  ;;  %v5961_v40 = vand.u32 4294901760, %v2139_v21 }
 0x252   : > { %4526 = vmatprep.subr.mxu1 %v5071_v0  ;;  %4484 = vmatpush3.msra.mxu0 %v1604_v15  ;;  %v2246_v52 = vsub.f32 %v5937_v43, %v2245_v48  ;;  %v2140_v15 = vld [vmem:[#allocation2 + $0x168] sm:$0xff] }
 0x253   : > { %4527 = vmatpush3.msra.mxu1 %v5649_v1  ;;  %4485 = vmatprep.subr.mxu0 %v5071_v0  ;;  %v2254_v7 = vand.u32 4294901760, %v2253_v59  ;;  %v5956_v16 = vand.u32 4294901760, %v2140_v15  ;;  %v5967_v1 = vsub.f32 %v2139_v21, %v5961_v40 }
 0x254   : > { %4528 = vmatprep.subr.mxu1 %v5071_v0  ;;  %4486 = vmatpush3.msra.mxu0 %v1611_v39  ;;  %v2247_v62 = vand.u32 4294901760, %v2246_v52 }
 0x255   : > { %4529 = vmatpush3.msra.mxu1 %v5659_v60  ;;  %4487 = vmatprep.subr.mxu0 %v5071_v0  ;;  %v5959_v39 = vsub.f32 %v2140_v15, %v5956_v16  ;;  %v2266_v60 = vand.u32 4294901760, %v5967_v1  ;;  %v2310_v15 = vand.u32 4294901760, %v2309_v29 }
 0x256   : > { %4530 = vmatprep.subr.mxu1 %v5071_v0  ;;  %4488 = vmatpush3.msra.mxu0 %v1618_v4  ;;  %v5969_v4 = vand.u32 4294901760, %v2138_v50 }
 0x257   : > { %4531 = vmatpush3.msra.mxu1 %v5674_v20  ;;  %4489 = vmatprep.subr.mxu0 %v5071_v0  ;;  %v2259_v63 = vand.u32 4294901760, %v5959_v39  ;;  %v2136_v20 = vld [vmem:[#allocation2 + $0x148] sm:$0xff]  ;;  %v2267_v45 = vsub.f32 %v5967_v1, %v2266_v60 }
 0x258   : > { %4532 = vmatprep.subr.mxu1 %v5071_v0  ;;  %4490 = vmatpush3.msra.mxu0 %v1625_v57  ;;  %v2137_v57 = vld [vmem:[#allocation2 + $0x150] sm:$0xff] }
 0x259   : > { %4533 = vmatpush3.msra.mxu1 %v5687_v9  ;;  %4491 = vmatprep.subr.mxu0 %v5071_v0  ;;  %v2260_v58 = vsub.f32 %v5959_v39, %v2259_v63  ;;  %v5980_v19 = vand.u32 4294901760, %v2137_v57  ;;  %v2268_v47 = vand.u32 4294901760, %v2267_v45 }
 0x25a   : > { %4534 = vmatprep.subr.mxu1 %v5071_v0  ;;  %4492 = vmatpush3.msra.mxu0 %v1632_v12  ;;  %v5978_v12 = vsub.f32 %v2138_v50, %v5969_v4 }
 0x25b   : > { %4535 = vmatpush3.msra.mxu1 %v5695_v33  ;;  %4493 = vmatprep.subr.mxu0 %v5071_v0  ;;  %v5992_v33 = vand.u32 4294901760, %v2136_v20 }
 0x25c   : > { %4536 = vmatprep.subr.mxu1 %v5071_v0  ;;  %4494 = vmatpush3.msra.mxu0 %v1639_v3  ;;  %v2261_v3 = vand.u32 4294901760, %v2260_v58  ;;  %v2273_v9 = vand.u32 4294901760, %v5978_v12 }
 0x25d   : > { %4537 = vmatpush3.msra.mxu1 %v5709_v55  ;;  %4495 = vmatprep.subr.mxu0 %v5071_v0  ;;  %v6003_v25 = vsub.f32 %v2136_v20, %v5992_v33  ;;  %v2128_v20 = vld [vmem:[#allocation2 + $0x108] sm:$0xff] }
 0x25e   : > { %4538 = vmatprep.subr.mxu1 %v5071_v0  ;;  %4496 = vmatpush3.msra.mxu0 %v1646_v32  ;;  %v5989_v32 = vsub.f32 %v2137_v57, %v5980_v19  ;;  %v2274_v55 = vsub.f32 %v5978_v12, %v2273_v9 }
 0x25f   : > { %4539 = vmatpush3.msra.mxu1 %v5719_v26  ;;  %4497 = vmatprep.subr.mxu0 %v5071_v0  ;;  %v2134_v26 = vld [vmem:[#allocation2 + $0x138] sm:$0xff]  ;;  %v2287_v10 = vand.u32 4294901760, %v6003_v25 }
 0x260   : > { %4540 = vmatprep.subr.mxu1 %v5071_v0  ;;  %4498 = vmatpush3.msra.mxu0 %v1653_v56  ;;  %v2280_v56 = vand.u32 4294901760, %v5989_v32  ;;  %v2275_v46 = vand.u32 4294901760, %v2274_v55  ;;  %v6012_v38 = vand.u32 4294901760, %v2134_v26 }
 0x261   : > { %4541 = vmatpush3.msra.mxu1 %v5734_v49  ;;  %4542 = vmatprep.mubr.msk.f32.mxu1 %vm5072_vm0, %v5071_v0  ;;  %v2288_v8 = vsub.f32 %v6003_v25, %v2287_v10 }
 0x262   : > { %4499 = vmatprep.subr.mxu0 %v5071_v0  ;;  %4543 = vmatmul.mubr.f32.vlgmr.msra.gmra.mxu1 %v5765_v53  ;;  %v2281_v49 = vsub.f32 %v5989_v32, %v2280_v56  ;;  %v6020_v6 = vsub.f32 %v2134_v26, %v6012_v38  ;;  %v2127_v26 = vld [vmem:[#allocation2 + $0x100] sm:$0xff] }
 0x263   : > { %4500 = vmatpush3.msra.mxu0 %v1660_v14  ;;  %4507 = vmatprep.mubr.msk.f32.mxu0 %vm5072_vm0, %v5071_v0  ;;  %v5999_v14 = vand.u32 4294901760, %v2135_v34 }
 0x264   : > { %4501 = vmatprep.subr.mxu0 %v5071_v0  ;;  %4580 = vmatprep.subr.mxu1 %v5071_v0  ;;  %v2282_v54 = vand.u32 4294901760, %v2281_v49  ;;  %v2301_v37 = vand.u32 4294901760, %v6020_v6 }
 0x265   : > { %4502 = vmatpush3.msra.mxu0 %v6759_v22  ;;  %4612 = vmatprep.mubr.msk.f32.mxu1 %vm5072_vm0, %v5071_v0  ;;  %v6010_v30 = vsub.f32 %v2135_v34, %v5999_v14  ;;  %v6047_v22 = vsub.f32 %v2132_v17, %v6037_v11 }
 0x266   : > { %4503 = vmatprep.subr.mxu0 %v5071_v0  ;;  %4581 = vmatpush3.msra.mxu1 %v2247_v62  ;;  %v2302_v61 = vsub.f32 %v6020_v6, %v2301_v37 }
 0x267   : > { %4504 = vmatpush3.msra.mxu0 %v6760_v23  ;;  %4582 = vmatprep.subr.mxu1 %v5071_v0  ;;  %v2294_v5 = vand.u32 4294901760, %v6010_v30  ;;  %v6050_v23 = vand.u32 4294901760, %v2131_v2  ;;  %v2315_v52 = vand.u32 4294901760, %v6047_v22 }
 0x268   : > { %4505 = vmatprep.subr.mxu0 %v5071_v0  ;;  %4583 = vmatpush3.msra.mxu1 %v2254_v7  ;;  %v2303_v28 = vand.u32 4294901760, %v2302_v61  ;;  %v2129_v7 = vld [vmem:[#allocation2 + $0x110] sm:$0xff] }
 0x269   : > { %4506 = vmatpush3.msra.mxu0 %v6761_v24  ;;  %4584 = vmatprep.subr.mxu1 %v5071_v0  ;;  %v2295_v18 = vsub.f32 %v6010_v30, %v2294_v5  ;;  %v2130_v24 = vld [vmem:[#allocation2 + $0x118] sm:$0xff]  ;;  %v6062_v62 = vsub.f32 %v2131_v2, %v6050_v23  ;;  %v2316_v21 = vsub.f32 %v6047_v22, %v2315_v52  ;;  %v6072_v57 = vand.u32 4294901760, %v2129_v7 }
 0x26a   : > { %4508 = vmatmul.mubr.f32.vlgmr.msra.gmra.mxu0 %v5765_v53  ;;  %4545 = vmatprep.subr.mxu0 %v5071_v0  ;;  %v2289_v53 = vand.u32 4294901760, %v2288_v8  ;;  %v6058_v59 = vand.u32 4294901760, %v2130_v24 }
 0x26b   : > { %4577 = vmatprep.mubr.msk.f32.mxu0 %vm5072_vm0, %v5071_v0  ;;  %4546 = vmatpush3.msra.mxu0 %v5932_v31  ;;  %v2296_v13 = vand.u32 4294901760, %v2295_v18  ;;  %v2322_v58 = vand.u32 4294901760, %v6062_v62  ;;  %v6080_v34 = vsub.f32 %v2129_v7, %v6072_v57 }
 0x26c   : > { %4547 = vmatprep.subr.mxu0 %v5071_v0  ;;  %4585 = vmatpush3.msra.mxu1 %v2261_v3  ;;  %v6070_v50 = vsub.f32 %v2130_v24, %v6058_v59  ;;  %v2317_v3 = vand.u32 4294901760, %v2316_v21 }
 0x26d   : > { %4548 = vmatpush3.msra.mxu0 %v5934_v41  ;;  %4586 = vmatprep.subr.mxu1 %v5071_v0  ;;  %v2323_v55 = vsub.f32 %v6062_v62, %v2322_v58  ;;  %v6751_v49 = vand.u32 4294901760, %v6080_v34 }
 0x26e   : > { %4549 = vmatprep.subr.mxu0 %v5071_v0  ;;  %4587 = vmatpush3.msra.mxu1 %v2268_v47  ;;  %v2329_v45 = vand.u32 4294901760, %v6070_v50  ;;  %v6082_v47 = vand.u32 4294901760, %v2128_v20 }
 0x26f   : > { %4550 = vmatpush3.msra.mxu0 %v5956_v16  ;;  %4588 = vmatprep.subr.mxu1 %v5071_v0  ;;  %v2324_v8 = vand.u32 4294901760, %v2323_v55  ;;  %v2337_v18 = vsub.f32 %v6080_v34, %v6751_v49 }
 0x270   : > { %4551 = vmatprep.subr.mxu0 %v5071_v0  ;;  %4589 = vmatpush3.msra.mxu1 %v2275_v46  ;;  %v2330_v46 = vsub.f32 %v6070_v50, %v2329_v45  ;;  %v6095_v36 = vsub.f32 %v2128_v20, %v6082_v47 }
 0x271   : > { %4552 = vmatpush3.msra.mxu0 %v5961_v40  ;;  %4590 = vmatprep.subr.mxu1 %v5071_v0 }
 0x272   : > { %4553 = vmatprep.subr.mxu0 %v5071_v0  ;;  %4591 = vmatpush3.msra.mxu1 %v2282_v54  ;;  %v6097_v54 = vand.u32 4294901760, %v2127_v26  ;;  %v2331_v17 = vand.u32 4294901760, %v2330_v46 }
 0x273   : > { %4554 = vmatpush3.msra.mxu0 %v5969_v4  ;;  %4592 = vmatprep.subr.mxu1 %v5071_v0 }
 0x274   : > { %4555 = vmatprep.subr.mxu0 %v5071_v0  ;;  %4593 = vmatpush3.msra.mxu1 %v2289_v53  ;;  %v6750_v53 = vand.u32 4294901760, %v6095_v36  ;;  %v6107_v2 = vsub.f32 %v2127_v26, %v6097_v54 }
 0x275   : > { %4556 = vmatpush3.msra.mxu0 %v5980_v19  ;;  %4594 = vmatprep.subr.mxu1 %v5071_v0 }
 0x276   : > { %4557 = vmatprep.subr.mxu0 %v5071_v0  ;;  %4595 = vmatpush3.msra.mxu1 %v2296_v13  ;;  %v2338_v13 = vand.u32 4294901760, %v2337_v18  ;;  %v2344_v61 = vsub.f32 %v6095_v36, %v6750_v53  ;;  %v6749_v24 = vand.u32 4294901760, %v6107_v2 }
 0x277   : > { %4558 = vmatpush3.msra.mxu0 %v5992_v33  ;;  %4596 = vmatprep.subr.mxu1 %v5071_v0 }
 0x278   : > { %4559 = vmatprep.subr.mxu0 %v5071_v0  ;;  %4597 = vmatpush3.msra.mxu1 %v2303_v28  ;;  %v2345_v28 = vand.u32 4294901760, %v2344_v61  ;;  %v2351_v29 = vsub.f32 %v6107_v2, %v6749_v24 }
 0x279   : > { %4560 = vmatpush3.msra.mxu0 %v5999_v14  ;;  %4598 = vmatprep.subr.mxu1 %v5071_v0 }
 0x27a   : > { %4561 = vmatprep.subr.mxu0 %v5071_v0  ;;  %4599 = vmatpush3.msra.mxu1 %v2310_v15  ;;  %v2352_v7 = vand.u32 4294901760, %v2351_v29 }
 0x27b   : > { %4562 = vmatpush3.msra.mxu0 %v6012_v38  ;;  %4600 = vmatprep.subr.mxu1 %v5071_v0 }
 0x27c   : > { %4563 = vmatprep.subr.mxu0 %v5071_v0  ;;  %4601 = vmatpush3.msra.mxu1 %v2317_v3 }
 0x27d   : > { %4564 = vmatpush3.msra.mxu0 %v6022_v35  ;;  %4602 = vmatprep.subr.mxu1 %v5071_v0 }
 0x27e   : > { %4565 = vmatprep.subr.mxu0 %v5071_v0  ;;  %4603 = vmatpush3.msra.mxu1 %v2324_v8 }
 0x27f   : > { %4566 = vmatpush3.msra.mxu0 %v6037_v11  ;;  %4604 = vmatprep.subr.mxu1 %v5071_v0 }
 0x280   : > { %4567 = vmatprep.subr.mxu0 %v5071_v0  ;;  %4605 = vmatpush3.msra.mxu1 %v2331_v17  ;;  %v3665_v17 = vld [vmem:[%s6738_s3 + $0x1] ss:$0 sm:$0xff] }
 0x281   : > { %4568 = vmatpush3.msra.mxu0 %v6050_v23  ;;  %4606 = vmatprep.subr.mxu1 %v5071_v0 }
 0x282   : > { %4569 = vmatprep.subr.mxu0 %v5071_v0  ;;  %4607 = vmatpush3.msra.mxu1 %v2338_v13 }
 0x283   : > { %4570 = vmatpush3.msra.mxu0 %v6058_v59  ;;  %4608 = vmatprep.subr.mxu1 %v5071_v0 }
 0x284   : > { %4571 = vmatprep.subr.mxu0 %v5071_v0  ;;  %4609 = vmatpush3.msra.mxu1 %v2345_v28 }
 0x285   : > { %4572 = vmatpush3.msra.mxu0 %v6072_v57  ;;  %4610 = vmatprep.subr.mxu1 %v5071_v0 }
 0x286   : > { %4573 = vmatprep.subr.mxu0 %v5071_v0  ;;  %4611 = vmatpush3.msra.mxu1 %v2352_v7 }
 0x287   : > { %4574 = vmatpush3.msra.mxu0 %v6082_v47  ;;  %4650 = vmatprep.subr.mxu1 %v5071_v0 }
 0x288   : > { %4575 = vmatprep.subr.mxu0 %v5071_v0 }
 0x289   : > { %4576 = vmatpush3.msra.mxu0 %v6097_v54 }
 0x28a   : > { %4615 = vmatprep.subr.mxu0 %v5071_v0 }
 0x2e0   : > { %v1720_v15 = vpop.f32.mrf.mxu1 }
 0x2e2   : > { %v4404_v21 = vpop.f32.mrf.mxu1 }
 0x2e8   : > { %v1569_v20 = vpop.f32.mrf.mxu0 }
 0x2e9   : > { %v1570_v18 = vadd.f32 %v3665_v17, %v1569_v20 }
 0x2ea   : > { %v4369_v3 = vpop.f32.mrf.mxu0 }
 0x2eb   : > { %v1721_v61 = vadd.f32 %v1720_v15, %v1570_v18 }
 0x300   : > { %v1913_v55 = vpop.f32.mrf.mxu1 }
 0x302   : > { %v4474_v26 = vpop.f32.mrf.mxu1 }
 0x309   : > { %v1824_v46 = vpop.f32.mrf.mxu0 }
 0x30a   : > { %v1825_v29 = vadd.f32 %v1824_v46, %v1721_v61 }
 0x30b   : > { %v4439_v8 = vpop.f32.mrf.mxu0 }
 0x30c   : > { %v1914_v7 = vadd.f32 %v1913_v55, %v1825_v29  ;;  %v2801_v55 = vld [vmem:[%s6739_s4 + $0x30] sm:$0xff] }
 0x322   : > { %v2119_v13 = vpop.f32.mrf.mxu1 }
 0x324   : > { %v4544_v28 = vpop.f32.mrf.mxu1 }
 0x325   : > { %v2800_v28 = vld [vmem:[%s6739_s4 + $0x28] sm:$0xff] }
 0x32a   : > { %v2032_v24 = vpop.f32.mrf.mxu0 }
 0x32b   : > { %v2033_v53 = vadd.f32 %v2032_v24, %v1914_v7 }
 0x32c   : > { %v4509_v21 = vpop.f32.mrf.mxu0 }
 0x32d   : > { %v2120_v49 = vadd.f32 %v2119_v13, %v2033_v53  ;;  %v6415_v13 = vand.u32 4294901760, %v2801_v55 }
 0x32f   : > { %5006 = vtanh.f32 %v2120_v49  ;;  %v6431_v21 = vsub.f32 %v2801_v55, %v6415_v13 }
 0x33c   : > { %v5007_v3 = vpop.eup %5006 }
 0x33d   : > { %3666 = vst [vmem:[%s5399_s15 + $0x10] sm:$0xff] %v5007_v3  ;;  %v6128_v26 = vand.u32 4294901760, %v5007_v3 }
 0x33f   : > { %4613 = vmatmul.mubr.f32.vlgmr.msra.gmra.mxu1 %v6128_v26  ;;  %v6132_v8 = vsub.f32 %v5007_v3, %v6128_v26  ;;  %v6433_v3 = vand.u32 4294901760, %v2800_v28 }
 0x340   : > { %4651 = vmatpush3.msra.mxu1 %v5932_v31  ;;  %4682 = vmatprep.mubr.msk.f32.mxu1 %vm5072_vm0, %v5071_v0 }
 0x341   : > { %4652 = vmatprep.subr.mxu1 %v5071_v0  ;;  %v2234_v24 = vand.u32 4294901760, %v6132_v8 }
 0x342   : > { %4653 = vmatpush3.msra.mxu1 %v5934_v41 }
 0x343   : > { %4654 = vmatprep.subr.mxu1 %v5071_v0  ;;  %v2235_v49 = vsub.f32 %v6132_v8, %v2234_v24 }
 0x344   : > { %4655 = vmatpush3.msra.mxu1 %v5956_v16 }
 0x345   : > { %4656 = vmatprep.subr.mxu1 %v5071_v0  ;;  %v2236_v53 = vand.u32 4294901760, %v2235_v49 }
 0x346   : > { %4657 = vmatpush3.msra.mxu1 %v5961_v40 }
 0x347   : > { %4658 = vmatprep.subr.mxu1 %v5071_v0  ;;  %4578 = vmatmul.mubr.f32.vlgmr.msra.gmra.mxu0 %v2236_v53  ;;  %v2975_v53 = vand.u32 4294901760, %v6431_v21 }
 0x348   : > { %4616 = vmatpush3.msra.mxu0 %v5937_v43  ;;  %4659 = vmatpush3.msra.mxu1 %v5969_v4  ;;  %v6764_v43 = vand.u32 4294901760, %v6107_v2 }
 0x349   : > { %4617 = vmatprep.subr.mxu0 %v5071_v0  ;;  %4660 = vmatprep.subr.mxu1 %v5071_v0 }
 0x34a   : > { %4618 = vmatpush3.msra.mxu0 %v5940_v44  ;;  %4661 = vmatpush3.msra.mxu1 %v5980_v19  ;;  %v2810_v44 = vld [vmem:[%s6739_s4 + $0x78] sm:$0xff] }
 0x34b   : > { %4619 = vmatprep.subr.mxu0 %v5071_v0  ;;  %4662 = vmatprep.subr.mxu1 %v5071_v0 }
 0x34c   : > { %4620 = vmatpush3.msra.mxu0 %v5959_v39  ;;  %4663 = vmatpush3.msra.mxu1 %v5992_v33 }
 0x34d   : > { %4621 = vmatprep.subr.mxu0 %v5071_v0  ;;  %4664 = vmatprep.subr.mxu1 %v5071_v0 }
 0x34e   : > { %4622 = vmatpush3.msra.mxu0 %v5967_v1  ;;  %4665 = vmatpush3.msra.mxu1 %v5999_v14 }
 0x34f   : > { %4623 = vmatprep.subr.mxu0 %v5071_v0  ;;  %4666 = vmatprep.subr.mxu1 %v5071_v0 }
 0x350   : > { %4624 = vmatpush3.msra.mxu0 %v5978_v12  ;;  %4667 = vmatpush3.msra.mxu1 %v6012_v38 }
 0x351   : > { %4625 = vmatprep.subr.mxu0 %v5071_v0  ;;  %4668 = vmatprep.subr.mxu1 %v5071_v0 }
 0x352   : > { %4626 = vmatpush3.msra.mxu0 %v5989_v32  ;;  %4669 = vmatpush3.msra.mxu1 %v6022_v35 }
 0x353   : > { %4627 = vmatprep.subr.mxu0 %v5071_v0  ;;  %4670 = vmatprep.subr.mxu1 %v5071_v0 }
 0x354   : > { %4628 = vmatpush3.msra.mxu0 %v6003_v25  ;;  %4671 = vmatpush3.msra.mxu1 %v6037_v11  ;;  %v2806_v25 = vld [vmem:[%s6739_s4 + $0x58] sm:$0xff] }
 0x355   : > { %4629 = vmatprep.subr.mxu0 %v5071_v0  ;;  %4672 = vmatprep.subr.mxu1 %v5071_v0 }
 0x356   : > { %4630 = vmatpush3.msra.mxu0 %v6010_v30  ;;  %4673 = vmatpush3.msra.mxu1 %v6050_v23 }
 0x357   : > { %4631 = vmatprep.subr.mxu0 %v5071_v0  ;;  %4674 = vmatprep.subr.mxu1 %v5071_v0 }
 0x358   : > { %4632 = vmatpush3.msra.mxu0 %v6020_v6  ;;  %4675 = vmatpush3.msra.mxu1 %v6058_v59 }
 0x359   : > { %4633 = vmatprep.subr.mxu0 %v5071_v0  ;;  %4676 = vmatprep.subr.mxu1 %v5071_v0 }
 0x35a   : > { %4634 = vmatpush3.msra.mxu0 %v6035_v42  ;;  %4677 = vmatpush3.msra.mxu1 %v6072_v57 }
 0x35b   : > { %4635 = vmatprep.subr.mxu0 %v5071_v0  ;;  %4678 = vmatprep.subr.mxu1 %v5071_v0 }
 0x35c   : > { %4636 = vmatpush3.msra.mxu0 %v6047_v22  ;;  %4679 = vmatpush3.msra.mxu1 %v6082_v47 }
 0x35d   : > { %4637 = vmatprep.subr.mxu0 %v5071_v0  ;;  %4680 = vmatprep.subr.mxu1 %v5071_v0 }
 0x35e   : > { %4638 = vmatpush3.msra.mxu0 %v6062_v62  ;;  %4681 = vmatpush3.msra.mxu1 %v6097_v54  ;;  %v2803_v62 = vld [vmem:[%s6739_s4 + $0x40] sm:$0xff] }
 0x35f   : > { %4639 = vmatprep.subr.mxu0 %v5071_v0  ;;  %4683 = vmatmul.mubr.f32.vlgmr.msra.gmra.mxu1 %v2234_v24 }
 0x360   : > { %4720 = vmatprep.subr.mxu1 %v5071_v0  ;;  %4640 = vmatpush3.msra.mxu0 %v6070_v50 }
 0x361   : > { %4721 = vmatpush3.msra.mxu1 %v5932_v31  ;;  %4641 = vmatprep.subr.mxu0 %v5071_v0  ;;  %v6762_v31 = vand.u32 4294901760, %v6080_v34 }
 0x362   : > { %4722 = vmatprep.subr.mxu1 %v5071_v0  ;;  %4642 = vmatpush3.msra.mxu0 %v6080_v34 }
 0x363   : > { %4723 = vmatpush3.msra.mxu1 %v5934_v41  ;;  %4643 = vmatprep.subr.mxu0 %v5071_v0  ;;  %v6763_v41 = vand.u32 4294901760, %v6095_v36 }
 0x364   : > { %4724 = vmatprep.subr.mxu1 %v5071_v0  ;;  %4644 = vmatpush3.msra.mxu0 %v6095_v36 }
 0x365   : > { %4725 = vmatpush3.msra.mxu1 %v5956_v16  ;;  %4645 = vmatprep.subr.mxu0 %v5071_v0 }
 0x366   : > { %4726 = vmatprep.subr.mxu1 %v5071_v0  ;;  %4646 = vmatpush3.msra.mxu0 %v6107_v2 }
 0x367   : > { %4647 = vmatprep.mubr.msk.f32.mxu0 %vm5072_vm0, %v5071_v0  ;;  %4727 = vmatpush3.msra.mxu1 %v5961_v40 }
 0x368   : > { %4648 = vmatmul.mubr.f32.vlgmr.msra.gmra.mxu0 %v6132_v8  ;;  %4685 = vmatprep.subr.mxu0 %v5071_v0  ;;  %v2799_v8 = vld [vmem:[%s6739_s4 + $0x20] sm:$0xff] }
 0x369   : > { %4728 = vmatprep.subr.mxu1 %v5071_v0  ;;  %4686 = vmatpush3.msra.mxu0 %v2245_v48  ;;  %v2809_v48 = vld [vmem:[%s6739_s4 + $0x70] sm:$0xff] }
 0x36a   : > { %4729 = vmatpush3.msra.mxu1 %v5969_v4  ;;  %4687 = vmatprep.subr.mxu0 %v5071_v0  ;;  %v6303_v16 = vand.u32 4294901760, %v2809_v48 }
 0x36b   : > { %4730 = vmatprep.subr.mxu1 %v5071_v0  ;;  %4688 = vmatpush3.msra.mxu0 %v2252_v51  ;;  %v6301_v51 = vand.u32 4294901760, %v2810_v44 }
 0x36c   : > { %4731 = vmatpush3.msra.mxu1 %v5980_v19  ;;  %4689 = vmatprep.subr.mxu0 %v5071_v0  ;;  %v6309_v40 = vsub.f32 %v2809_v48, %v6303_v16  ;;  %v2976_v48 = vsub.f32 %v6431_v21, %v2975_v53 }
 0x36d   : > { %4732 = vmatprep.subr.mxu1 %v5071_v0  ;;  %4690 = vmatpush3.msra.mxu0 %v2259_v63  ;;  %v6306_v39 = vsub.f32 %v2810_v44, %v6301_v51 }
 0x36e   : > { %4733 = vmatpush3.msra.mxu1 %v5992_v33  ;;  %4691 = vmatprep.subr.mxu0 %v5071_v0  ;;  %v2919_v1 = vand.u32 4294901760, %v6309_v40  ;;  %v2807_v33 = vld [vmem:[%s6739_s4 + $0x60] sm:$0xff] }
 0x36f   : > { %4734 = vmatprep.subr.mxu1 %v5071_v0  ;;  %4692 = vmatpush3.msra.mxu0 %v2266_v60  ;;  %v2912_v63 = vand.u32 4294901760, %v6306_v39 }
 0x370   : > { %4735 = vmatpush3.msra.mxu1 %v5999_v14  ;;  %4693 = vmatprep.subr.mxu0 %v5071_v0  ;;  %v2920_v60 = vsub.f32 %v6309_v40, %v2919_v1  ;;  %v6336_v14 = vand.u32 4294901760, %v2807_v33 }
 0x371   : > { %4736 = vmatprep.subr.mxu1 %v5071_v0  ;;  %4694 = vmatpush3.msra.mxu0 %v2273_v9  ;;  %v2913_v4 = vsub.f32 %v6306_v39, %v2912_v63  ;;  %v2808_v9 = vld [vmem:[%s6739_s4 + $0x68] sm:$0xff] }
 0x372   : > { %4737 = vmatpush3.msra.mxu1 %v6012_v38  ;;  %4695 = vmatprep.subr.mxu0 %v5071_v0  ;;  %v2921_v19 = vand.u32 4294901760, %v2920_v60  ;;  %v6328_v32 = vand.u32 4294901760, %v2808_v9  ;;  %v6345_v38 = vsub.f32 %v2807_v33, %v6336_v14 }
 0x373   : > { %4738 = vmatprep.subr.mxu1 %v5071_v0  ;;  %4696 = vmatpush3.msra.mxu0 %v2280_v56  ;;  %v2914_v12 = vand.u32 4294901760, %v2913_v4 }
 0x374   : > { %4739 = vmatpush3.msra.mxu1 %v6022_v35  ;;  %4697 = vmatprep.subr.mxu0 %v5071_v0  ;;  %v6334_v56 = vsub.f32 %v2808_v9, %v6328_v32  ;;  %v2933_v35 = vand.u32 4294901760, %v6345_v38  ;;  %v2977_v9 = vand.u32 4294901760, %v2976_v48 }
 0x375   : > { %4740 = vmatprep.subr.mxu1 %v5071_v0  ;;  %4698 = vmatpush3.msra.mxu0 %v2287_v10  ;;  %v6347_v10 = vand.u32 4294901760, %v2806_v25 }
 0x376   : > { %4741 = vmatpush3.msra.mxu1 %v6037_v11  ;;  %4699 = vmatprep.subr.mxu0 %v5071_v0  ;;  %v2926_v30 = vand.u32 4294901760, %v6334_v56  ;;  %v2804_v11 = vld [vmem:[%s6739_s4 + $0x48] sm:$0xff]  ;;  %v2934_v22 = vsub.f32 %v6345_v38, %v2933_v35 }
 0x377   : > { %4742 = vmatprep.subr.mxu1 %v5071_v0  ;;  %4700 = vmatpush3.msra.mxu0 %v2294_v5  ;;  %v2805_v5 = vld [vmem:[%s6739_s4 + $0x50] sm:$0xff] }
 0x378   : > { %4743 = vmatpush3.msra.mxu1 %v6050_v23  ;;  %4701 = vmatprep.subr.mxu0 %v5071_v0  ;;  %v2927_v6 = vsub.f32 %v6334_v56, %v2926_v30  ;;  %v6361_v42 = vand.u32 4294901760, %v2805_v5  ;;  %v2935_v50 = vand.u32 4294901760, %v2934_v22 }
 0x379   : > { %4744 = vmatprep.subr.mxu1 %v5071_v0  ;;  %4702 = vmatpush3.msra.mxu0 %v2301_v37  ;;  %v6359_v37 = vsub.f32 %v2806_v25, %v6347_v10 }
 0x37a   : > { %4745 = vmatpush3.msra.mxu1 %v6058_v59  ;;  %4703 = vmatprep.subr.mxu0 %v5071_v0  ;;  %v6376_v59 = vand.u32 4294901760, %v2804_v11 }
 0x37b   : > { %4746 = vmatprep.subr.mxu1 %v5071_v0  ;;  %4704 = vmatpush3.msra.mxu0 %v2308_v27  ;;  %v2928_v27 = vand.u32 4294901760, %v2927_v6  ;;  %v2940_v23 = vand.u32 4294901760, %v6359_v37 }
 0x37c   : > { %4747 = vmatpush3.msra.mxu1 %v6072_v57  ;;  %4705 = vmatprep.subr.mxu0 %v5071_v0  ;;  %v6390_v34 = vsub.f32 %v2804_v11, %v6376_v59  ;;  %v2796_v11 = vld [vmem:[%s6739_s4 + $0x8] sm:$0xff] }
 0x37d   : > { %4748 = vmatprep.subr.mxu1 %v5071_v0  ;;  %4706 = vmatpush3.msra.mxu0 %v2315_v52  ;;  %v6373_v52 = vsub.f32 %v2805_v5, %v6361_v42  ;;  %v2941_v57 = vsub.f32 %v6359_v37, %v2940_v23 }
 0x37e   : > { %4749 = vmatpush3.msra.mxu1 %v6082_v47  ;;  %4707 = vmatprep.subr.mxu0 %v5071_v0  ;;  %v2802_v47 = vld [vmem:[%s6739_s4 + $0x38] sm:$0xff]  ;;  %v2954_v20 = vand.u32 4294901760, %v6390_v34 }
 0x37f   : > { %4750 = vmatprep.subr.mxu1 %v5071_v0  ;;  %4708 = vmatpush3.msra.mxu0 %v2322_v58  ;;  %v2947_v58 = vand.u32 4294901760, %v6373_v52  ;;  %v2942_v36 = vand.u32 4294901760, %v2941_v57  ;;  %v6402_v15 = vand.u32 4294901760, %v2802_v47 }
 0x380   : > { %4751 = vmatpush3.msra.mxu1 %v6097_v54  ;;  %4752 = vmatprep.mubr.msk.f32.mxu1 %vm5072_vm0, %v5071_v0  ;;  %v2955_v61 = vsub.f32 %v6390_v34, %v2954_v20 }
 0x381   : > { %4709 = vmatprep.subr.mxu0 %v5071_v0  ;;  %4753 = vmatmul.mubr.f32.vlgmr.msra.gmra.mxu1 %v6128_v26  ;;  %v2948_v54 = vsub.f32 %v6373_v52, %v2947_v58  ;;  %v6413_v18 = vsub.f32 %v2802_v47, %v6402_v15  ;;  %v2795_v47 = vld [vmem:[%s6739_s4] sm:$0xff] }
 0x382   : > { %4710 = vmatpush3.msra.mxu0 %v2329_v45  ;;  %4717 = vmatprep.mubr.msk.f32.mxu0 %vm5072_vm0, %v5071_v0  ;;  %v6386_v45 = vand.u32 4294901760, %v2803_v62 }
 0x383   : > { %4711 = vmatprep.subr.mxu0 %v5071_v0  ;;  %4790 = vmatprep.subr.mxu1 %v5071_v0  ;;  %v2949_v46 = vand.u32 4294901760, %v2948_v54  ;;  %v2968_v7 = vand.u32 4294901760, %v6413_v18 }
 0x384   : > { %4712 = vmatpush3.msra.mxu0 %v6762_v31  ;;  %4822 = vmatprep.mubr.msk.f32.mxu1 %vm5072_vm0, %v5071_v0  ;;  %v6400_v2 = vsub.f32 %v2803_v62, %v6386_v45  ;;  %v6446_v31 = vsub.f32 %v2800_v28, %v6433_v3 }
 0x385   : > { %4713 = vmatprep.subr.mxu0 %v5071_v0  ;;  %4791 = vmatpush3.msra.mxu1 %v2914_v12  ;;  %v2969_v49 = vsub.f32 %v6413_v18, %v2968_v7 }
 0x386   : > { %4714 = vmatpush3.msra.mxu0 %v6763_v41  ;;  %4792 = vmatprep.subr.mxu1 %v5071_v0  ;;  %v2961_v17 = vand.u32 4294901760, %v6400_v2  ;;  %v6449_v41 = vand.u32 4294901760, %v2799_v8  ;;  %v2982_v4 = vand.u32 4294901760, %v6446_v31 }
 0x387   : > { %4715 = vmatprep.subr.mxu0 %v5071_v0  ;;  %4793 = vmatpush3.msra.mxu1 %v2921_v19  ;;  %v2970_v44 = vand.u32 4294901760, %v2969_v49  ;;  %v2797_v19 = vld [vmem:[%s6739_s4 + $0x10] sm:$0xff] }
 0x388   : > { %4716 = vmatpush3.msra.mxu0 %v6764_v43  ;;  %4794 = vmatprep.subr.mxu1 %v5071_v0  ;;  %v2962_v29 = vsub.f32 %v6400_v2, %v2961_v17  ;;  %v2798_v43 = vld [vmem:[%s6739_s4 + $0x18] sm:$0xff]  ;;  %v6464_v12 = vsub.f32 %v2799_v8, %v6449_v41  ;;  %v2983_v33 = vsub.f32 %v6446_v31, %v2982_v4  ;;  %v6477_v5 = vand.u32 4294901760, %v2797_v19 }
 0x389   : > { %4718 = vmatmul.mubr.f32.vlgmr.msra.gmra.mxu0 %v6128_v26  ;;  %4755 = vmatprep.subr.mxu0 %v5071_v0  ;;  %v2956_v26 = vand.u32 4294901760, %v2955_v61  ;;  %v6460_v60 = vand.u32 4294901760, %v2798_v43 }
 0x38a   : > { %4787 = vmatprep.mubr.msk.f32.mxu0 %vm5072_vm0, %v5071_v0  ;;  %4756 = vmatpush3.msra.mxu0 %v6301_v51  ;;  %v2963_v24 = vand.u32 4294901760, %v2962_v29  ;;  %v2989_v6 = vand.u32 4294901760, %v6464_v12  ;;  %v6488_v62 = vsub.f32 %v2797_v19, %v6477_v5 }
 0x38b   : > { %4757 = vmatprep.subr.mxu0 %v5071_v0  ;;  %4795 = vmatpush3.msra.mxu1 %v2928_v27  ;;  %v6475_v25 = vsub.f32 %v2798_v43, %v6460_v60  ;;  %v2984_v27 = vand.u32 4294901760, %v2983_v33 }
 0x38c   : > { %4758 = vmatpush3.msra.mxu0 %v6303_v16  ;;  %4796 = vmatprep.subr.mxu1 %v5071_v0  ;;  %v2990_v57 = vsub.f32 %v6464_v12, %v2989_v6  ;;  %v6754_v54 = vand.u32 4294901760, %v6488_v62 }
 0x38d   : > { %4759 = vmatprep.subr.mxu0 %v5071_v0  ;;  %4797 = vmatpush3.msra.mxu1 %v2935_v50  ;;  %v2996_v22 = vand.u32 4294901760, %v6475_v25  ;;  %v6490_v50 = vand.u32 4294901760, %v2796_v11 }
 0x38e   : > { %4760 = vmatpush3.msra.mxu0 %v6328_v32  ;;  %4798 = vmatprep.subr.mxu1 %v5071_v0  ;;  %v2991_v61 = vand.u32 4294901760, %v2990_v57  ;;  %v3004_v29 = vsub.f32 %v6488_v62, %v6754_v54 }
 0x38f   : > { %4761 = vmatprep.subr.mxu0 %v5071_v0  ;;  %4799 = vmatpush3.msra.mxu1 %v2942_v36  ;;  %v2997_v36 = vsub.f32 %v6475_v25, %v2996_v22  ;;  %v6506_v55 = vsub.f32 %v2796_v11, %v6490_v50 }
 0x390   : > { %4762 = vmatpush3.msra.mxu0 %v6336_v14  ;;  %4800 = vmatprep.subr.mxu1 %v5071_v0 }
 0x391   : > { %4763 = vmatprep.subr.mxu0 %v5071_v0  ;;  %4801 = vmatpush3.msra.mxu1 %v2949_v46  ;;  %v6508_v46 = vand.u32 4294901760, %v2795_v47  ;;  %v2998_v28 = vand.u32 4294901760, %v2997_v36 }
 0x392   : > { %4764 = vmatpush3.msra.mxu0 %v6347_v10  ;;  %4802 = vmatprep.subr.mxu1 %v5071_v0 }
 0x393   : > { %4765 = vmatprep.subr.mxu0 %v5071_v0  ;;  %4803 = vmatpush3.msra.mxu1 %v2956_v26  ;;  %v6753_v26 = vand.u32 4294901760, %v6506_v55  ;;  %v6518_v8 = vsub.f32 %v2795_v47, %v6508_v46 }
 0x394   : > { %4766 = vmatpush3.msra.mxu0 %v6361_v42  ;;  %4804 = vmatprep.subr.mxu1 %v5071_v0 }
 0x395   : > { %4767 = vmatprep.subr.mxu0 %v5071_v0  ;;  %4805 = vmatpush3.msra.mxu1 %v2963_v24  ;;  %v3005_v24 = vand.u32 4294901760, %v3004_v29  ;;  %v3011_v49 = vsub.f32 %v6506_v55, %v6753_v26  ;;  %v6752_v43 = vand.u32 4294901760, %v6518_v8 }
 0x396   : > { %4768 = vmatpush3.msra.mxu0 %v6376_v59  ;;  %4806 = vmatprep.subr.mxu1 %v5071_v0 }
 0x397   : > { %4769 = vmatprep.subr.mxu0 %v5071_v0  ;;  %4807 = vmatpush3.msra.mxu1 %v2970_v44  ;;  %v3012_v44 = vand.u32 4294901760, %v3011_v49  ;;  %v3018_v48 = vsub.f32 %v6518_v8, %v6752_v43 }
 0x398   : > { %4770 = vmatpush3.msra.mxu0 %v6386_v45  ;;  %4808 = vmatprep.subr.mxu1 %v5071_v0 }
 0x399   : > { %4771 = vmatprep.subr.mxu0 %v5071_v0  ;;  %4809 = vmatpush3.msra.mxu1 %v2977_v9  ;;  %v3019_v19 = vand.u32 4294901760, %v3018_v48 }
 0x39a   : > { %4772 = vmatpush3.msra.mxu0 %v6402_v15  ;;  %4810 = vmatprep.subr.mxu1 %v5071_v0 }
 0x39b   : > { %4773 = vmatprep.subr.mxu0 %v5071_v0  ;;  %4811 = vmatpush3.msra.mxu1 %v2984_v27 }
 0x39c   : > { %4774 = vmatpush3.msra.mxu0 %v6415_v13  ;;  %4812 = vmatprep.subr.mxu1 %v5071_v0 }
 0x39d   : > { %4775 = vmatprep.subr.mxu0 %v5071_v0  ;;  %4813 = vmatpush3.msra.mxu1 %v2991_v61 }
 0x39e   : > { %4776 = vmatpush3.msra.mxu0 %v6433_v3  ;;  %4814 = vmatprep.subr.mxu1 %v5071_v0 }
 0x39f   : > { %4777 = vmatprep.subr.mxu0 %v5071_v0  ;;  %4815 = vmatpush3.msra.mxu1 %v2998_v28  ;;  %v3668_v28 = vld [vmem:[%s6738_s3 + $0x2] ss:$0 sm:$0xff] }
 0x3a0   : > { %4778 = vmatpush3.msra.mxu0 %v6449_v41  ;;  %4816 = vmatprep.subr.mxu1 %v5071_v0 }
 0x3a1   : > { %4779 = vmatprep.subr.mxu0 %v5071_v0  ;;  %4817 = vmatpush3.msra.mxu1 %v3005_v24 }
 0x3a2   : > { %4780 = vmatpush3.msra.mxu0 %v6460_v60  ;;  %4818 = vmatprep.subr.mxu1 %v5071_v0 }
 0x3a3   : > { %4781 = vmatprep.subr.mxu0 %v5071_v0  ;;  %4819 = vmatpush3.msra.mxu1 %v3012_v44 }
 0x3a4   : > { %4782 = vmatpush3.msra.mxu0 %v6477_v5  ;;  %4820 = vmatprep.subr.mxu1 %v5071_v0 }
 0x3a5   : > { %4783 = vmatprep.subr.mxu0 %v5071_v0  ;;  %4821 = vmatpush3.msra.mxu1 %v3019_v19 }
 0x3a6   : > { %4784 = vmatpush3.msra.mxu0 %v6490_v50  ;;  %4860 = vmatprep.subr.mxu1 %v5071_v0 }
 0x3a7   : > { %4785 = vmatprep.subr.mxu0 %v5071_v0 }
 0x3a8   : > { %4786 = vmatpush3.msra.mxu0 %v6508_v46 }
 0x3a9   : > { %4825 = vmatprep.subr.mxu0 %v5071_v0 }
 0x3ff   : > { %v2389_v9 = vpop.f32.mrf.mxu1 }
 0x401   : > { %v4614_v33 = vpop.f32.mrf.mxu1 }
 0x407   : > { %v2238_v11 = vpop.f32.mrf.mxu0 }
 0x408   : > { %v2239_v29 = vadd.f32 %v3668_v28, %v2238_v11 }
 0x409   : > { %v4579_v27 = vpop.f32.mrf.mxu0 }
 0x40a   : > { %v2390_v49 = vadd.f32 %v2389_v9, %v2239_v29 }
 0x41f   : > { %v2582_v57 = vpop.f32.mrf.mxu1 }
 0x421   : > { %v4684_v47 = vpop.f32.mrf.mxu1 }
 0x428   : > { %v2493_v36 = vpop.f32.mrf.mxu0 }
 0x429   : > { %v2494_v48 = vadd.f32 %v2493_v36, %v2390_v49 }
 0x42a   : > { %v4649_v61 = vpop.f32.mrf.mxu0 }
 0x42b   : > { %v2583_v19 = vadd.f32 %v2582_v57, %v2494_v48 }
 0x441   : > { %v2788_v24 = vpop.f32.mrf.mxu1 }
 0x443   : > { %v4754_v44 = vpop.f32.mrf.mxu1 }
 0x449   : > { %v2701_v43 = vpop.f32.mrf.mxu0 }
 0x44a   : > { %v2702_v26 = vadd.f32 %v2701_v43, %v2583_v19 }
 0x44b   : > { %v4719_v33 = vpop.f32.mrf.mxu0 }
 0x44c   : > { %v2789_v54 = vadd.f32 %v2788_v24, %v2702_v26 }
 0x44e   : > { %5008 = vtanh.f32 %v2789_v54 }
 0x45b   : > { %v5009_v27 = vpop.eup %5008 }
 0x45c   : > { %3669 = vst [vmem:[%s5399_s15 + $0x18] sm:$0xff] %v5009_v27  ;;  %v6539_v47 = vand.u32 4294901760, %v5009_v27 }
 0x45e   : > { %4823 = vmatmul.mubr.f32.vlgmr.msra.gmra.mxu1 %v6539_v47  ;;  %v6543_v61 = vsub.f32 %v5009_v27, %v6539_v47 }
 0x45f   : > { %4861 = vmatpush3.msra.mxu1 %v6301_v51  ;;  %4892 = vmatprep.mubr.msk.f32.mxu1 %vm5072_vm0, %v5071_v0 }
 0x460   : > { %4862 = vmatprep.subr.mxu1 %v5071_v0  ;;  %v2901_v43 = vand.u32 4294901760, %v6543_v61 }
 0x461   : > { %4863 = vmatpush3.msra.mxu1 %v6303_v16 }
 0x462   : > { %4864 = vmatprep.subr.mxu1 %v5071_v0  ;;  %v2902_v54 = vsub.f32 %v6543_v61, %v2901_v43 }
 0x463   : > { %4865 = vmatpush3.msra.mxu1 %v6328_v32 }
 0x464   : > { %4866 = vmatprep.subr.mxu1 %v5071_v0  ;;  %v2903_v26 = vand.u32 4294901760, %v2902_v54 }
 0x465   : > { %4867 = vmatpush3.msra.mxu1 %v6336_v14 }
 0x466   : > { %4868 = vmatprep.subr.mxu1 %v5071_v0  ;;  %4788 = vmatmul.mubr.f32.vlgmr.msra.gmra.mxu0 %v2903_v26 }
 0x467   : > { %4826 = vmatpush3.msra.mxu0 %v6306_v39  ;;  %4869 = vmatpush3.msra.mxu1 %v6347_v10  ;;  %v6767_v39 = vand.u32 4294901760, %v6518_v8 }
 0x468   : > { %4827 = vmatprep.subr.mxu0 %v5071_v0  ;;  %4870 = vmatprep.subr.mxu1 %v5071_v0 }
 0x469   : > { %4828 = vmatpush3.msra.mxu0 %v6309_v40  ;;  %4871 = vmatpush3.msra.mxu1 %v6361_v42 }
 0x46a   : > { %4829 = vmatprep.subr.mxu0 %v5071_v0  ;;  %4872 = vmatprep.subr.mxu1 %v5071_v0 }
 0x46b   : > { %4830 = vmatpush3.msra.mxu0 %v6334_v56  ;;  %4873 = vmatpush3.msra.mxu1 %v6376_v59 }
 0x46c   : > { %4831 = vmatprep.subr.mxu0 %v5071_v0  ;;  %4874 = vmatprep.subr.mxu1 %v5071_v0 }
 0x46d   : > { %4832 = vmatpush3.msra.mxu0 %v6345_v38  ;;  %4875 = vmatpush3.msra.mxu1 %v6386_v45 }
 0x46e   : > { %4833 = vmatprep.subr.mxu0 %v5071_v0  ;;  %4876 = vmatprep.subr.mxu1 %v5071_v0 }
 0x46f   : > { %4834 = vmatpush3.msra.mxu0 %v6359_v37  ;;  %4877 = vmatpush3.msra.mxu1 %v6402_v15 }
 0x470   : > { %4835 = vmatprep.subr.mxu0 %v5071_v0  ;;  %4878 = vmatprep.subr.mxu1 %v5071_v0 }
 0x471   : > { %4836 = vmatpush3.msra.mxu0 %v6373_v52  ;;  %4879 = vmatpush3.msra.mxu1 %v6415_v13 }
 0x472   : > { %4837 = vmatprep.subr.mxu0 %v5071_v0  ;;  %4880 = vmatprep.subr.mxu1 %v5071_v0 }
 0x473   : > { %4838 = vmatpush3.msra.mxu0 %v6390_v34  ;;  %4881 = vmatpush3.msra.mxu1 %v6433_v3 }
 0x474   : > { %4839 = vmatprep.subr.mxu0 %v5071_v0  ;;  %4882 = vmatprep.subr.mxu1 %v5071_v0 }
 0x475   : > { %4840 = vmatpush3.msra.mxu0 %v6400_v2  ;;  %4883 = vmatpush3.msra.mxu1 %v6449_v41 }
 0x476   : > { %4841 = vmatprep.subr.mxu0 %v5071_v0  ;;  %4884 = vmatprep.subr.mxu1 %v5071_v0 }
 0x477   : > { %4842 = vmatpush3.msra.mxu0 %v6413_v18  ;;  %4885 = vmatpush3.msra.mxu1 %v6460_v60 }
 0x478   : > { %4843 = vmatprep.subr.mxu0 %v5071_v0  ;;  %4886 = vmatprep.subr.mxu1 %v5071_v0 }
 0x479   : > { %4844 = vmatpush3.msra.mxu0 %v6431_v21  ;;  %4887 = vmatpush3.msra.mxu1 %v6477_v5 }
 0x47a   : > { %4845 = vmatprep.subr.mxu0 %v5071_v0  ;;  %4888 = vmatprep.subr.mxu1 %v5071_v0 }
 0x47b   : > { %4846 = vmatpush3.msra.mxu0 %v6446_v31  ;;  %4889 = vmatpush3.msra.mxu1 %v6490_v50  ;;  %v3532_v31 = vld [vmem:[%s5399_s15 + $0x8] sm:$0xff] (%p5143_p4) }
 0x47c   : > { %4847 = vmatprep.subr.mxu0 %v5071_v0  ;;  %4890 = vmatprep.subr.mxu1 %v5071_v0  ;;  %3533 = vst [vmem:[%s3495_s19 + $0x18] sm:$0xff] (%p5143_p4), %v3532_v31 }
 0x47d   : > { %4848 = vmatpush3.msra.mxu0 %v6464_v12  ;;  %4891 = vmatpush3.msra.mxu1 %v6508_v46 }
 0x47e   : > { %4849 = vmatprep.subr.mxu0 %v5071_v0  ;;  %4893 = vmatmul.mubr.f32.vlgmr.msra.gmra.mxu1 %v2901_v43 }
 0x47f   : > { %4930 = vmatprep.subr.mxu1 %v5071_v0  ;;  %4850 = vmatpush3.msra.mxu0 %v6475_v25 }
 0x480   : > { %4931 = vmatpush3.msra.mxu1 %v6301_v51  ;;  %4851 = vmatprep.subr.mxu0 %v5071_v0  ;;  %v6765_v51 = vand.u32 4294901760, %v6488_v62 }
 0x481   : > { %4932 = vmatprep.subr.mxu1 %v5071_v0  ;;  %4852 = vmatpush3.msra.mxu0 %v6488_v62 }
 0x482   : > { %4933 = vmatpush3.msra.mxu1 %v6303_v16  ;;  %4853 = vmatprep.subr.mxu0 %v5071_v0  ;;  %v6766_v16 = vand.u32 4294901760, %v6506_v55 }
 0x483   : > { %4934 = vmatprep.subr.mxu1 %v5071_v0  ;;  %4854 = vmatpush3.msra.mxu0 %v6506_v55 }
 0x484   : > { %4935 = vmatpush3.msra.mxu1 %v6328_v32  ;;  %4855 = vmatprep.subr.mxu0 %v5071_v0 }
 0x485   : > { %4936 = vmatprep.subr.mxu1 %v5071_v0  ;;  %4856 = vmatpush3.msra.mxu0 %v6518_v8 }
 0x486   : > { %4857 = vmatprep.mubr.msk.f32.mxu0 %vm5072_vm0, %v5071_v0  ;;  %4937 = vmatpush3.msra.mxu1 %v6336_v14 }
 0x487   : > { %4858 = vmatmul.mubr.f32.vlgmr.msra.gmra.mxu0 %v6543_v61  ;;  %4895 = vmatprep.subr.mxu0 %v5071_v0 }
 0x488   : > { %4938 = vmatprep.subr.mxu1 %v5071_v0  ;;  %4896 = vmatpush3.msra.mxu0 %v2912_v63 }
 0x489   : > { %4939 = vmatpush3.msra.mxu1 %v6347_v10  ;;  %4897 = vmatprep.subr.mxu0 %v5071_v0  ;;  %v3670_v10 = vld [vmem:[%s6740_s5] ss:$0 sm:$0xff] }
 0x48a   : > { %4940 = vmatprep.subr.mxu1 %v5071_v0  ;;  %4898 = vmatpush3.msra.mxu0 %v2919_v1 }
 0x48b   : > { %4941 = vmatpush3.msra.mxu1 %v6361_v42  ;;  %4899 = vmatprep.subr.mxu0 %v5071_v0 }
 0x48c   : > { %4942 = vmatprep.subr.mxu1 %v5071_v0  ;;  %4900 = vmatpush3.msra.mxu0 %v2926_v30 }
 0x48d   : > { %4943 = vmatpush3.msra.mxu1 %v6376_v59  ;;  %4901 = vmatprep.subr.mxu0 %v5071_v0 }
 0x48e   : > { %4944 = vmatprep.subr.mxu1 %v5071_v0  ;;  %4902 = vmatpush3.msra.mxu0 %v2933_v35 }
 0x48f   : > { %4945 = vmatpush3.msra.mxu1 %v6386_v45  ;;  %4903 = vmatprep.subr.mxu0 %v5071_v0 }
 0x490   : > { %4946 = vmatprep.subr.mxu1 %v5071_v0  ;;  %4904 = vmatpush3.msra.mxu0 %v2940_v23 }
 0x491   : > { %4947 = vmatpush3.msra.mxu1 %v6402_v15  ;;  %4905 = vmatprep.subr.mxu0 %v5071_v0 }
 0x492   : > { %4948 = vmatprep.subr.mxu1 %v5071_v0  ;;  %4906 = vmatpush3.msra.mxu0 %v2947_v58 }
 0x493   : > { %4949 = vmatpush3.msra.mxu1 %v6415_v13  ;;  %4907 = vmatprep.subr.mxu0 %v5071_v0 }
 0x494   : > { %4950 = vmatprep.subr.mxu1 %v5071_v0  ;;  %4908 = vmatpush3.msra.mxu0 %v2954_v20 }
 0x495   : > { %4951 = vmatpush3.msra.mxu1 %v6433_v3  ;;  %4909 = vmatprep.subr.mxu0 %v5071_v0 }
 0x496   : > { %4952 = vmatprep.subr.mxu1 %v5071_v0  ;;  %4910 = vmatpush3.msra.mxu0 %v2961_v17 }
 0x497   : > { %4953 = vmatpush3.msra.mxu1 %v6449_v41  ;;  %4911 = vmatprep.subr.mxu0 %v5071_v0  ;;  %v3534_v41 = vld [vmem:[%s5399_s15 + $0x10] sm:$0xff] (%p5143_p4) }
 0x498   : > { %4954 = vmatprep.subr.mxu1 %v5071_v0  ;;  %4912 = vmatpush3.msra.mxu0 %v2968_v7  ;;  %3535 = vst [vmem:[%s3495_s19 + $0x30] sm:$0xff] (%p5143_p4), %v3534_v41 }
 0x499   : > { %4955 = vmatpush3.msra.mxu1 %v6460_v60  ;;  %4913 = vmatprep.subr.mxu0 %v5071_v0 }
 0x49a   : > { %4956 = vmatprep.subr.mxu1 %v5071_v0  ;;  %4914 = vmatpush3.msra.mxu0 %v2975_v53  ;;  %v3530_v53 = vld [vmem:[%s5399_s15] sm:$0xff] (%p5143_p4) }
 0x49b   : > { %4957 = vmatpush3.msra.mxu1 %v6477_v5  ;;  %4915 = vmatprep.subr.mxu0 %v5071_v0  ;;  %3531 = vst [vmem:[%s3495_s19] sm:$0xff] (%p5143_p4), %v3530_v53 }
 0x49c   : > { %4958 = vmatprep.subr.mxu1 %v5071_v0  ;;  %4916 = vmatpush3.msra.mxu0 %v2982_v4  ;;  %v3536_v4 = vld [vmem:[%s5399_s15 + $0x18] sm:$0xff] (%p5143_p4) }
 0x49d   : > { %4959 = vmatpush3.msra.mxu1 %v6490_v50  ;;  %4917 = vmatprep.subr.mxu0 %v5071_v0  ;;  %3537 = vst [vmem:[%s3495_s19 + $0x48] sm:$0xff] (%p5143_p4), %v3536_v4 }
 0x49e   : > { %4960 = vmatprep.subr.mxu1 %v5071_v0  ;;  %4918 = vmatpush3.msra.mxu0 %v2989_v6 }
 0x49f   : > { %4961 = vmatpush3.msra.mxu1 %v6508_v46  ;;  %4962 = vmatprep.mubr.msk.f32.mxu1 %vm5072_vm0, %v5071_v0 }
 0x4a0   : > { %4919 = vmatprep.subr.mxu0 %v5071_v0  ;;  %4963 = vmatmul.mubr.f32.vlgmr.msra.gmra.mxu1 %v6539_v47 }
 0x4a1   : > { %4920 = vmatpush3.msra.mxu0 %v2996_v22  ;;  %4927 = vmatprep.mubr.msk.f32.mxu0 %vm5072_vm0, %v5071_v0 }
 0x4a2   : > { %4921 = vmatprep.subr.mxu0 %v5071_v0 }
 0x4a3   : > { %4922 = vmatpush3.msra.mxu0 %v6765_v51 }
 0x4a4   : > { %4923 = vmatprep.subr.mxu0 %v5071_v0 }
 0x4a5   : > { %4924 = vmatpush3.msra.mxu0 %v6766_v16 }
 0x4a6   : > { %4925 = vmatprep.subr.mxu0 %v5071_v0 }
 0x4a7   : > { %4926 = vmatpush3.msra.mxu0 %v6767_v39 }
 0x4a8   : > { %4928 = vmatmul.mubr.f32.vlgmr.msra.gmra.mxu0 %v6539_v47 }
 0x51e   : > { %v3056_v40 = vpop.f32.mrf.mxu1 }
 0x520   : > { %v4824_v63 = vpop.f32.mrf.mxu1 }
 0x526   : > { %v2905_v1 = vpop.f32.mrf.mxu0 }
 0x527   : > { %v2906_v35 = vadd.f32 %v3670_v10, %v2905_v1 }
 0x528   : > { %v4789_v32 = vpop.f32.mrf.mxu0 }
 0x529   : > { %v3057_v37 = vadd.f32 %v3056_v40, %v2906_v35 }
 0x53e   : > { %v3249_v56 = vpop.f32.mrf.mxu1 }
 0x540   : > { %v4894_v14 = vpop.f32.mrf.mxu1 }
 0x547   : > { %v3160_v30 = vpop.f32.mrf.mxu0 }
 0x548   : > { %v3161_v23 = vadd.f32 %v3160_v30, %v3057_v37 }
 0x549   : > { %v4859_v38 = vpop.f32.mrf.mxu0 }
 0x54a   : > { %v3250_v52 = vadd.f32 %v3249_v56, %v3161_v23 }
 0x560   : > { %v3455_v0 = vpop.f32.mrf.mxu1 }
 0x562   : > { %v4964_v42 = vpop.f32.mrf.mxu1 }
 0x568   : > { %v3368_v59 = vpop.f32.mrf.mxu0 }
 0x569   : > { %v3369_v58 = vadd.f32 %v3368_v59, %v3250_v52 }
 0x56a   : > { %v4929_v45 = vpop.f32.mrf.mxu0 }
 0x56b   : > { %v3456_v34 = vadd.f32 %v3455_v0, %v3369_v58 }
 0x56d   : > { %v3461_v2 = vsel %vm3459_vm3, %v3456_v34, -inf  ;;  %3460 = vst.msk [vmem:[%s332_s10] sm:$0xff] %vm3459_vm3, %v3456_v34 }
 0x56e   : > { %3462 = vmax.xlane.f32.xlu0 %v3461_v2 }
 0x5f7   : > { %v3463_v15 = vpop.xlane.xlu0 %3462 }
 0x5f8   : > { %v3464_v20 = vsub.f32 %v3456_v34, %v3463_v15 }
 0x5fa   : > { %v3465_v17 = vmul.f32 1.442695, %v3464_v20 }
 0x5fc   : > { %5010 = vpow2.f32 %v3465_v17 }
 0x609   : > { %v5011_v18 = vpop.eup %5010 }
 0x60a   : > { %v3467_v13 = vsel %vm3459_vm3, %v5011_v18, 0.0 }
 0x60b   : > { %3468 = vadd.xlane.f32.xlu0 %v3467_v13 }
 0x694   : > { %v3469_v7 = vpop.xlane.xlu0 %3468 }
 0x695   : > { %5012 = vrcp.f32 %v3469_v7 }
 0x6a1   : > { %3493 = sbr.rel (!%p5143_p4) target bundleno = 1702 (0x6a6), region = 60 }
 0x6a2   : > { %v5013_v21 = vpop.eup %5012 }
 0x6a3   : > { %v3471_v3 = vmul.f32 %v5013_v21, %v5011_v18 }
 0x6a5   : > { %3472 = vst.msk [vmem:[%s328_s27] sm:$0xff] %vm3459_vm3, %v3471_v3 }
 0x6a6 PF: > { %p17_p4 = scmp.ge.s32.totalorder %s5133_s9, 5   ;;  %s6768_s27 = smov %s5062_s28 }
 0x6a7   : > { %s6769_s28 = smov %s5141_s12  ;;  %s6770_s29 = smov %s5133_s9 }
 0x6a8   :  { %19 = sbr.rel (!%p17_p4) target bundleno = 2 (0x2), region = 148 }
 0x6ad   :  { %3567 = vsyncpa [#allocation3], 1 }
 0x6ae   :  { %3569 = vsyncpa [#allocation3 + $0x1], 1 }

</bundles_post_ra>
